<compile_context>
chip_gen: v5e
topology: v5e:2x2
jax: 0.10.0
libtpu: 0.0.40
codegen_flags: <defaults>
</compile_context>

<pallas_src>
import jax
import jax.numpy as jnp
from jax.experimental import pallas as pl
from jax.experimental.pallas import tpu as pltpu

EPS = 1e-5
LANES = 128    # channel dims padded to multiples of 128 (lane-dense stores)
PAD0 = 8       # sublane-aligned slack rows at either end of the conv scratch

# MXU operand / inter-stage activation dtype.  Flip to jnp.bfloat16 on v6e/v7x
# for ~2-3x MXU throughput and half the z1 HBM round trip (accumulation and BN
# statistics stay f32 either way; f32 default matches PyTorch numerics).
COMPUTE_DTYPE = jnp.float32


def _round_up(x, m):
    return (x + m - 1) // m * m


def _tpu_vmem_bytes():
    try:
        return int(pltpu.get_tpu_info().vmem_capacity_bytes)
    except Exception:
        return 64 * 2**20      # conservative fallback (v7x per-core VMEM)


def _pick_tile_rows(H, W, Cip, Cop, vmem_cap):
    """Largest row tile TH (divisor of H, multiple of 8 when possible) whose
    working set fits comfortably in VMEM; prefers >=2 tiles per image so the
    DMA pipeline and both v7x TensorCores have work."""
    cb = jnp.dtype(COMPUTE_DTYPE).itemsize

    def est(th):
        thw = th * W
        stream = 2 * ((thw + 2 * W) * Cip * 4 + thw * Cop * cb + 2 * Cop * 4)
        weights = 2 * 9 * Cip * Cop * cb
        scratch = (thw + 2 * W + 2 * PAD0) * Cip * 4
        temps = 2 * thw * 3 * Cip * cb + 2 * thw * Cop * 4
        return stream + weights + scratch + temps

    cands = sorted({H} | {d for d in range(8, H, 8) if H % d == 0})
    ok = [th for th in cands if est(th) <= 0.5 * vmem_cap and th * W <= 2048]
    if not ok:
        ok = [cands[0]]
    th = max(ok)
    if th == H and len(ok) > 1:     # favour >=2 row tiles per image
        th = max(t for t in ok if t < H)
    return th


# ----------------------------------------------------------------------------
# conv3x3 (+ optional fused previous-BN affine + ReLU prologue) + partial stats
# ----------------------------------------------------------------------------
def _make_conv_stats_kernel(TH, W, Cip, apply_affine_relu):
    THW = TH * W
    BASE = PAD0 + W        # scratch row of the tile's (h=0, w=0), centre tap

    def kernel(*refs):
        if apply_affine_relu:
            (x_ref, top_ref, bot_ref, aff_ref, w_ref,
             z_ref, sum_ref, sq_ref, xe_ref) = refs
        else:
            (x_ref, top_ref, bot_ref, w_ref,
             z_ref, sum_ref, sq_ref, xe_ref) = refs
            aff_ref = None

        t = pl.program_id(1)
        top_valid = (t > 0).astype(jnp.float32)
        bot_valid = (t < pl.num_programs(1) - 1).astype(jnp.float32)

        def prep(v):
            v = v.astype(jnp.float32)
            if apply_affine_relu:
                # fused previous-stage BN affine + ReLU: the normalized
                # activation never touches HBM
                v = jnp.maximum(v * aff_ref[0:1, :] + aff_ref[1:2, :], 0.0)
            return v

        # Padded scratch: [8 zero | top halo row | TH rows | bottom halo row |
        # 8 zero].  Only the tiny slack pads are zeroed each step (no full
        # zero fill); image-boundary halos are zeroed AFTER the prologue
        # (SAME conv pads the *normalized* activation with zeros).
        zpad = jnp.zeros((PAD0, Cip), jnp.float32)
        xe_ref[pl.ds(0, PAD0), :] = zpad
        xe_ref[pl.ds(PAD0, W), :] = prep(top_ref[0]) * top_valid
        xe_ref[pl.ds(BASE, THW), :] = prep(x_ref[0])
        xe_ref[pl.ds(BASE + THW, W), :] = prep(bot_ref[0]) * bot_valid
        xe_ref[pl.ds(BASE + THW + W, PAD0), :] = zpad

        # In-kernel column-boundary masks (w==0 kills the kw=0 tap, w==W-1 the
        # kw=2 tap) -- a few VPU ops instead of a DMA'd (HW, 2) input.
        col = jax.lax.broadcasted_iota(jnp.int32, (THW, 1), 0) % W
        mask_l = (col >= 1).astype(jnp.float32)
        mask_r = (col <= W - 2).astype(jnp.float32)

        Cop = z_ref.shape[-1]
        acc = jnp.zeros((THW, Cop), jnp.float32)
        # Taps fused along K: one (THW, 3*Cip) operand per kh -> 3 MXU dots
        # with K = 3*Cip instead of 9 dots with K = Cip.
        for kh in range(3):
            row0 = BASE + (kh - 1) * W
            left = xe_ref[pl.ds(row0 - 1, THW), :] * mask_l
            mid = xe_ref[pl.ds(row0, THW), :]
            right = xe_ref[pl.ds(row0 + 1, THW), :] * mask_r
            a_kh = jnp.concatenate([left, mid, right], axis=1)
            acc = acc + jnp.dot(a_kh.astype(COMPUTE_DTYPE), w_ref[kh],
                                preferred_element_type=jnp.float32)

        z_ref[0] = acc.astype(z_ref.dtype)
        # per-tile per-channel partial BN statistics (folded on the host)
        sum_ref[0, 0] = jnp.sum(acc, axis=0, keepdims=True)
        sq_ref[0, 0] = jnp.sum(acc * acc, axis=0, keepdims=True)

    return kernel


def _conv_bn_stage(x_flat, aff, w_fused, H, W, TH, apply_affine_relu,
                   vmem_limit):
    """One conv3x3-SAME stage over a (N, H*W, Cip) activation.

    Returns (z, ch_sum, ch_sq): bias-free conv output (N, H*W, Cop) in
    COMPUTE_DTYPE plus per-channel sum / sum-of-squares over all N*H*W
    positions (for train-mode BN)."""
    N, HW, Cip = x_flat.shape
    Cop = w_fused.shape[-1]
    T = H // TH
    THW = TH * W
    scratch_rows = 2 * PAD0 + THW + 2 * W
    kernel = _make_conv_stats_kernel(TH, W, Cip, apply_affine_relu)

    in_specs = [
        # main tile + previous-row / next-row 1-row halo views of the same
        # array (clamped at the image edges, zeroed in-kernel)
        pl.BlockSpec((1, THW, Cip), lambda n, t: (n, t, 0)),
        pl.BlockSpec((1, W, Cip),
                     lambda n, t: (n, jnp.maximum(t * TH - 1, 0), 0)),
        pl.BlockSpec((1, W, Cip),
                     lambda n, t: (n, jnp.minimum((t + 1) * TH, H - 1), 0)),
    ]
    args = [x_flat, x_flat, x_flat]
    if apply_affine_relu:
        in_specs.append(pl.BlockSpec((2, Cip), lambda n, t: (0, 0)))
        args.append(aff)
    in_specs.append(pl.BlockSpec((3, 3 * Cip, Cop), lambda n, t: (0, 0, 0)))
    args.append(w_fused)

    cb = jnp.dtype(COMPUTE_DTYPE).itemsize
    cost = pl.CostEstimate(
        flops=int(2 * N * HW * 9 * Cip * Cop), transcendentals=0,
        bytes_accessed=int(4 * N * HW * Cip + cb * N * HW * Cop
                           + cb * 9 * Cip * Cop))

    # TODO(synk): add pipeline_mode=pl.Buffered(3) on the main-tile spec if an
    # xprof profile on v7x shows exposed DMA after this re-tiling.
    z, psum, psq = pl.pallas_call(
        kernel,
        grid=(N, T),
        in_specs=in_specs,
        out_specs=(
            pl.BlockSpec((1, THW, Cop), lambda n, t: (n, t, 0)),
            pl.BlockSpec((1, 1, 1, Cop), lambda n, t: (n, t, 0, 0)),
            pl.BlockSpec((1, 1, 1, Cop), lambda n, t: (n, t, 0, 0)),
        ),
        out_shape=(
            jax.ShapeDtypeStruct((N, HW, Cop), COMPUTE_DTYPE),
            jax.ShapeDtypeStruct((N, T, 1, Cop), jnp.float32),
            jax.ShapeDtypeStruct((N, T, 1, Cop), jnp.float32),
        ),
        scratch_shapes=[pltpu.VMEM((scratch_rows, Cip), jnp.float32)],
        compiler_params=pltpu.CompilerParams(
            dimension_semantics=("parallel", "parallel"),
            vmem_limit_bytes=vmem_limit),
        cost_estimate=cost,
    )(*args)

    # tiny host reduction of the per-tile partial statistics
    return z, jnp.sum(psum, axis=(0, 1, 2)), jnp.sum(psq, axis=(0, 1, 2))


# ----------------------------------------------------------------------------
# final folded-BN affine + ReLU (pure elementwise, HBM-bandwidth bound)
# ----------------------------------------------------------------------------
def _affine_relu_kernel(z_ref, aff_ref, o_ref):
    y = z_ref[...].astype(jnp.float32) * aff_ref[0:1, :] + aff_ref[1:2, :]
    o_ref[...] = jnp.maximum(y, 0.0).astype(o_ref.dtype)


def _affine_relu(z2d, aff, vmem_limit):
    NHW, C = z2d.shape
    TR = min(NHW, 1024)      # lane-dense, >=512-row blocks (NHW is mult. of 8)
    return pl.pallas_call(
        _affine_relu_kernel,
        grid=(pl.cdiv(NHW, TR),),
        in_specs=[pl.BlockSpec((TR, C), lambda i: (i, 0)),
                  pl.BlockSpec((2, C), lambda i: (0, 0))],
        out_specs=pl.BlockSpec((TR, C), lambda i: (i, 0)),
        out_shape=jax.ShapeDtypeStruct((NHW, C), jnp.float32),
        compiler_params=pltpu.CompilerParams(
            dimension_semantics=("parallel",),
            vmem_limit_bytes=vmem_limit),
    )(z2d, aff)


# ----------------------------------------------------------------------------
# host-side glue
# ----------------------------------------------------------------------------
def _bn_fold(ch_sum, ch_sq, count, gamma, beta):
    """Fold train-mode BatchNorm into one per-channel FMA: y = z*scale + shift."""
    mean = ch_sum / count
    # TODO(synk): sum/sumsq variance can cancel for large-mean activations;
    # switch to a shifted / Welford-style reduction for production scales.
    var = jnp.maximum(ch_sq / count - mean * mean, 0.0)
    scale = gamma * jax.lax.rsqrt(var + EPS)
    shift = beta - mean * scale
    return jnp.stack([scale, shift], axis=0).astype(jnp.float32)   # (2, C)


def _conv_w_to_fused(w_oihw, Cip, Cop):
    # PyTorch conv weight (O, I, 3, 3) -> (3, 3*Cip, Cop): per kh, the kw taps
    # are stacked along K in the same order the kernel concatenates its
    # shifted operand slices (kw = 0, 1, 2).
    O, I, KH, KW = w_oihw.shape
    w = jnp.transpose(w_oihw, (2, 3, 1, 0))                   # (kh, kw, I, O)
    w = jnp.pad(w, ((0, 0), (0, 0), (0, Cip - I), (0, Cop - O)))
    return w.reshape(KH, KW * Cip, Cop).astype(COMPUTE_DTYPE)


def conv_block_forward(x_nchw, params):
    """Forward pass of conv_block (train-mode BN).  Layout: NCHW in / out."""
    N, Cin, H, W = x_nchw.shape
    Cout = params["conv1_w"].shape[0]
    HW = H * W

    # TODO(synk): widths that are not a multiple of 8 need row padding before
    # the 1-row halo BlockSpecs are legal.
    assert W % 8 == 0, "width must be a multiple of 8"

    Cip = _round_up(Cin, LANES)      # lane-dense channel dims: every store is
    Cop = _round_up(Cout, LANES)     # a full (unmasked) 128-lane vst

    vmem_cap = _tpu_vmem_bytes()
    vmem_limit = int(0.85 * vmem_cap)   # generation-aware (128 MiB v5e/v6e,
                                        # 64 MiB per core on v7x)
    TH = _pick_tile_rows(H, W, max(Cip, Cop), Cop, vmem_cap)

    # NCHW -> NHWC -> (N, H*W, C): channels on the fast lane axis throughout.
    x = jnp.transpose(x_nchw, (0, 2, 3, 1)).reshape(N, HW, Cin)
    x = jnp.pad(x.astype(jnp.float32), ((0, 0), (0, 0), (0, Cip - Cin)))

    w1 = _conv_w_to_fused(params["conv1_w"], Cip, Cop)
    w2 = _conv_w_to_fused(params["conv2_w"], Cop, Cop)
    g1 = jnp.pad(params["bn1_g"], (0, Cop - Cout))
    b1 = jnp.pad(params["bn1_b"], (0, Cop - Cout))
    g2 = jnp.pad(params["bn2_g"], (0, Cop - Cout))
    b2 = jnp.pad(params["bn2_b"], (0, Cop - Cout))

    # stage 1: conv1 + partial BN stats (conv bias dropped: train-mode BN's
    # mean subtraction cancels it exactly)
    z1, s1, q1 = _conv_bn_stage(x, None, w1, H, W, TH,
                                apply_affine_relu=False, vmem_limit=vmem_limit)
    aff1 = _bn_fold(s1, q1, N * HW, g1, b1)

    # stage 2: fused bn1-affine + ReLU prologue -> conv2 + partial BN stats
    z2, s2, q2 = _conv_bn_stage(z1, aff1, w2, H, W, TH,
                                apply_affine_relu=True, vmem_limit=vmem_limit)
    aff2 = _bn_fold(s2, q2, N * HW, g2, b2)

    # final bn2-affine + ReLU epilogue over lane-dense flattened rows
    y = _affine_relu(z2.reshape(N * HW, Cop), aff2, vmem_limit)

    # TODO(synk): skip this transpose (an extra HBM round trip) if the
    # consumer accepts NHWC.
    y = y.reshape(N, H, W, Cop)[..., :Cout]
    return jnp.transpose(y, (0, 3, 1, 2))


# ----------------------------------------------------------------------------
# params / reference / test
# ----------------------------------------------------------------------------
def init_params(key, in_c, out_c):
    k1, k2, k3, k4 = jax.random.split(key, 4)
    fan1, fan2 = in_c * 9, out_c * 9
    b1, b2 = 1.0 / jnp.sqrt(fan1), 1.0 / jnp.sqrt(fan2)
    return {
        "conv1_w": jax.random.uniform(k1, (out_c, in_c, 3, 3), jnp.float32, -b1, b1),
        "conv1_b": jax.random.uniform(k2, (out_c,), jnp.float32, -b1, b1),
        "bn1_g": jnp.ones((out_c,), jnp.float32),
        "bn1_b": jnp.zeros((out_c,), jnp.float32),
        "conv2_w": jax.random.uniform(k3, (out_c, out_c, 3, 3), jnp.float32, -b2, b2),
        "conv2_b": jax.random.uniform(k4, (out_c,), jnp.float32, -b2, b2),
        "bn2_g": jnp.ones((out_c,), jnp.float32),
        "bn2_b": jnp.zeros((out_c,), jnp.float32),
    }


def _reference_forward(x, params):
    # Pure-JAX reference (lax.conv + batch-stat BN + relu), NCHW.
    def conv(x, w, b):
        y = jax.lax.conv_general_dilated(
            x, w, window_strides=(1, 1), padding="SAME",
            dimension_numbers=("NCHW", "OIHW", "NCHW"))
        return y + b[None, :, None, None]

    def bn_relu(x, g, b):
        m = jnp.mean(x, axis=(0, 2, 3), keepdims=True)
        v = jnp.mean((x - m) ** 2, axis=(0, 2, 3), keepdims=True)
        y = (x - m) * jax.lax.rsqrt(v + EPS)
        y = y * g[None, :, None, None] + b[None, :, None, None]
        return jnp.maximum(y, 0.0)

    x = bn_relu(conv(x, params["conv1_w"], params["conv1_b"]),
                params["bn1_g"], params["bn1_b"])
    x = bn_relu(conv(x, params["conv2_w"], params["conv2_b"]),
                params["bn2_g"], params["bn2_b"])
    return x


if __name__ == "__main__":
    key = jax.random.PRNGKey(0)
    kx, kp = jax.random.split(key)

    N, in_c, out_c, H, W = 2, 4, 8, 16, 16
    x = jax.random.normal(kx, (N, in_c, H, W), jnp.float32)
    params = init_params(kp, in_c, out_c)

    out = jax.block_until_ready(jax.jit(conv_block_forward)(x, params))

    ref = _reference_forward(x, params)
    assert out.shape == (N, out_c, H, W)
    tol = 1e-3 if COMPUTE_DTYPE == jnp.float32 else 3e-2
    assert jnp.allclose(out, ref, atol=tol, rtol=tol), "mismatch vs reference"

    print("KERNEL_OK")
</pallas_src>

<mosaic_0001>
module attributes {stable_mosaic.version = 11 : i64} {
  func.func @kernel(%arg0: i32, %arg1: i32, %arg2: memref<1x128x128xf32, #tpu.memory_space<vmem>>, %arg3: memref<1x16x128xf32, #tpu.memory_space<vmem>>, %arg4: memref<1x16x128xf32, #tpu.memory_space<vmem>>, %arg5: memref<3x384x128xf32, #tpu.memory_space<vmem>>, %arg6: memref<1x128x128xf32, #tpu.memory_space<vmem>>, %arg7: memref<1x1x1x128xf32, #tpu.memory_space<vmem>>, %arg8: memref<1x1x1x128xf32, #tpu.memory_space<vmem>>, %arg9: memref<176x128xf32, #tpu.memory_space<vmem>>) attributes {dimension_semantics = [#tpu.dimension_semantics<parallel>, #tpu.dimension_semantics<parallel>], iteration_bounds = array<i64: 2, 2>, scalar_prefetch = 0 : i64, scratch_operands = 1 : i64, tpu.core_type = #tpu.core_type<tc>, window_params = [{transform_indices = @transform_0, window_bounds = array<i64: 1, 128, 128>}, {transform_indices = @transform_1, window_bounds = array<i64: 1, 16, 128>}, {transform_indices = @transform_2, window_bounds = array<i64: 1, 16, 128>}, {pipeline_mode = #tpu.pipeline_mode<synchronous>, transform_indices = @transform_3, window_bounds = array<i64: 3, 384, 128>}, {transform_indices = @transform_4, window_bounds = array<i64: 1, 128, 128>}, {transform_indices = @transform_5, window_bounds = array<i64: 1, 1, 1, 128>}, {transform_indices = @transform_6, window_bounds = array<i64: 1, 1, 1, 128>}]} {
    %c0_i32 = arith.constant 0 : i32
    %0 = arith.cmpi sgt, %arg1, %c0_i32 : i32
    %1 = arith.extui %0 : i1 to i32
    %2 = arith.sitofp %1 : i32 to f32
    %c1_i32 = arith.constant 1 : i32
    %3 = arith.cmpi slt, %arg1, %c1_i32 : i32
    %4 = arith.extui %3 : i1 to i32
    %5 = arith.sitofp %4 : i32 to f32
    %cst = arith.constant 0.000000e+00 : f32
    %6 = vector.broadcast %cst : f32 to vector<8x128xf32>
    %c0 = arith.constant 0 : index
    %c0_0 = arith.constant 0 : index
    %7 = vector.load %arg9[%c0, %c0_0] : memref<176x128xf32, #tpu.memory_space<vmem>>, vector<8x128xf32>
    tpu.vector_store %arg9[%c0, %c0_0], %6 {strides = array<i32>} : memref<176x128xf32, #tpu.memory_space<vmem>>, vector<8x128xf32>,
    %c0_1 = arith.constant 0 : index
    %c0_2 = arith.constant 0 : index
    %c0_3 = arith.constant 0 : index
    %8 = vector.load %arg3[%c0_1, %c0_2, %c0_3] : memref<1x16x128xf32, #tpu.memory_space<vmem>>, vector<1x16x128xf32>
    %9 = vector.shape_cast %8 : vector<1x16x128xf32> to vector<16x128xf32>
    %10 = vector.broadcast %2 : f32 to vector<16x128xf32>
    %11 = arith.mulf %9, %10 : vector<16x128xf32>
    %c8 = arith.constant 8 : index
    %c0_4 = arith.constant 0 : index
    %12 = vector.load %arg9[%c8, %c0_4] : memref<176x128xf32, #tpu.memory_space<vmem>>, vector<16x128xf32>
    tpu.vector_store %arg9[%c8, %c0_4], %11 {strides = array<i32>} : memref<176x128xf32, #tpu.memory_space<vmem>>, vector<16x128xf32>,
    %c0_5 = arith.constant 0 : index
    %c0_6 = arith.constant 0 : index
    %c0_7 = arith.constant 0 : index
    %13 = vector.load %arg2[%c0_5, %c0_6, %c0_7] : memref<1x128x128xf32, #tpu.memory_space<vmem>>, vector<1x128x128xf32>
    %14 = vector.shape_cast %13 : vector<1x128x128xf32> to vector<128x128xf32>
    %c24 = arith.constant 24 : index
    %c0_8 = arith.constant 0 : index
    %15 = vector.load %arg9[%c24, %c0_8] : memref<176x128xf32, #tpu.memory_space<vmem>>, vector<128x128xf32>
    tpu.vector_store %arg9[%c24, %c0_8], %14 {strides = array<i32>} : memref<176x128xf32, #tpu.memory_space<vmem>>, vector<128x128xf32>,
    %c0_9 = arith.constant 0 : index
    %c0_10 = arith.constant 0 : index
    %c0_11 = arith.constant 0 : index
    %16 = vector.load %arg4[%c0_9, %c0_10, %c0_11] : memref<1x16x128xf32, #tpu.memory_space<vmem>>, vector<1x16x128xf32>
    %17 = vector.shape_cast %16 : vector<1x16x128xf32> to vector<16x128xf32>
    %18 = vector.broadcast %5 : f32 to vector<16x128xf32>
    %19 = arith.mulf %17, %18 : vector<16x128xf32>
    %c152 = arith.constant 152 : index
    %c0_12 = arith.constant 0 : index
    %20 = vector.load %arg9[%c152, %c0_12] : memref<176x128xf32, #tpu.memory_space<vmem>>, vector<16x128xf32>
    tpu.vector_store %arg9[%c152, %c0_12], %19 {strides = array<i32>} : memref<176x128xf32, #tpu.memory_space<vmem>>, vector<16x128xf32>,
    %c168 = arith.constant 168 : index
    %c0_13 = arith.constant 0 : index
    %21 = vector.load %arg9[%c168, %c0_13] : memref<176x128xf32, #tpu.memory_space<vmem>>, vector<8x128xf32>
    tpu.vector_store %arg9[%c168, %c0_13], %6 {strides = array<i32>} : memref<176x128xf32, #tpu.memory_space<vmem>>, vector<8x128xf32>,
    %22 = tpu.iota {dimensions = array<i32: 0>} : vector<128x1xi32>
    %c16_i32 = arith.constant 16 : i32
    %c0_i32_14 = arith.constant 0 : i32
    %23 = arith.cmpi eq, %c16_i32, %c0_i32_14 : i32
    %c1_i32_15 = arith.constant 1 : i32
    %24 = arith.select %23, %c1_i32_15, %c16_i32 : i32
    %25 = vector.broadcast %24 : i32 to vector<128x1xi32>
    %26 = arith.remsi %22, %25 : vector<128x1xi32>
    %c0_i32_16 = arith.constant 0 : i32
    %27 = vector.broadcast %c0_i32_16 : i32 to vector<128x1xi32>
    %28 = arith.cmpi ne, %26, %27 : vector<128x1xi32>
    %c0_i32_17 = arith.constant 0 : i32
    %29 = vector.broadcast %c0_i32_17 : i32 to vector<128x1xi32>
    %30 = arith.cmpi slt, %26, %29 : vector<128x1xi32>
    %c0_i32_18 = arith.constant 0 : i32
    %31 = arith.cmpi slt, %24, %c0_i32_18 : i32
    %32 = vector.broadcast %31 : i1 to vector<128x1xi1>
    %33 = vector.broadcast %32 : vector<128x1xi1> to vector<128x1xi1>
    %34 = arith.xori %30, %33 : vector<128x1xi1>
    %35 = arith.andi %34, %28 : vector<128x1xi1>
    %36 = vector.broadcast %24 : i32 to vector<128x1xi32>
    %37 = arith.addi %26, %36 : vector<128x1xi32>
    %38 = arith.select %35, %37, %26 : vector<128x1xi1>, vector<128x1xi32>
    %c1_i32_19 = arith.constant 1 : i32
    %39 = vector.broadcast %c1_i32_19 : i32 to vector<128x1xi32>
    %40 = arith.cmpi sge, %38, %39 : vector<128x1xi32>
    %41 = arith.extui %40 : vector<128x1xi1> to vector<128x1xi32>
    %42 = arith.sitofp %41 : vector<128x1xi32> to vector<128x1xf32>
    %c14_i32 = arith.constant 14 : i32
    %43 = vector.broadcast %c14_i32 : i32 to vector<128x1xi32>
    %44 = arith.cmpi sle, %38, %43 : vector<128x1xi32>
    %45 = arith.extui %44 : vector<128x1xi1> to vector<128x1xi32>
    %46 = arith.sitofp %45 : vector<128x1xi32> to vector<128x1xf32>
    %cst_20 = arith.constant 0.000000e+00 : f32
    %47 = vector.broadcast %cst_20 : f32 to vector<128x128xf32>
    %c7 = arith.constant 7 : index
    %c0_21 = arith.constant 0 : index
    %48 = vector.load %arg9[%c7, %c0_21] : memref<176x128xf32, #tpu.memory_space<vmem>>, vector<128x128xf32>
    %49 = vector.broadcast %42 : vector<128x1xf32> to vector<128x128xf32>
    %50 = arith.mulf %48, %49 : vector<128x128xf32>
    %c8_22 = arith.constant 8 : index
    %c0_23 = arith.constant 0 : index
    %51 = vector.load %arg9[%c8_22, %c0_23] : memref<176x128xf32, #tpu.memory_space<vmem>>, vector<128x128xf32>
    %c9 = arith.constant 9 : index
    %c0_24 = arith.constant 0 : index
    %52 = vector.load %arg9[%c9, %c0_24] : memref<176x128xf32, #tpu.memory_space<vmem>>, vector<128x128xf32>
    %53 = vector.broadcast %46 : vector<128x1xf32> to vector<128x128xf32>
    %54 = arith.mulf %52, %53 : vector<128x128xf32>
    %55 = tpu.concatenate %50, %51, %54 in 1 : vector<128x128xf32>, vector<128x128xf32>, vector<128x128xf32> -> vector<128x384xf32>
    %c0_25 = arith.constant 0 : index
    %c0_26 = arith.constant 0 : index
    %c0_27 = arith.constant 0 : index
    %56 = vector.load %arg5[%c0_25, %c0_26, %c0_27] : memref<3x384x128xf32, #tpu.memory_space<vmem>>, vector<1x384x128xf32>
    %57 = vector.shape_cast %56 : vector<1x384x128xf32> to vector<384x128xf32>
    %cst_28 = arith.constant dense<0.000000e+00> : vector<128x128xf32>
    %58 = tpu.matmul %55, %57, %cst_28 {dimension_numbers = #tpu.dot_dimension_numbers<[1], [0], [0], [1], [0, 0, 1, 1], [], []>} : vector<128x384xf32>, vector<384x128xf32>, vector<128x128xf32> -> vector<128x128xf32>
    %59 = arith.addf %47, %58 : vector<128x128xf32>
    %c23 = arith.constant 23 : index
    %c0_29 = arith.constant 0 : index
    %60 = vector.load %arg9[%c23, %c0_29] : memref<176x128xf32, #tpu.memory_space<vmem>>, vector<128x128xf32>
    %61 = vector.broadcast %42 : vector<128x1xf32> to vector<128x128xf32>
    %62 = arith.mulf %60, %61 : vector<128x128xf32>
    %c24_30 = arith.constant 24 : index
    %c0_31 = arith.constant 0 : index
    %63 = vector.load %arg9[%c24_30, %c0_31] : memref<176x128xf32, #tpu.memory_space<vmem>>, vector<128x128xf32>
    %c25 = arith.constant 25 : index
    %c0_32 = arith.constant 0 : index
    %64 = vector.load %arg9[%c25, %c0_32] : memref<176x128xf32, #tpu.memory_space<vmem>>, vector<128x128xf32>
    %65 = vector.broadcast %46 : vector<128x1xf32> to vector<128x128xf32>
    %66 = arith.mulf %64, %65 : vector<128x128xf32>
    %67 = tpu.concatenate %62, %63, %66 in 1 : vector<128x128xf32>, vector<128x128xf32>, vector<128x128xf32> -> vector<128x384xf32>
    %c1 = arith.constant 1 : index
    %c0_33 = arith.constant 0 : index
    %c0_34 = arith.constant 0 : index
    %68 = vector.load %arg5[%c1, %c0_33, %c0_34] : memref<3x384x128xf32, #tpu.memory_space<vmem>>, vector<1x384x128xf32>
    %69 = vector.shape_cast %68 : vector<1x384x128xf32> to vector<384x128xf32>
    %cst_35 = arith.constant dense<0.000000e+00> : vector<128x128xf32>
    %70 = tpu.matmul %67, %69, %cst_35 {dimension_numbers = #tpu.dot_dimension_numbers<[1], [0], [0], [1], [0, 0, 1, 1], [], []>} : vector<128x384xf32>, vector<384x128xf32>, vector<128x128xf32> -> vector<128x128xf32>
    %71 = arith.addf %59, %70 : vector<128x128xf32>
    %c39 = arith.constant 39 : index
    %c0_36 = arith.constant 0 : index
    %72 = vector.load %arg9[%c39, %c0_36] : memref<176x128xf32, #tpu.memory_space<vmem>>, vector<128x128xf32>
    %73 = vector.broadcast %42 : vector<128x1xf32> to vector<128x128xf32>
    %74 = arith.mulf %72, %73 : vector<128x128xf32>
    %c40 = arith.constant 40 : index
    %c0_37 = arith.constant 0 : index
    %75 = vector.load %arg9[%c40, %c0_37] : memref<176x128xf32, #tpu.memory_space<vmem>>, vector<128x128xf32>
    %c41 = arith.constant 41 : index
    %c0_38 = arith.constant 0 : index
    %76 = vector.load %arg9[%c41, %c0_38] : memref<176x128xf32, #tpu.memory_space<vmem>>, vector<128x128xf32>
    %77 = vector.broadcast %46 : vector<128x1xf32> to vector<128x128xf32>
    %78 = arith.mulf %76, %77 : vector<128x128xf32>
    %79 = tpu.concatenate %74, %75, %78 in 1 : vector<128x128xf32>, vector<128x128xf32>, vector<128x128xf32> -> vector<128x384xf32>
    %c2 = arith.constant 2 : index
    %c0_39 = arith.constant 0 : index
    %c0_40 = arith.constant 0 : index
    %80 = vector.load %arg5[%c2, %c0_39, %c0_40] : memref<3x384x128xf32, #tpu.memory_space<vmem>>, vector<1x384x128xf32>
    %81 = vector.shape_cast %80 : vector<1x384x128xf32> to vector<384x128xf32>
    %cst_41 = arith.constant dense<0.000000e+00> : vector<128x128xf32>
    %82 = tpu.matmul %79, %81, %cst_41 {dimension_numbers = #tpu.dot_dimension_numbers<[1], [0], [0], [1], [0, 0, 1, 1], [], []>} : vector<128x384xf32>, vector<384x128xf32>, vector<128x128xf32> -> vector<128x128xf32>
    %83 = arith.addf %71, %82 : vector<128x128xf32>
    %c0_42 = arith.constant 0 : index
    %c0_43 = arith.constant 0 : index
    %c0_44 = arith.constant 0 : index
    %84 = vector.load %arg6[%c0_42, %c0_43, %c0_44] : memref<1x128x128xf32, #tpu.memory_space<vmem>>, vector<1x128x128xf32>
    %85 = vector.shape_cast %84 : vector<1x128x128xf32> to vector<128x128xf32>
    %86 = vector.shape_cast %83 : vector<128x128xf32> to vector<1x128x128xf32>
    tpu.vector_store %arg6[%c0_42, %c0_43, %c0_44], %86 {strides = array<i32>} : memref<1x128x128xf32, #tpu.memory_space<vmem>>, vector<1x128x128xf32>,
    %cst_45 = arith.constant dense<0.000000e+00> : vector<128xf32>
    %87 = vector.multi_reduction <add>, %83, %cst_45 [0] : vector<128x128xf32> to vector<128xf32>
    %88 = vector.shape_cast %87 : vector<128xf32> to vector<1x128xf32>
    %c0_46 = arith.constant 0 : index
    %c0_47 = arith.constant 0 : index
    %c0_48 = arith.constant 0 : index
    %c0_49 = arith.constant 0 : index
    %89 = vector.load %arg7[%c0_46, %c0_47, %c0_48, %c0_49] : memref<1x1x1x128xf32, #tpu.memory_space<vmem>>, vector<1x1x1x128xf32>
    %90 = vector.shape_cast %89 : vector<1x1x1x128xf32> to vector<1x128xf32>
    %91 = vector.shape_cast %88 : vector<1x128xf32> to vector<1x1x1x128xf32>
    tpu.vector_store %arg7[%c0_46, %c0_47, %c0_48, %c0_49], %91 {strides = array<i32>} : memref<1x1x1x128xf32, #tpu.memory_space<vmem>>, vector<1x1x1x128xf32>,
    %92 = arith.mulf %83, %83 : vector<128x128xf32>
    %cst_50 = arith.constant dense<0.000000e+00> : vector<128xf32>
    %93 = vector.multi_reduction <add>, %92, %cst_50 [0] : vector<128x128xf32> to vector<128xf32>
    %94 = vector.shape_cast %93 : vector<128xf32> to vector<1x128xf32>
    %c0_51 = arith.constant 0 : index
    %c0_52 = arith.constant 0 : index
    %c0_53 = arith.constant 0 : index
    %c0_54 = arith.constant 0 : index
    %95 = vector.load %arg8[%c0_51, %c0_52, %c0_53, %c0_54] : memref<1x1x1x128xf32, #tpu.memory_space<vmem>>, vector<1x1x1x128xf32>
    %96 = vector.shape_cast %95 : vector<1x1x1x128xf32> to vector<1x128xf32>
    %97 = vector.shape_cast %94 : vector<1x128xf32> to vector<1x1x1x128xf32>
    tpu.vector_store %arg8[%c0_51, %c0_52, %c0_53, %c0_54], %97 {strides = array<i32>} : memref<1x1x1x128xf32, #tpu.memory_space<vmem>>, vector<1x1x1x128xf32>,
    return
  }
  func.func @transform_0(%arg0: i32, %arg1: i32) -> (i32, i32, i32) {
    %c0_i32 = arith.constant 0 : i32
    %c0_i32_0 = arith.constant 0 : i32
    return %arg0, %arg1, %c0_i32 : i32, i32, i32
  }
  func.func @transform_1(%arg0: i32, %arg1: i32) -> (i32, i32, i32) {
    %c8_i32 = arith.constant 8 : i32
    %0 = arith.muli %arg1, %c8_i32 : i32
    %c1_i32 = arith.constant 1 : i32
    %1 = arith.subi %0, %c1_i32 : i32
    %c0_i32 = arith.constant 0 : i32
    %2 = arith.maxsi %1, %c0_i32 : i32
    %c0_i32_0 = arith.constant 0 : i32
    %c0_i32_1 = arith.constant 0 : i32
    return %arg0, %2, %c0_i32_0 : i32, i32, i32
  }
  func.func @transform_2(%arg0: i32, %arg1: i32) -> (i32, i32, i32) {
    %c1_i32 = arith.constant 1 : i32
    %0 = arith.addi %arg1, %c1_i32 : i32
    %c8_i32 = arith.constant 8 : i32
    %1 = arith.muli %0, %c8_i32 : i32
    %c15_i32 = arith.constant 15 : i32
    %2 = arith.minsi %1, %c15_i32 : i32
    %c0_i32 = arith.constant 0 : i32
    %c0_i32_0 = arith.constant 0 : i32
    return %arg0, %2, %c0_i32 : i32, i32, i32
  }
  func.func @transform_3(%arg0: i32, %arg1: i32) -> (i32, i32, i32) {
    %c0_i32 = arith.constant 0 : i32
    %c0_i32_0 = arith.constant 0 : i32
    %c0_i32_1 = arith.constant 0 : i32
    %c0_i32_2 = arith.constant 0 : i32
    return %c0_i32, %c0_i32_0, %c0_i32_1 : i32, i32, i32
  }
  func.func @transform_4(%arg0: i32, %arg1: i32) -> (i32, i32, i32) {
    %c0_i32 = arith.constant 0 : i32
    %c0_i32_0 = arith.constant 0 : i32
    return %arg0, %arg1, %c0_i32 : i32, i32, i32
  }
  func.func @transform_5(%arg0: i32, %arg1: i32) -> (i32, i32, i32, i32) {
    %c0_i32 = arith.constant 0 : i32
    %c0_i32_0 = arith.constant 0 : i32
    %c0_i32_1 = arith.constant 0 : i32
    return %arg0, %arg1, %c0_i32, %c0_i32_0 : i32, i32, i32, i32
  }
  func.func @transform_6(%arg0: i32, %arg1: i32) -> (i32, i32, i32, i32) {
    %c0_i32 = arith.constant 0 : i32
    %c0_i32_0 = arith.constant 0 : i32
    %c0_i32_1 = arith.constant 0 : i32
    return %arg0, %arg1, %c0_i32, %c0_i32_0 : i32, i32, i32, i32
  }
}

module attributes {stable_mosaic.version = 11 : i64} {
  func.func @_affine_relu_kernel(%arg0: i32, %arg1: memref<512x128xf32, #tpu.memory_space<vmem>>, %arg2: memref<2x128xf32, #tpu.memory_space<vmem>>, %arg3: memref<512x128xf32, #tpu.memory_space<vmem>>) attributes {dimension_semantics = [#tpu.dimension_semantics<parallel>], iteration_bounds = array<i64: 1>, scalar_prefetch = 0 : i64, scratch_operands = 0 : i64, tpu.core_type = #tpu.core_type<tc>, window_params = [{transform_indices = @transform_0, window_bounds = array<i64: 512, 128>}, {pipeline_mode = #tpu.pipeline_mode<synchronous>, transform_indices = @transform_1, window_bounds = array<i64: 2, 128>}, {transform_indices = @transform_2, window_bounds = array<i64: 512, 128>}]} {
    %c0 = arith.constant 0 : index
    %c0_0 = arith.constant 0 : index
    %0 = vector.load %arg1[%c0, %c0_0] : memref<512x128xf32, #tpu.memory_space<vmem>>, vector<512x128xf32>
    %c0_1 = arith.constant 0 : index
    %c0_2 = arith.constant 0 : index
    %1 = vector.load %arg2[%c0_1, %c0_2] : memref<2x128xf32, #tpu.memory_space<vmem>>, vector<1x128xf32>
    %2 = vector.broadcast %1 : vector<1x128xf32> to vector<512x128xf32>
    %3 = arith.mulf %0, %2 : vector<512x128xf32>
    %c1 = arith.constant 1 : index
    %c0_3 = arith.constant 0 : index
    %4 = vector.load %arg2[%c1, %c0_3] : memref<2x128xf32, #tpu.memory_space<vmem>>, vector<1x128xf32>
    %5 = vector.broadcast %4 : vector<1x128xf32> to vector<512x128xf32>
    %6 = arith.addf %3, %5 : vector<512x128xf32>
    %cst = arith.constant 0.000000e+00 : f32
    %7 = vector.broadcast %cst : f32 to vector<512x128xf32>
    %8 = arith.maximumf %6, %7 : vector<512x128xf32>
    %c0_4 = arith.constant 0 : index
    %c0_5 = arith.constant 0 : index
    %9 = vector.load %arg3[%c0_4, %c0_5] : memref<512x128xf32, #tpu.memory_space<vmem>>, vector<512x128xf32>
    tpu.vector_store %arg3[%c0_4, %c0_5], %8 {strides = array<i32>} : memref<512x128xf32, #tpu.memory_space<vmem>>, vector<512x128xf32>,
    return
  }
  func.func @transform_0(%arg0: i32) -> (i32, i32) {
    %c0_i32 = arith.constant 0 : i32
    %c0_i32_0 = arith.constant 0 : i32
    return %arg0, %c0_i32 : i32, i32
  }
  func.func @transform_1(%arg0: i32) -> (i32, i32) {
    %c0_i32 = arith.constant 0 : i32
    %c0_i32_0 = arith.constant 0 : i32
    %c0_i32_1 = arith.constant 0 : i32
    return %c0_i32, %c0_i32_0 : i32, i32
  }
  func.func @transform_2(%arg0: i32) -> (i32, i32) {
    %c0_i32 = arith.constant 0 : i32
    %c0_i32_0 = arith.constant 0 : i32
    return %arg0, %c0_i32 : i32, i32
  }
}

module attributes {stable_mosaic.version = 11 : i64} {
  func.func @kernel(%arg0: i32, %arg1: i32, %arg2: memref<1x128x128xf32, #tpu.memory_space<vmem>>, %arg3: memref<1x16x128xf32, #tpu.memory_space<vmem>>, %arg4: memref<1x16x128xf32, #tpu.memory_space<vmem>>, %arg5: memref<2x128xf32, #tpu.memory_space<vmem>>, %arg6: memref<3x384x128xf32, #tpu.memory_space<vmem>>, %arg7: memref<1x128x128xf32, #tpu.memory_space<vmem>>, %arg8: memref<1x1x1x128xf32, #tpu.memory_space<vmem>>, %arg9: memref<1x1x1x128xf32, #tpu.memory_space<vmem>>, %arg10: memref<176x128xf32, #tpu.memory_space<vmem>>) attributes {dimension_semantics = [#tpu.dimension_semantics<parallel>, #tpu.dimension_semantics<parallel>], iteration_bounds = array<i64: 2, 2>, scalar_prefetch = 0 : i64, scratch_operands = 1 : i64, tpu.core_type = #tpu.core_type<tc>, window_params = [{transform_indices = @transform_0, window_bounds = array<i64: 1, 128, 128>}, {transform_indices = @transform_1, window_bounds = array<i64: 1, 16, 128>}, {transform_indices = @transform_2, window_bounds = array<i64: 1, 16, 128>}, {pipeline_mode = #tpu.pipeline_mode<synchronous>, transform_indices = @transform_3, window_bounds = array<i64: 2, 128>}, {pipeline_mode = #tpu.pipeline_mode<synchronous>, transform_indices = @transform_4, window_bounds = array<i64: 3, 384, 128>}, {transform_indices = @transform_5, window_bounds = array<i64: 1, 128, 128>}, {transform_indices = @transform_6, window_bounds = array<i64: 1, 1, 1, 128>}, {transform_indices = @transform_7, window_bounds = array<i64: 1, 1, 1, 128>}]} {
    %c0_i32 = arith.constant 0 : i32
    %0 = arith.cmpi sgt, %arg1, %c0_i32 : i32
    %1 = arith.extui %0 : i1 to i32
    %2 = arith.sitofp %1 : i32 to f32
    %c1_i32 = arith.constant 1 : i32
    %3 = arith.cmpi slt, %arg1, %c1_i32 : i32
    %4 = arith.extui %3 : i1 to i32
    %5 = arith.sitofp %4 : i32 to f32
    %cst = arith.constant 0.000000e+00 : f32
    %6 = vector.broadcast %cst : f32 to vector<8x128xf32>
    %c0 = arith.constant 0 : index
    %c0_0 = arith.constant 0 : index
    %7 = vector.load %arg10[%c0, %c0_0] : memref<176x128xf32, #tpu.memory_space<vmem>>, vector<8x128xf32>
    tpu.vector_store %arg10[%c0, %c0_0], %6 {strides = array<i32>} : memref<176x128xf32, #tpu.memory_space<vmem>>, vector<8x128xf32>,
    %c0_1 = arith.constant 0 : index
    %c0_2 = arith.constant 0 : index
    %c0_3 = arith.constant 0 : index
    %8 = vector.load %arg3[%c0_1, %c0_2, %c0_3] : memref<1x16x128xf32, #tpu.memory_space<vmem>>, vector<1x16x128xf32>
    %9 = vector.shape_cast %8 : vector<1x16x128xf32> to vector<16x128xf32>
    %c0_4 = arith.constant 0 : index
    %c0_5 = arith.constant 0 : index
    %10 = vector.load %arg5[%c0_4, %c0_5] : memref<2x128xf32, #tpu.memory_space<vmem>>, vector<1x128xf32>
    %11 = vector.broadcast %10 : vector<1x128xf32> to vector<16x128xf32>
    %12 = arith.mulf %9, %11 : vector<16x128xf32>
    %c1 = arith.constant 1 : index
    %c0_6 = arith.constant 0 : index
    %13 = vector.load %arg5[%c1, %c0_6] : memref<2x128xf32, #tpu.memory_space<vmem>>, vector<1x128xf32>
    %14 = vector.broadcast %13 : vector<1x128xf32> to vector<16x128xf32>
    %15 = arith.addf %12, %14 : vector<16x128xf32>
    %cst_7 = arith.constant 0.000000e+00 : f32
    %16 = vector.broadcast %cst_7 : f32 to vector<16x128xf32>
    %17 = arith.maximumf %15, %16 : vector<16x128xf32>
    %18 = vector.broadcast %2 : f32 to vector<16x128xf32>
    %19 = arith.mulf %17, %18 : vector<16x128xf32>
    %c8 = arith.constant 8 : index
    %c0_8 = arith.constant 0 : index
    %20 = vector.load %arg10[%c8, %c0_8] : memref<176x128xf32, #tpu.memory_space<vmem>>, vector<16x128xf32>
    tpu.vector_store %arg10[%c8, %c0_8], %19 {strides = array<i32>} : memref<176x128xf32, #tpu.memory_space<vmem>>, vector<16x128xf32>,
    %c0_9 = arith.constant 0 : index
    %c0_10 = arith.constant 0 : index
    %c0_11 = arith.constant 0 : index
    %21 = vector.load %arg2[%c0_9, %c0_10, %c0_11] : memref<1x128x128xf32, #tpu.memory_space<vmem>>, vector<1x128x128xf32>
    %22 = vector.shape_cast %21 : vector<1x128x128xf32> to vector<128x128xf32>
    %c0_12 = arith.constant 0 : index
    %c0_13 = arith.constant 0 : index
    %23 = vector.load %arg5[%c0_12, %c0_13] : memref<2x128xf32, #tpu.memory_space<vmem>>, vector<1x128xf32>
    %24 = vector.broadcast %23 : vector<1x128xf32> to vector<128x128xf32>
    %25 = arith.mulf %22, %24 : vector<128x128xf32>
    %c1_14 = arith.constant 1 : index
    %c0_15 = arith.constant 0 : index
    %26 = vector.load %arg5[%c1_14, %c0_15] : memref<2x128xf32, #tpu.memory_space<vmem>>, vector<1x128xf32>
    %27 = vector.broadcast %26 : vector<1x128xf32> to vector<128x128xf32>
    %28 = arith.addf %25, %27 : vector<128x128xf32>
    %cst_16 = arith.constant 0.000000e+00 : f32
    %29 = vector.broadcast %cst_16 : f32 to vector<128x128xf32>
    %30 = arith.maximumf %28, %29 : vector<128x128xf32>
    %c24 = arith.constant 24 : index
    %c0_17 = arith.constant 0 : index
    %31 = vector.load %arg10[%c24, %c0_17] : memref<176x128xf32, #tpu.memory_space<vmem>>, vector<128x128xf32>
    tpu.vector_store %arg10[%c24, %c0_17], %30 {strides = array<i32>} : memref<176x128xf32, #tpu.memory_space<vmem>>, vector<128x128xf32>,
    %c0_18 = arith.constant 0 : index
    %c0_19 = arith.constant 0 : index
    %c0_20 = arith.constant 0 : index
    %32 = vector.load %arg4[%c0_18, %c0_19, %c0_20] : memref<1x16x128xf32, #tpu.memory_space<vmem>>, vector<1x16x128xf32>
    %33 = vector.shape_cast %32 : vector<1x16x128xf32> to vector<16x128xf32>
    %c0_21 = arith.constant 0 : index
    %c0_22 = arith.constant 0 : index
    %34 = vector.load %arg5[%c0_21, %c0_22] : memref<2x128xf32, #tpu.memory_space<vmem>>, vector<1x128xf32>
    %35 = vector.broadcast %34 : vector<1x128xf32> to vector<16x128xf32>
    %36 = arith.mulf %33, %35 : vector<16x128xf32>
    %c1_23 = arith.constant 1 : index
    %c0_24 = arith.constant 0 : index
    %37 = vector.load %arg5[%c1_23, %c0_24] : memref<2x128xf32, #tpu.memory_space<vmem>>, vector<1x128xf32>
    %38 = vector.broadcast %37 : vector<1x128xf32> to vector<16x128xf32>
    %39 = arith.addf %36, %38 : vector<16x128xf32>
    %cst_25 = arith.constant 0.000000e+00 : f32
    %40 = vector.broadcast %cst_25 : f32 to vector<16x128xf32>
    %41 = arith.maximumf %39, %40 : vector<16x128xf32>
    %42 = vector.broadcast %5 : f32 to vector<16x128xf32>
    %43 = arith.mulf %41, %42 : vector<16x128xf32>
    %c152 = arith.constant 152 : index
    %c0_26 = arith.constant 0 : index
    %44 = vector.load %arg10[%c152, %c0_26] : memref<176x128xf32, #tpu.memory_space<vmem>>, vector<16x128xf32>
    tpu.vector_store %arg10[%c152, %c0_26], %43 {strides = array<i32>} : memref<176x128xf32, #tpu.memory_space<vmem>>, vector<16x128xf32>,
    %c168 = arith.constant 168 : index
    %c0_27 = arith.constant 0 : index
    %45 = vector.load %arg10[%c168, %c0_27] : memref<176x128xf32, #tpu.memory_space<vmem>>, vector<8x128xf32>
    tpu.vector_store %arg10[%c168, %c0_27], %6 {strides = array<i32>} : memref<176x128xf32, #tpu.memory_space<vmem>>, vector<8x128xf32>,
    %46 = tpu.iota {dimensions = array<i32: 0>} : vector<128x1xi32>
    %c16_i32 = arith.constant 16 : i32
    %c0_i32_28 = arith.constant 0 : i32
    %47 = arith.cmpi eq, %c16_i32, %c0_i32_28 : i32
    %c1_i32_29 = arith.constant 1 : i32
    %48 = arith.select %47, %c1_i32_29, %c16_i32 : i32
    %49 = vector.broadcast %48 : i32 to vector<128x1xi32>
    %50 = arith.remsi %46, %49 : vector<128x1xi32>
    %c0_i32_30 = arith.constant 0 : i32
    %51 = vector.broadcast %c0_i32_30 : i32 to vector<128x1xi32>
    %52 = arith.cmpi ne, %50, %51 : vector<128x1xi32>
    %c0_i32_31 = arith.constant 0 : i32
    %53 = vector.broadcast %c0_i32_31 : i32 to vector<128x1xi32>
    %54 = arith.cmpi slt, %50, %53 : vector<128x1xi32>
    %c0_i32_32 = arith.constant 0 : i32
    %55 = arith.cmpi slt, %48, %c0_i32_32 : i32
    %56 = vector.broadcast %55 : i1 to vector<128x1xi1>
    %57 = vector.broadcast %56 : vector<128x1xi1> to vector<128x1xi1>
    %58 = arith.xori %54, %57 : vector<128x1xi1>
    %59 = arith.andi %58, %52 : vector<128x1xi1>
    %60 = vector.broadcast %48 : i32 to vector<128x1xi32>
    %61 = arith.addi %50, %60 : vector<128x1xi32>
    %62 = arith.select %59, %61, %50 : vector<128x1xi1>, vector<128x1xi32>
    %c1_i32_33 = arith.constant 1 : i32
    %63 = vector.broadcast %c1_i32_33 : i32 to vector<128x1xi32>
    %64 = arith.cmpi sge, %62, %63 : vector<128x1xi32>
    %65 = arith.extui %64 : vector<128x1xi1> to vector<128x1xi32>
    %66 = arith.sitofp %65 : vector<128x1xi32> to vector<128x1xf32>
    %c14_i32 = arith.constant 14 : i32
    %67 = vector.broadcast %c14_i32 : i32 to vector<128x1xi32>
    %68 = arith.cmpi sle, %62, %67 : vector<128x1xi32>
    %69 = arith.extui %68 : vector<128x1xi1> to vector<128x1xi32>
    %70 = arith.sitofp %69 : vector<128x1xi32> to vector<128x1xf32>
    %cst_34 = arith.constant 0.000000e+00 : f32
    %71 = vector.broadcast %cst_34 : f32 to vector<128x128xf32>
    %c7 = arith.constant 7 : index
    %c0_35 = arith.constant 0 : index
    %72 = vector.load %arg10[%c7, %c0_35] : memref<176x128xf32, #tpu.memory_space<vmem>>, vector<128x128xf32>
    %73 = vector.broadcast %66 : vector<128x1xf32> to vector<128x128xf32>
    %74 = arith.mulf %72, %73 : vector<128x128xf32>
    %c8_36 = arith.constant 8 : index
    %c0_37 = arith.constant 0 : index
    %75 = vector.load %arg10[%c8_36, %c0_37] : memref<176x128xf32, #tpu.memory_space<vmem>>, vector<128x128xf32>
    %c9 = arith.constant 9 : index
    %c0_38 = arith.constant 0 : index
    %76 = vector.load %arg10[%c9, %c0_38] : memref<176x128xf32, #tpu.memory_space<vmem>>, vector<128x128xf32>
    %77 = vector.broadcast %70 : vector<128x1xf32> to vector<128x128xf32>
    %78 = arith.mulf %76, %77 : vector<128x128xf32>
    %79 = tpu.concatenate %74, %75, %78 in 1 : vector<128x128xf32>, vector<128x128xf32>, vector<128x128xf32> -> vector<128x384xf32>
    %c0_39 = arith.constant 0 : index
    %c0_40 = arith.constant 0 : index
    %c0_41 = arith.constant 0 : index
    %80 = vector.load %arg6[%c0_39, %c0_40, %c0_41] : memref<3x384x128xf32, #tpu.memory_space<vmem>>, vector<1x384x128xf32>
    %81 = vector.shape_cast %80 : vector<1x384x128xf32> to vector<384x128xf32>
    %cst_42 = arith.constant dense<0.000000e+00> : vector<128x128xf32>
    %82 = tpu.matmul %79, %81, %cst_42 {dimension_numbers = #tpu.dot_dimension_numbers<[1], [0], [0], [1], [0, 0, 1, 1], [], []>} : vector<128x384xf32>, vector<384x128xf32>, vector<128x128xf32> -> vector<128x128xf32>
    %83 = arith.addf %71, %82 : vector<128x128xf32>
    %c23 = arith.constant 23 : index
    %c0_43 = arith.constant 0 : index
    %84 = vector.load %arg10[%c23, %c0_43] : memref<176x128xf32, #tpu.memory_space<vmem>>, vector<128x128xf32>
    %85 = vector.broadcast %66 : vector<128x1xf32> to vector<128x128xf32>
    %86 = arith.mulf %84, %85 : vector<128x128xf32>
    %c24_44 = arith.constant 24 : index
    %c0_45 = arith.constant 0 : index
    %87 = vector.load %arg10[%c24_44, %c0_45] : memref<176x128xf32, #tpu.memory_space<vmem>>, vector<128x128xf32>
    %c25 = arith.constant 25 : index
    %c0_46 = arith.constant 0 : index
    %88 = vector.load %arg10[%c25, %c0_46] : memref<176x128xf32, #tpu.memory_space<vmem>>, vector<128x128xf32>
    %89 = vector.broadcast %70 : vector<128x1xf32> to vector<128x128xf32>
    %90 = arith.mulf %88, %89 : vector<128x128xf32>
    %91 = tpu.concatenate %86, %87, %90 in 1 : vector<128x128xf32>, vector<128x128xf32>, vector<128x128xf32> -> vector<128x384xf32>
    %c1_47 = arith.constant 1 : index
    %c0_48 = arith.constant 0 : index
    %c0_49 = arith.constant 0 : index
    %92 = vector.load %arg6[%c1_47, %c0_48, %c0_49] : memref<3x384x128xf32, #tpu.memory_space<vmem>>, vector<1x384x128xf32>
    %93 = vector.shape_cast %92 : vector<1x384x128xf32> to vector<384x128xf32>
    %cst_50 = arith.constant dense<0.000000e+00> : vector<128x128xf32>
    %94 = tpu.matmul %91, %93, %cst_50 {dimension_numbers = #tpu.dot_dimension_numbers<[1], [0], [0], [1], [0, 0, 1, 1], [], []>} : vector<128x384xf32>, vector<384x128xf32>, vector<128x128xf32> -> vector<128x128xf32>
    %95 = arith.addf %83, %94 : vector<128x128xf32>
    %c39 = arith.constant 39 : index
    %c0_51 = arith.constant 0 : index
    %96 = vector.load %arg10[%c39, %c0_51] : memref<176x128xf32, #tpu.memory_space<vmem>>, vector<128x128xf32>
    %97 = vector.broadcast %66 : vector<128x1xf32> to vector<128x128xf32>
    %98 = arith.mulf %96, %97 : vector<128x128xf32>
    %c40 = arith.constant 40 : index
    %c0_52 = arith.constant 0 : index
    %99 = vector.load %arg10[%c40, %c0_52] : memref<176x128xf32, #tpu.memory_space<vmem>>, vector<128x128xf32>
    %c41 = arith.constant 41 : index
    %c0_53 = arith.constant 0 : index
    %100 = vector.load %arg10[%c41, %c0_53] : memref<176x128xf32, #tpu.memory_space<vmem>>, vector<128x128xf32>
    %101 = vector.broadcast %70 : vector<128x1xf32> to vector<128x128xf32>
    %102 = arith.mulf %100, %101 : vector<128x128xf32>
    %103 = tpu.concatenate %98, %99, %102 in 1 : vector<128x128xf32>, vector<128x128xf32>, vector<128x128xf32> -> vector<128x384xf32>
    %c2 = arith.constant 2 : index
    %c0_54 = arith.constant 0 : index
    %c0_55 = arith.constant 0 : index
    %104 = vector.load %arg6[%c2, %c0_54, %c0_55] : memref<3x384x128xf32, #tpu.memory_space<vmem>>, vector<1x384x128xf32>
    %105 = vector.shape_cast %104 : vector<1x384x128xf32> to vector<384x128xf32>
    %cst_56 = arith.constant dense<0.000000e+00> : vector<128x128xf32>
    %106 = tpu.matmul %103, %105, %cst_56 {dimension_numbers = #tpu.dot_dimension_numbers<[1], [0], [0], [1], [0, 0, 1, 1], [], []>} : vector<128x384xf32>, vector<384x128xf32>, vector<128x128xf32> -> vector<128x128xf32>
    %107 = arith.addf %95, %106 : vector<128x128xf32>
    %c0_57 = arith.constant 0 : index
    %c0_58 = arith.constant 0 : index
    %c0_59 = arith.constant 0 : index
    %108 = vector.load %arg7[%c0_57, %c0_58, %c0_59] : memref<1x128x128xf32, #tpu.memory_space<vmem>>, vector<1x128x128xf32>
    %109 = vector.shape_cast %108 : vector<1x128x128xf32> to vector<128x128xf32>
    %110 = vector.shape_cast %107 : vector<128x128xf32> to vector<1x128x128xf32>
    tpu.vector_store %arg7[%c0_57, %c0_58, %c0_59], %110 {strides = array<i32>} : memref<1x128x128xf32, #tpu.memory_space<vmem>>, vector<1x128x128xf32>,
    %cst_60 = arith.constant dense<0.000000e+00> : vector<128xf32>
    %111 = vector.multi_reduction <add>, %107, %cst_60 [0] : vector<128x128xf32> to vector<128xf32>
    %112 = vector.shape_cast %111 : vector<128xf32> to vector<1x128xf32>
    %c0_61 = arith.constant 0 : index
    %c0_62 = arith.constant 0 : index
    %c0_63 = arith.constant 0 : index
    %c0_64 = arith.constant 0 : index
    %113 = vector.load %arg8[%c0_61, %c0_62, %c0_63, %c0_64] : memref<1x1x1x128xf32, #tpu.memory_space<vmem>>, vector<1x1x1x128xf32>
    %114 = vector.shape_cast %113 : vector<1x1x1x128xf32> to vector<1x128xf32>
    %115 = vector.shape_cast %112 : vector<1x128xf32> to vector<1x1x1x128xf32>
    tpu.vector_store %arg8[%c0_61, %c0_62, %c0_63, %c0_64], %115 {strides = array<i32>} : memref<1x1x1x128xf32, #tpu.memory_space<vmem>>, vector<1x1x1x128xf32>,
    %116 = arith.mulf %107, %107 : vector<128x128xf32>
    %cst_65 = arith.constant dense<0.000000e+00> : vector<128xf32>
    %117 = vector.multi_reduction <add>, %116, %cst_65 [0] : vector<128x128xf32> to vector<128xf32>
    %118 = vector.shape_cast %117 : vector<128xf32> to vector<1x128xf32>
    %c0_66 = arith.constant 0 : index
    %c0_67 = arith.constant 0 : index
    %c0_68 = arith.constant 0 : index
    %c0_69 = arith.constant 0 : index
    %119 = vector.load %arg9[%c0_66, %c0_67, %c0_68, %c0_69] : memref<1x1x1x128xf32, #tpu.memory_space<vmem>>, vector<1x1x1x128xf32>
    %120 = vector.shape_cast %119 : vector<1x1x1x128xf32> to vector<1x128xf32>
    %121 = vector.shape_cast %118 : vector<1x128xf32> to vector<1x1x1x128xf32>
    tpu.vector_store %arg9[%c0_66, %c0_67, %c0_68, %c0_69], %121 {strides = array<i32>} : memref<1x1x1x128xf32, #tpu.memory_space<vmem>>, vector<1x1x1x128xf32>,
    return
  }
  func.func @transform_0(%arg0: i32, %arg1: i32) -> (i32, i32, i32) {
    %c0_i32 = arith.constant 0 : i32
    %c0_i32_0 = arith.constant 0 : i32
    return %arg0, %arg1, %c0_i32 : i32, i32, i32
  }
  func.func @transform_1(%arg0: i32, %arg1: i32) -> (i32, i32, i32) {
    %c8_i32 = arith.constant 8 : i32
    %0 = arith.muli %arg1, %c8_i32 : i32
    %c1_i32 = arith.constant 1 : i32
    %1 = arith.subi %0, %c1_i32 : i32
    %c0_i32 = arith.constant 0 : i32
    %2 = arith.maxsi %1, %c0_i32 : i32
    %c0_i32_0 = arith.constant 0 : i32
    %c0_i32_1 = arith.constant 0 : i32
    return %arg0, %2, %c0_i32_0 : i32, i32, i32
  }
  func.func @transform_2(%arg0: i32, %arg1: i32) -> (i32, i32, i32) {
    %c1_i32 = arith.constant 1 : i32
    %0 = arith.addi %arg1, %c1_i32 : i32
    %c8_i32 = arith.constant 8 : i32
    %1 = arith.muli %0, %c8_i32 : i32
    %c15_i32 = arith.constant 15 : i32
    %2 = arith.minsi %1, %c15_i32 : i32
    %c0_i32 = arith.constant 0 : i32
    %c0_i32_0 = arith.constant 0 : i32
    return %arg0, %2, %c0_i32 : i32, i32, i32
  }
  func.func @transform_3(%arg0: i32, %arg1: i32) -> (i32, i32) {
    %c0_i32 = arith.constant 0 : i32
    %c0_i32_0 = arith.constant 0 : i32
    %c0_i32_1 = arith.constant 0 : i32
    return %c0_i32, %c0_i32_0 : i32, i32
  }
  func.func @transform_4(%arg0: i32, %arg1: i32) -> (i32, i32, i32) {
    %c0_i32 = arith.constant 0 : i32
    %c0_i32_0 = arith.constant 0 : i32
    %c0_i32_1 = arith.constant 0 : i32
    %c0_i32_2 = arith.constant 0 : i32
    return %c0_i32, %c0_i32_0, %c0_i32_1 : i32, i32, i32
  }
  func.func @transform_5(%arg0: i32, %arg1: i32) -> (i32, i32, i32) {
    %c0_i32 = arith.constant 0 : i32
    %c0_i32_0 = arith.constant 0 : i32
    return %arg0, %arg1, %c0_i32 : i32, i32, i32
  }
  func.func @transform_6(%arg0: i32, %arg1: i32) -> (i32, i32, i32, i32) {
    %c0_i32 = arith.constant 0 : i32
    %c0_i32_0 = arith.constant 0 : i32
    %c0_i32_1 = arith.constant 0 : i32
    return %arg0, %arg1, %c0_i32, %c0_i32_0 : i32, i32, i32, i32
  }
  func.func @transform_7(%arg0: i32, %arg1: i32) -> (i32, i32, i32, i32) {
    %c0_i32 = arith.constant 0 : i32
    %c0_i32_0 = arith.constant 0 : i32
    %c0_i32_1 = arith.constant 0 : i32
    return %arg0, %arg1, %c0_i32, %c0_i32_0 : i32, i32, i32, i32
  }
}

</mosaic_0001>

<bundles_post_ra>
// kernel: conv_block_forward.5
= control target key start
LH: loop header
LB: loop body
LE: loop exit
PB: predicated region body
PF: predicated region fallthrough
CT: control target
= control target key end

     0   :  { %s881_s0 = inlined_call_operand.vmem [shape: f32[512,128], index: 0, kind: input, shape index: {}]   ;;  %s882_s1 = inlined_call_operand.vmem [shape: f32[2,128], index: 1, kind: input, shape index: {}]   ;;  %s883_s2 = inlined_call_operand.vmem [shape: f32[512,128], index: 2, kind: output, shape index: {}]  }
   0x1   :  { %v11_v0 = vld [vmem:[%s881_s0] sm:$0xff]  ;;  %v12_v3 = vld [vmem:[%s881_s0 + $0x8] sm:$0xff]  ;;  %v13_v6 = vld [vmem:[%s881_s0 + $0x10] sm:$0xff] }
   0x2   :  { %v362_v1 = vld [vmem:[%s882_s1] ss:$0 sm:$0xff]  ;;  %v367_v2 = vld [vmem:[%s882_s1 + $0x1] ss:$0 sm:$0xff]  ;;  %v14_v7 = vld [vmem:[%s881_s0 + $0x18] sm:$0xff] }
   0x3   :  { %v77_v4 = vmul.f32 %v362_v1, %v11_v0  ;;  %v78_v5 = vmul.f32 %v362_v1, %v12_v3  ;;  %v15_v8 = vld [vmem:[%s881_s0 + $0x20] sm:$0xff]  ;;  %v79_v9 = vmul.f32 %v362_v1, %v13_v6  ;;  %v80_v10 = vmul.f32 %v362_v1, %v14_v7  ;;  %v16_v12 = vld [vmem:[%s881_s0 + $0x28] sm:$0xff]  ;;  %v17_v13 = vld [vmem:[%s881_s0 + $0x30] sm:$0xff] }
   0x4   :  { %v81_v11 = vmul.f32 %v362_v1, %v15_v8  ;;  %v18_v14 = vld [vmem:[%s881_s0 + $0x38] sm:$0xff]  ;;  %v82_v17 = vmul.f32 %v362_v1, %v16_v12  ;;  %v83_v18 = vmul.f32 %v362_v1, %v17_v13  ;;  %v19_v23 = vld [vmem:[%s881_s0 + $0x40] sm:$0xff]  ;;  %v20_v24 = vld [vmem:[%s881_s0 + $0x48] sm:$0xff] }
   0x5   :  { %v143_v15 = vadd.f32 %v367_v2, %v77_v4  ;;  %v144_v16 = vadd.f32 %v367_v2, %v78_v5  ;;  %v145_v19 = vadd.f32 %v367_v2, %v79_v9  ;;  %v146_v20 = vadd.f32 %v367_v2, %v80_v10  ;;  %v21_v29 = vld [vmem:[%s881_s0 + $0x50] sm:$0xff]  ;;  %v22_v30 = vld [vmem:[%s881_s0 + $0x58] sm:$0xff]  ;;  %v23_v31 = vld [vmem:[%s881_s0 + $0x60] sm:$0xff] }
   0x6   :  { %v147_v21 = vadd.f32 %v367_v2, %v81_v11  ;;  %v84_v22 = vmul.f32 %v362_v1, %v18_v14  ;;  %v148_v27 = vadd.f32 %v367_v2, %v82_v17  ;;  %v149_v28 = vadd.f32 %v367_v2, %v83_v18  ;;  %v24_v35 = vld [vmem:[%s881_s0 + $0x68] sm:$0xff]  ;;  %v25_v36 = vld [vmem:[%s881_s0 + $0x70] sm:$0xff]  ;;  %v26_v41 = vld [vmem:[%s881_s0 + $0x78] sm:$0xff] }
   0x7   :  { %v207_v25 = vmax.f32 %v143_v15, 0.0  ;;  %v208_v26 = vmax.f32 %v144_v16, 0.0  ;;  %v209_v32 = vmax.f32 %v145_v19, 0.0  ;;  %v210_v33 = vmax.f32 %v146_v20, 0.0  ;;  %v27_v54 = vld [vmem:[%s881_s0 + $0x80] sm:$0xff]  ;;  %v28_v55 = vld [vmem:[%s881_s0 + $0x88] sm:$0xff] }
   0x8   :  { %v150_v34 = vadd.f32 %v367_v2, %v84_v22  ;;  %v211_v37 = vmax.f32 %v147_v21, 0.0  ;;  %v212_v38 = vmax.f32 %v148_v27, 0.0  ;;  %v85_v39 = vmul.f32 %v362_v1, %v19_v23  ;;  %v29_v58 = vld [vmem:[%s881_s0 + $0x90] sm:$0xff]  ;;  %v30_v59 = vld [vmem:[%s881_s0 + $0x98] sm:$0xff]  ;;  %v31_v62 = vld [vmem:[%s881_s0 + $0xa0] sm:$0xff] }
   0x9   :  { %271 = vst [vmem:[%s883_s2] sm:$0xff] %v207_v25  ;;  %v86_v40 = vmul.f32 %v362_v1, %v20_v24  ;;  %v213_v42 = vmax.f32 %v149_v28, 0.0  ;;  %v87_v43 = vmul.f32 %v362_v1, %v21_v29  ;;  %v88_v44 = vmul.f32 %v362_v1, %v22_v30  ;;  %v32_v5 = vld [vmem:[%s881_s0 + $0xa8] sm:$0xff]  ;;  %v33_v10 = vld [vmem:[%s881_s0 + $0xb0] sm:$0xff]  ;;  %v34_v14 = vld [vmem:[%s881_s0 + $0xb8] sm:$0xff] }
   0xa   :  { %272 = vst [vmem:[%s883_s2 + $0x8] sm:$0xff] %v208_v26  ;;  %v89_v45 = vmul.f32 %v362_v1, %v23_v31  ;;  %v151_v46 = vadd.f32 %v367_v2, %v85_v39  ;;  %v90_v48 = vmul.f32 %v362_v1, %v24_v35  ;;  %v91_v49 = vmul.f32 %v362_v1, %v25_v36  ;;  %v35_v18 = vld [vmem:[%s881_s0 + $0xc0] sm:$0xff]  ;;  %v36_v22 = vld [vmem:[%s881_s0 + $0xc8] sm:$0xff]  ;;  %v37_v26 = vld [vmem:[%s881_s0 + $0xd0] sm:$0xff] }
   0xb   :  { %273 = vst [vmem:[%s883_s2 + $0x10] sm:$0xff] %v209_v32  ;;  %v152_v47 = vadd.f32 %v367_v2, %v86_v40  ;;  %v214_v50 = vmax.f32 %v150_v34, 0.0  ;;  %v153_v51 = vadd.f32 %v367_v2, %v87_v43  ;;  %v154_v52 = vadd.f32 %v367_v2, %v88_v44  ;;  %v38_v30 = vld [vmem:[%s881_s0 + $0xd8] sm:$0xff]  ;;  %v39_v34 = vld [vmem:[%s881_s0 + $0xe0] sm:$0xff] }
   0xc   :  { %274 = vst [vmem:[%s883_s2 + $0x18] sm:$0xff] %v210_v33  ;;  %v92_v53 = vmul.f32 %v362_v1, %v26_v41  ;;  %v215_v56 = vmax.f32 %v151_v46, 0.0  ;;  %v155_v57 = vadd.f32 %v367_v2, %v89_v45  ;;  %v156_v61 = vadd.f32 %v367_v2, %v90_v48  ;;  %v42_v46 = vld [vmem:[%s881_s0 + $0xf8] sm:$0xff] }
   0xd   :  { %275 = vst [vmem:[%s883_s2 + $0x20] sm:$0xff] %v211_v37  ;;  %v216_v60 = vmax.f32 %v152_v47, 0.0  ;;  %v217_v63 = vmax.f32 %v153_v51, 0.0  ;;  %v157_v0 = vadd.f32 %v367_v2, %v91_v49  ;;  %v93_v3 = vmul.f32 %v362_v1, %v27_v54  ;;  %v44_v54 = vld [vmem:[%s881_s0 + $0x108] sm:$0xff] }
   0xe   :  { %276 = vst [vmem:[%s883_s2 + $0x28] sm:$0xff] %v212_v38  ;;  %v94_v4 = vmul.f32 %v362_v1, %v28_v55  ;;  %v218_v6 = vmax.f32 %v154_v52, 0.0  ;;  %v158_v7 = vadd.f32 %v367_v2, %v92_v53  ;;  %v95_v8 = vmul.f32 %v362_v1, %v29_v58  ;;  %v40_v38 = vld [vmem:[%s881_s0 + $0xe8] sm:$0xff]  ;;  %v45_v58 = vld [vmem:[%s881_s0 + $0x110] sm:$0xff] }
   0xf   :  { %277 = vst [vmem:[%s883_s2 + $0x30] sm:$0xff] %v213_v42  ;;  %v96_v9 = vmul.f32 %v362_v1, %v30_v59  ;;  %v219_v11 = vmax.f32 %v155_v57, 0.0  ;;  %v159_v12 = vadd.f32 %v367_v2, %v93_v3  ;;  %v97_v13 = vmul.f32 %v362_v1, %v31_v62  ;;  %v41_v42 = vld [vmem:[%s881_s0 + $0xf0] sm:$0xff]  ;;  %v46_v62 = vld [vmem:[%s881_s0 + $0x118] sm:$0xff] }
  0x10   :  { %278 = vst [vmem:[%s883_s2 + $0x38] sm:$0xff] %v214_v50  ;;  %v220_v15 = vmax.f32 %v156_v61, 0.0  ;;  %v160_v16 = vadd.f32 %v367_v2, %v94_v4  ;;  %v98_v17 = vmul.f32 %v362_v1, %v32_v5  ;;  %v221_v19 = vmax.f32 %v157_v0, 0.0  ;;  %v43_v50 = vld [vmem:[%s881_s0 + $0x100] sm:$0xff] }
  0x11   :  { %279 = vst [vmem:[%s883_s2 + $0x40] sm:$0xff] %v215_v56  ;;  %v161_v20 = vadd.f32 %v367_v2, %v95_v8  ;;  %v99_v21 = vmul.f32 %v362_v1, %v33_v10  ;;  %v222_v23 = vmax.f32 %v158_v7, 0.0  ;;  %v162_v24 = vadd.f32 %v367_v2, %v96_v9  ;;  %v47_v4 = vld [vmem:[%s881_s0 + $0x120] sm:$0xff]  ;;  %v48_v8 = vld [vmem:[%s881_s0 + $0x128] sm:$0xff] }
  0x12   :  { %280 = vst [vmem:[%s883_s2 + $0x48] sm:$0xff] %v216_v60  ;;  %v100_v25 = vmul.f32 %v362_v1, %v34_v14  ;;  %v223_v27 = vmax.f32 %v159_v12, 0.0  ;;  %v163_v28 = vadd.f32 %v367_v2, %v97_v13  ;;  %v101_v29 = vmul.f32 %v362_v1, %v35_v18  ;;  %v49_v12 = vld [vmem:[%s881_s0 + $0x130] sm:$0xff] }
  0x13   :  { %281 = vst [vmem:[%s883_s2 + $0x50] sm:$0xff] %v217_v63  ;;  %v224_v31 = vmax.f32 %v160_v16, 0.0  ;;  %v164_v32 = vadd.f32 %v367_v2, %v98_v17  ;;  %v102_v33 = vmul.f32 %v362_v1, %v36_v22  ;;  %v225_v35 = vmax.f32 %v161_v20, 0.0  ;;  %v50_v16 = vld [vmem:[%s881_s0 + $0x138] sm:$0xff]  ;;  %v51_v20 = vld [vmem:[%s881_s0 + $0x140] sm:$0xff] }
  0x14   :  { %282 = vst [vmem:[%s883_s2 + $0x58] sm:$0xff] %v218_v6  ;;  %v165_v36 = vadd.f32 %v367_v2, %v99_v21  ;;  %v103_v37 = vmul.f32 %v362_v1, %v37_v26  ;;  %v226_v39 = vmax.f32 %v162_v24, 0.0  ;;  %v166_v40 = vadd.f32 %v367_v2, %v100_v25  ;;  %v52_v24 = vld [vmem:[%s881_s0 + $0x148] sm:$0xff] }
  0x15   :  { %283 = vst [vmem:[%s883_s2 + $0x60] sm:$0xff] %v219_v11  ;;  %v104_v41 = vmul.f32 %v362_v1, %v38_v30  ;;  %v227_v43 = vmax.f32 %v163_v28, 0.0  ;;  %v167_v44 = vadd.f32 %v367_v2, %v101_v29  ;;  %v105_v45 = vmul.f32 %v362_v1, %v39_v34  ;;  %v53_v28 = vld [vmem:[%s881_s0 + $0x150] sm:$0xff] }
  0x16   :  { %284 = vst [vmem:[%s883_s2 + $0x68] sm:$0xff] %v220_v15  ;;  %v228_v47 = vmax.f32 %v164_v32, 0.0  ;;  %v168_v48 = vadd.f32 %v367_v2, %v102_v33  ;;  %v106_v49 = vmul.f32 %v362_v1, %v40_v38  ;;  %v229_v51 = vmax.f32 %v165_v36, 0.0  ;;  %v54_v32 = vld [vmem:[%s881_s0 + $0x158] sm:$0xff]  ;;  %v55_v36 = vld [vmem:[%s881_s0 + $0x160] sm:$0xff] }
  0x17   :  { %285 = vst [vmem:[%s883_s2 + $0x70] sm:$0xff] %v221_v19  ;;  %v169_v52 = vadd.f32 %v367_v2, %v103_v37  ;;  %v107_v53 = vmul.f32 %v362_v1, %v41_v42  ;;  %v230_v55 = vmax.f32 %v166_v40, 0.0  ;;  %v170_v56 = vadd.f32 %v367_v2, %v104_v41  ;;  %v56_v40 = vld [vmem:[%s881_s0 + $0x168] sm:$0xff] }
  0x18   :  { %286 = vst [vmem:[%s883_s2 + $0x78] sm:$0xff] %v222_v23  ;;  %v108_v57 = vmul.f32 %v362_v1, %v42_v46  ;;  %v231_v59 = vmax.f32 %v167_v44, 0.0  ;;  %v171_v60 = vadd.f32 %v367_v2, %v105_v45  ;;  %v109_v61 = vmul.f32 %v362_v1, %v43_v50  ;;  %v57_v44 = vld [vmem:[%s881_s0 + $0x170] sm:$0xff] }
  0x19   :  { %287 = vst [vmem:[%s883_s2 + $0x80] sm:$0xff] %v223_v27  ;;  %v232_v63 = vmax.f32 %v168_v48, 0.0  ;;  %v172_v0 = vadd.f32 %v367_v2, %v106_v49  ;;  %v110_v3 = vmul.f32 %v362_v1, %v44_v54  ;;  %v233_v5 = vmax.f32 %v169_v52, 0.0  ;;  %v58_v48 = vld [vmem:[%s881_s0 + $0x178] sm:$0xff]  ;;  %v59_v52 = vld [vmem:[%s881_s0 + $0x180] sm:$0xff] }
  0x1a   :  { %288 = vst [vmem:[%s883_s2 + $0x88] sm:$0xff] %v224_v31  ;;  %v173_v6 = vadd.f32 %v367_v2, %v107_v53  ;;  %v111_v7 = vmul.f32 %v362_v1, %v45_v58  ;;  %v234_v9 = vmax.f32 %v170_v56, 0.0  ;;  %v174_v10 = vadd.f32 %v367_v2, %v108_v57  ;;  %v60_v56 = vld [vmem:[%s881_s0 + $0x188] sm:$0xff] }
  0x1b   :  { %289 = vst [vmem:[%s883_s2 + $0x90] sm:$0xff] %v225_v35  ;;  %v112_v11 = vmul.f32 %v362_v1, %v46_v62  ;;  %v235_v13 = vmax.f32 %v171_v60, 0.0  ;;  %v175_v14 = vadd.f32 %v367_v2, %v109_v61  ;;  %v113_v15 = vmul.f32 %v362_v1, %v47_v4  ;;  %v61_v60 = vld [vmem:[%s881_s0 + $0x190] sm:$0xff] }
  0x1c   :  { %290 = vst [vmem:[%s883_s2 + $0x98] sm:$0xff] %v226_v39  ;;  %v236_v17 = vmax.f32 %v172_v0, 0.0  ;;  %v176_v18 = vadd.f32 %v367_v2, %v110_v3  ;;  %v114_v19 = vmul.f32 %v362_v1, %v48_v8  ;;  %v237_v21 = vmax.f32 %v173_v6, 0.0  ;;  %v62_v0 = vld [vmem:[%s881_s0 + $0x198] sm:$0xff] }
  0x1d   :  { %291 = vst [vmem:[%s883_s2 + $0xa0] sm:$0xff] %v227_v43  ;;  %v177_v22 = vadd.f32 %v367_v2, %v111_v7  ;;  %v115_v23 = vmul.f32 %v362_v1, %v49_v12  ;;  %v238_v25 = vmax.f32 %v174_v10, 0.0  ;;  %v178_v26 = vadd.f32 %v367_v2, %v112_v11  ;;  %v74_v3 = vld [vmem:[%s881_s0 + $0x1f8] sm:$0xff]  ;;  %v63_v7 = vld [vmem:[%s881_s0 + $0x1a0] sm:$0xff]  ;;  %v64_v11 = vld [vmem:[%s881_s0 + $0x1a8] sm:$0xff] }
  0x1e   :  { %292 = vst [vmem:[%s883_s2 + $0xa8] sm:$0xff] %v228_v47  ;;  %v116_v27 = vmul.f32 %v362_v1, %v50_v16  ;;  %v239_v29 = vmax.f32 %v175_v14, 0.0  ;;  %v179_v30 = vadd.f32 %v367_v2, %v113_v15  ;;  %v117_v31 = vmul.f32 %v362_v1, %v51_v20  ;;  %v65_v15 = vld [vmem:[%s881_s0 + $0x1b0] sm:$0xff]  ;;  %v66_v20 = vld [vmem:[%s881_s0 + $0x1b8] sm:$0xff] }
  0x1f   :  { %293 = vst [vmem:[%s883_s2 + $0xb0] sm:$0xff] %v229_v51  ;;  %v240_v33 = vmax.f32 %v176_v18, 0.0  ;;  %v180_v34 = vadd.f32 %v367_v2, %v114_v19  ;;  %v118_v35 = vmul.f32 %v362_v1, %v52_v24  ;;  %v241_v37 = vmax.f32 %v177_v22, 0.0  ;;  %v67_v24 = vld [vmem:[%s881_s0 + $0x1c0] sm:$0xff] }
  0x20   :  { %294 = vst [vmem:[%s883_s2 + $0xb8] sm:$0xff] %v230_v55  ;;  %v181_v38 = vadd.f32 %v367_v2, %v115_v23  ;;  %v119_v39 = vmul.f32 %v362_v1, %v53_v28  ;;  %v242_v41 = vmax.f32 %v178_v26, 0.0  ;;  %v182_v42 = vadd.f32 %v367_v2, %v116_v27 }
  0x21   :  { %295 = vst [vmem:[%s883_s2 + $0xc0] sm:$0xff] %v231_v59  ;;  %v120_v43 = vmul.f32 %v362_v1, %v54_v32  ;;  %v243_v45 = vmax.f32 %v179_v30, 0.0  ;;  %v183_v46 = vadd.f32 %v367_v2, %v117_v31  ;;  %v121_v47 = vmul.f32 %v362_v1, %v55_v36 }
  0x22   :  { %296 = vst [vmem:[%s883_s2 + $0xc8] sm:$0xff] %v232_v63  ;;  %v244_v49 = vmax.f32 %v180_v34, 0.0  ;;  %v184_v50 = vadd.f32 %v367_v2, %v118_v35  ;;  %v122_v51 = vmul.f32 %v362_v1, %v56_v40  ;;  %v245_v53 = vmax.f32 %v181_v38, 0.0 }
  0x23   :  { %297 = vst [vmem:[%s883_s2 + $0xd0] sm:$0xff] %v233_v5  ;;  %v185_v54 = vadd.f32 %v367_v2, %v119_v39  ;;  %v123_v55 = vmul.f32 %v362_v1, %v57_v44  ;;  %v246_v57 = vmax.f32 %v182_v42, 0.0  ;;  %v186_v58 = vadd.f32 %v367_v2, %v120_v43 }
  0x24   :  { %298 = vst [vmem:[%s883_s2 + $0xd8] sm:$0xff] %v234_v9  ;;  %v124_v59 = vmul.f32 %v362_v1, %v58_v48  ;;  %v247_v61 = vmax.f32 %v183_v46, 0.0  ;;  %v187_v62 = vadd.f32 %v367_v2, %v121_v47  ;;  %v125_v63 = vmul.f32 %v362_v1, %v59_v52 }
  0x25   :  { %299 = vst [vmem:[%s883_s2 + $0xe0] sm:$0xff] %v235_v13  ;;  %v248_v4 = vmax.f32 %v184_v50, 0.0  ;;  %v188_v5 = vadd.f32 %v367_v2, %v122_v51  ;;  %v126_v6 = vmul.f32 %v362_v1, %v60_v56  ;;  %v249_v8 = vmax.f32 %v185_v54, 0.0 }
  0x26   :  { %300 = vst [vmem:[%s883_s2 + $0xe8] sm:$0xff] %v236_v17  ;;  %v189_v9 = vadd.f32 %v367_v2, %v123_v55  ;;  %v127_v10 = vmul.f32 %v362_v1, %v61_v60  ;;  %v250_v12 = vmax.f32 %v186_v58, 0.0  ;;  %v190_v13 = vadd.f32 %v367_v2, %v124_v59 }
  0x27   :  { %301 = vst [vmem:[%s883_s2 + $0xf0] sm:$0xff] %v237_v21  ;;  %v128_v14 = vmul.f32 %v362_v1, %v62_v0  ;;  %v140_v16 = vmul.f32 %v362_v1, %v74_v3  ;;  %v251_v17 = vmax.f32 %v187_v62, 0.0  ;;  %v191_v18 = vadd.f32 %v367_v2, %v125_v63 }
  0x28   :  { %302 = vst [vmem:[%s883_s2 + $0xf8] sm:$0xff] %v238_v25  ;;  %v129_v19 = vmul.f32 %v362_v1, %v63_v7  ;;  %v252_v21 = vmax.f32 %v188_v5, 0.0  ;;  %v192_v22 = vadd.f32 %v367_v2, %v126_v6  ;;  %v130_v23 = vmul.f32 %v362_v1, %v64_v11 }
  0x29   :  { %303 = vst [vmem:[%s883_s2 + $0x100] sm:$0xff] %v239_v29  ;;  %v772_v25 = vadd.f32 %v367_v2, %v140_v16  ;;  %v253_v26 = vmax.f32 %v189_v9, 0.0  ;;  %v193_v27 = vadd.f32 %v367_v2, %v127_v10  ;;  %v131_v28 = vmul.f32 %v362_v1, %v65_v15  ;;  %v68_v29 = vld [vmem:[%s881_s0 + $0x1c8] sm:$0xff] }
  0x2a   :  { %304 = vst [vmem:[%s883_s2 + $0x108] sm:$0xff] %v240_v33  ;;  %v254_v30 = vmax.f32 %v190_v13, 0.0  ;;  %v194_v31 = vadd.f32 %v367_v2, %v128_v14  ;;  %v132_v32 = vmul.f32 %v362_v1, %v66_v20  ;;  %v69_v33 = vld [vmem:[%s881_s0 + $0x1d0] sm:$0xff]  ;;  %v255_v34 = vmax.f32 %v191_v18, 0.0 }
  0x2b   :  { %305 = vst [vmem:[%s883_s2 + $0x110] sm:$0xff] %v241_v37  ;;  %v195_v35 = vadd.f32 %v367_v2, %v129_v19  ;;  %v133_v36 = vmul.f32 %v362_v1, %v67_v24  ;;  %v70_v37 = vld [vmem:[%s881_s0 + $0x1d8] sm:$0xff]  ;;  %v256_v38 = vmax.f32 %v192_v22, 0.0  ;;  %v196_v39 = vadd.f32 %v367_v2, %v130_v23 }
  0x2c   :  { %306 = vst [vmem:[%s883_s2 + $0x118] sm:$0xff] %v242_v41  ;;  %v134_v40 = vmul.f32 %v362_v1, %v68_v29  ;;  %v71_v41 = vld [vmem:[%s881_s0 + $0x1e0] sm:$0xff]  ;;  %v257_v42 = vmax.f32 %v193_v27, 0.0  ;;  %v197_v43 = vadd.f32 %v367_v2, %v131_v28  ;;  %v135_v44 = vmul.f32 %v362_v1, %v69_v33 }
  0x2d   :  { %307 = vst [vmem:[%s883_s2 + $0x120] sm:$0xff] %v243_v45  ;;  %v72_v45 = vld [vmem:[%s881_s0 + $0x1e8] sm:$0xff]  ;;  %v258_v46 = vmax.f32 %v194_v31, 0.0  ;;  %v198_v47 = vadd.f32 %v367_v2, %v132_v32  ;;  %v136_v48 = vmul.f32 %v362_v1, %v70_v37  ;;  %v259_v50 = vmax.f32 %v195_v35, 0.0 }
  0x2e   :  { %308 = vst [vmem:[%s883_s2 + $0x128] sm:$0xff] %v244_v49  ;;  %v73_v49 = vld [vmem:[%s881_s0 + $0x1f0] sm:$0xff]  ;;  %v199_v51 = vadd.f32 %v367_v2, %v133_v36  ;;  %v137_v52 = vmul.f32 %v362_v1, %v71_v41  ;;  %v200_v54 = vadd.f32 %v367_v2, %v134_v40  ;;  %v138_v55 = vmul.f32 %v362_v1, %v72_v45 }
  0x2f   :  { %309 = vst [vmem:[%s883_s2 + $0x130] sm:$0xff] %v245_v53  ;;  %v260_v53 = vmax.f32 %v196_v39, 0.0  ;;  %v261_v56 = vmax.f32 %v197_v43, 0.0  ;;  %v139_v58 = vmul.f32 %v362_v1, %v73_v49  ;;  %v262_v59 = vmax.f32 %v198_v47, 0.0 }
  0x30   :  { %310 = vst [vmem:[%s883_s2 + $0x138] sm:$0xff] %v246_v57  ;;  %v201_v57 = vadd.f32 %v367_v2, %v135_v44  ;;  %v202_v60 = vadd.f32 %v367_v2, %v136_v48  ;;  %v203_v62 = vadd.f32 %v367_v2, %v137_v52  ;;  %v264_v63 = vmax.f32 %v200_v54, 0.0 }
  0x31   :  { %311 = vst [vmem:[%s883_s2 + $0x140] sm:$0xff] %v247_v61  ;;  %v263_v61 = vmax.f32 %v199_v51, 0.0  ;;  %v204_v1 = vadd.f32 %v367_v2, %v138_v55  ;;  %v205_v3 = vadd.f32 %v367_v2, %v139_v58  ;;  %v270_v7 = vmax.f32 %v772_v25, 0.0 }
  0x32   :  { %312 = vst [vmem:[%s883_s2 + $0x148] sm:$0xff] %v248_v4  ;;  %v265_v0 = vmax.f32 %v201_v57, 0.0  ;;  %v266_v4 = vmax.f32 %v202_v60, 0.0  ;;  %v267_v5 = vmax.f32 %v203_v62, 0.0 }
  0x33   :  { %313 = vst [vmem:[%s883_s2 + $0x150] sm:$0xff] %v249_v8  ;;  %v268_v6 = vmax.f32 %v204_v1, 0.0  ;;  %v269_v2 = vmax.f32 %v205_v3, 0.0 }
  0x34   :  { %314 = vst [vmem:[%s883_s2 + $0x158] sm:$0xff] %v250_v12 }
  0x35   :  { %315 = vst [vmem:[%s883_s2 + $0x160] sm:$0xff] %v251_v17 }
  0x36   :  { %316 = vst [vmem:[%s883_s2 + $0x168] sm:$0xff] %v252_v21 }
  0x37   :  { %317 = vst [vmem:[%s883_s2 + $0x170] sm:$0xff] %v253_v26 }
  0x38   :  { %318 = vst [vmem:[%s883_s2 + $0x178] sm:$0xff] %v254_v30 }
  0x39   :  { %319 = vst [vmem:[%s883_s2 + $0x180] sm:$0xff] %v255_v34 }
  0x3a   :  { %320 = vst [vmem:[%s883_s2 + $0x188] sm:$0xff] %v256_v38 }
  0x3b   :  { %321 = vst [vmem:[%s883_s2 + $0x190] sm:$0xff] %v257_v42 }
  0x3c   :  { %322 = vst [vmem:[%s883_s2 + $0x198] sm:$0xff] %v258_v46 }
  0x3d   :  { %323 = vst [vmem:[%s883_s2 + $0x1a0] sm:$0xff] %v259_v50 }
  0x3e   :  { %324 = vst [vmem:[%s883_s2 + $0x1a8] sm:$0xff] %v260_v53 }
  0x3f   :  { %325 = vst [vmem:[%s883_s2 + $0x1b0] sm:$0xff] %v261_v56 }
  0x40   :  { %326 = vst [vmem:[%s883_s2 + $0x1b8] sm:$0xff] %v262_v59 }
  0x41   :  { %327 = vst [vmem:[%s883_s2 + $0x1c0] sm:$0xff] %v263_v61 }
  0x42   :  { %328 = vst [vmem:[%s883_s2 + $0x1c8] sm:$0xff] %v264_v63 }
  0x43   :  { %329 = vst [vmem:[%s883_s2 + $0x1d0] sm:$0xff] %v265_v0 }
  0x44   :  { %330 = vst [vmem:[%s883_s2 + $0x1d8] sm:$0xff] %v266_v4 }
  0x45   :  { %331 = vst [vmem:[%s883_s2 + $0x1e0] sm:$0xff] %v267_v5 }
  0x46   :  { %332 = vst [vmem:[%s883_s2 + $0x1e8] sm:$0xff] %v268_v6 }
  0x47   :  { %333 = vst [vmem:[%s883_s2 + $0x1f0] sm:$0xff] %v269_v2 }
  0x48   :  { %334 = vst [vmem:[%s883_s2 + $0x1f8] sm:$0xff] %v270_v7 }

// kernel: conv_block_forward.3
= control target key start
LH: loop header
LB: loop body
LE: loop exit
PB: predicated region body
PF: predicated region fallthrough
CT: control target
= control target key end

     0   :  { %s2364_s21 = smov 0   ;;  %s2366_s22 = smov 0   ;;  %s3440_s0 = inlined_call_operand.vmem [shape: f32[2,256,128], index: 0, kind: input, shape index: {}, may-alias: {0,1,2}]   ;;  %s3441_s1 = inlined_call_operand.vmem [shape: f32[2,256,128], index: 1, kind: input, shape index: {}, may-alias: {0,1,2}]   ;;  %s3442_s2 = inlined_call_operand.vmem [shape: f32[2,256,128], index: 2, kind: input, shape index: {}, may-alias: {0,1,2}]   ;;  %s3443_s3 = inlined_call_operand.vmem [shape: f32[3,384,128], index: 3, kind: input, shape index: {}]   ;;  %s3444_s4 = inlined_call_operand.vmem [shape: f32[2,256,128], index: 4, kind: output, shape index: {0}]   ;;  %s3445_s5 = inlined_call_operand.vmem [shape: f32[2,2,1,128], index: 5, kind: output, shape index: {1}]   ;;  %s3446_s6 = inlined_call_operand.vmem [shape: f32[2,2,1,128], index: 6, kind: output, shape index: {2}]  }
   0x1   :  { %s2368_s23 = smov 0   ;;  %s2370_s24 = smov 0  }
   0x2   :  { %s2372_s25 = smov 0  }
   0x3 LB: > { %s26_s26 = sadd.s32 1, %s2318_s23  ;;  %s29_s27 = sadd.s32 1, %s2322_s24  ;;  %s2326_s25 = sphi %s2372_s25, %s17_s25   ;;  %s2322_s24 = sphi %s2370_s24, %s3475_s24   ;;  %s2318_s23 = sphi %s2368_s23, %s3474_s23   ;;  %s2314_s22 = sphi %s2366_s22, %s3473_s22   ;;  %s2310_s21 = sphi %s2364_s21, %s3472_s21  }
   0x4   : > { %p27_p0 = scmp.ge.s32.totalorder %s26_s26, 2  ;;  %p2054_p1 = scmp.ge.s32.totalorder %s2326_s25, 1 }
   0x5   : > { %p308_p2 = scmp.lt.s32.totalorder %s2326_s25, 5 }
   0x6   : > { %s3477_s26 = smov (%p27_p0, %s26_s26), 0  ;;  %s3479_s27 = smov (!%p27_p0, %s29_s27), %s2322_s24 }
   0x7   : > { %p309_p3 = pnand %p2054_p1, %p308_p2  ;;  %p31_p4 = scmp.ge.s32.totalorder %s3479_s27, 2 }
   0x9   : > { %s3481_s27 = smov (%p31_p4, %s3479_s27), 0  ;;  %312 = sbr.rel (%p309_p3) target bundleno = 489 (0x1e9), region = 36 }
   0xe   : > { %v2103_v0 = vld [vmem:[%s3443_s3 + $0x1f8] sm:$0xff]  ;;  %v2102_v1 = vld [vmem:[%s3443_s3 + $0x1f0] sm:$0xff]  ;;  %s2055_s8 = sshll.u32 %s2310_s21, 4  ;;  %p387_p5 = scmp.lt.s32.totalorder %s2314_s22, 1  ;;  %v2328_v2 = vmov 0.0   ;;  %v2101_v3 = vld [vmem:[%s3443_s3 + $0x1e8] sm:$0xff]  ;;  %v510_v6 = vlaneseq }
   0xf   : > { %2192 = vmatpush.msra.mxu1 %v2103_v0  ;;  %2193 = vmatpush.msra.mxu2 %v2103_v0  ;;  %p389_p6 = scmp.lt.s32.totalorder %s2055_s8, 31  ;;  %462 = vst [vmem:[#allocation2] sm:$0xff] %v2328_v2  ;;  %s2058_s9 = sshll.u32 %s2310_s21, 3  ;;  %v2100_v4 = vld [vmem:[%s3443_s3 + $0x1e0] sm:$0xff]  ;;  %v2099_v5 = vld [vmem:[%s3443_s3 + $0x1d8] sm:$0xff]  ;;  %v2098_v7 = vld [vmem:[%s3443_s3 + $0x1d0] sm:$0xff] }
  0x10   : > { %2194 = vmatpush.msra.mxu3 %v2103_v0  ;;  %1030 = vmatpush.msra.mxu0 %v2103_v0  ;;  %s3483_s22 = smov (!%p387_p5, %s2314_s22), 1  ;;  %509 = vst [vmem:[#allocation2 + $0xa8] sm:$0xff] %v2328_v2  ;;  %s2059_s16 = sadd.s32 4294967295, %s2058_s9  ;;  %v2097_v12 = vld [vmem:[%s3443_s3 + $0x1c8] sm:$0xff]  ;;  %v2452_v13 = vshrl.u32 %v510_v6, 7  ;;  %v2096_v16 = vld [vmem:[%s3443_s3 + $0x1c0] sm:$0xff] }
  0x11   : > { %2195 = vmatpush.msra.mxu1 %v2102_v1  ;;  %2196 = vmatpush.msra.mxu2 %v2102_v1  ;;  %s3485_s8 = smov (!%p389_p6, %s2055_s8), 31  ;;  %s2415_s14 = sshll.u32 %s3483_s22, 5  ;;  %v2095_v19 = vld [vmem:[%s3443_s3 + $0x1b8] sm:$0xff]  ;;  %v2094_v25 = vld [vmem:[%s3443_s3 + $0x1b0] sm:$0xff]  ;;  %v2093_v29 = vld [vmem:[%s3443_s3 + $0x1a8] sm:$0xff] }
  0x12   : > { %2197 = vmatpush.msra.mxu3 %v2102_v1  ;;  %1031 = vmatpush.msra.mxu0 %v2102_v1  ;;  %s392_s15 = sadd.s32 %s2415_s14, %s3485_s8  ;;  %p398_p7 = scmp.gt.s32.totalorder %s2059_s16, 0  ;;  %v515_v20 = vadd.s32 32, %v2452_v13  ;;  %v519_v22 = vadd.s32 64, %v2452_v13  ;;  %v523_v23 = vadd.s32 96, %v2452_v13  ;;  %v531_v27 = vand.u32 15, %v2452_v13  ;;  %v2092_v32 = vld [vmem:[%s3443_s3 + $0x1a0] sm:$0xff] }
  0x13   : > { %2198 = vmatpush.msra.mxu1 %v2101_v3  ;;  %2199 = vmatpush.msra.mxu2 %v2101_v3  ;;  %s2423_s19 = sshll.u32 %s392_s15, 3  ;;  %p456_p8 = scmp.gt.s32.totalorder %s2310_s21, 0  ;;  %v2091_v42 = vld [vmem:[%s3443_s3 + $0x198] sm:$0xff]  ;;  %v2090_v47 = vld [vmem:[%s3443_s3 + $0x190] sm:$0xff]  ;;  %v2089_v53 = vld [vmem:[%s3443_s3 + $0x188] sm:$0xff] }
  0x14   : > { %2200 = vmatpush.msra.mxu3 %v2101_v3  ;;  %1032 = vmatpush.msra.mxu0 %v2101_v3  ;;  %s2432_s7 = scalar_lea.vmem %s3440_s0, %s2423_s19  ;;  %s3487_s16 = smov (!%p398_p7, %s2059_s16), 0  ;;  %v559_v30 = vand.u32 15, %v515_v20  ;;  %v587_v33 = vand.u32 15, %v519_v22  ;;  %v615_v34 = vand.u32 15, %v523_v23  ;;  %vm2524_vm0 = vcmp.ge.s32.totalorder %v531_v27, 1  ;;  %v2088_v58 = vld [vmem:[%s3443_s3 + $0x180] sm:$0xff] }
  0x15   : > { %2201 = vmatpush.msra.mxu1 %v2100_v4  ;;  %2202 = vmatpush.msra.mxu2 %v2100_v4  ;;  %v2435_v8 = vld [vmem:[%s2432_s7 + $0x18] sm:$0xff]  ;;  %v2438_v9 = vld [vmem:[%s2432_s7 + $0x20] sm:$0xff]  ;;  %s2462_s11 = scalar_select %p456_p8, 1, 0  ;;  %v2473_v18 = vld [vmem:[%s2432_s7 + $0x8] sm:$0xff]  ;;  %v2555_v48 = vsel %vm2524_vm0, 1.0, %v2328_v2 }
  0x16   : > { %2203 = vmatpush.msra.mxu3 %v2100_v4  ;;  %1033 = vmatpush.msra.mxu0 %v2100_v4  ;;  %v2441_v10 = vld [vmem:[%s2432_s7 + $0x38] sm:$0xff]  ;;  %489 = vst [vmem:[#allocation2 + $0x30] sm:$0xff] %v2435_v8  ;;  %v2446_v11 = vld [vmem:[%s2432_s7 + $0x40] sm:$0xff]  ;;  %s2060_s15 = sshll.u32 %s3487_s16, 1  ;;  %v2481_v21 = vld [vmem:[%s2432_s7 + $0x10] sm:$0xff]  ;;  %vm2532_vm1 = vcmp.ge.s32.totalorder %v559_v30, 1  ;;  %s3375_s20 = scalar_lea.vmem %s3444_s4, %s2423_s19 }
  0x17   : > { %2204 = vmatpush.msra.mxu1 %v2099_v5  ;;  %2205 = vmatpush.msra.mxu2 %v2099_v5  ;;  %490 = vst [vmem:[#allocation2 + $0x38] sm:$0xff] %v2438_v9  ;;  %v2455_v14 = vld [vmem:[%s2432_s7 + $0x58] sm:$0xff]  ;;  %v482_v15 = vld [vmem:[%s2432_s7 + $0x60] sm:$0xff]  ;;  %p403_p9 = scmp.lt.s32.totalorder %s2060_s15, 31  ;;  %s458_s16 = scvt.s32.f32 %s2462_s11  ;;  %v2487_v24 = vld [vmem:[%s2432_s7 + $0x28] sm:$0xff]  ;;  %vm2540_vm2 = vcmp.ge.s32.totalorder %v587_v33, 1 }
  0x18   : > { %2206 = vmatpush.msra.mxu3 %v2099_v5  ;;  %1034 = vmatpush.msra.mxu0 %v2099_v5  ;;  %493 = vst [vmem:[#allocation2 + $0x50] sm:$0xff] %v2441_v10  ;;  %v2469_v17 = vld [vmem:[%s2432_s7] sm:$0xff]  ;;  %v2494_v26 = vld [vmem:[%s2432_s7 + $0x48] sm:$0xff]  ;;  %v2514_v35 = vld [vmem:[%s2432_s7 + $0x30] sm:$0xff]  ;;  %vm2544_vm3 = vcmp.ge.s32.totalorder %v615_v34, 1  ;;  %v2563_v50 = vsel %vm2532_vm1, 1.0, %v2328_v2 }
  0x19   : > { %2207 = vmatpush.msra.mxu1 %v2098_v7  ;;  %2208 = vmatpush.msra.mxu2 %v2098_v7  ;;  %494 = vst [vmem:[#allocation2 + $0x58] sm:$0xff] %v2446_v11  ;;  %s3489_s15 = smov (!%p403_p9, %s2060_s15), 31  ;;  %v2500_v28 = vld [vmem:[%s2432_s7 + $0x68] sm:$0xff]  ;;  %v465_v31 = vstv %s458_s16  ;;  %v2518_v38 = vld [vmem:[%s2432_s7 + $0x50] sm:$0xff]  ;;  %v2578_v54 = vsel %vm2540_vm2, 1.0, %v2328_v2  ;;  %v2585_v56 = vsel %vm2544_vm3, 1.0, %v2328_v2 }
  0x1a   : > { %2209 = vmatpush.msra.mxu3 %v2098_v7  ;;  %1035 = vmatpush.msra.mxu0 %v2098_v7  ;;  %497 = vst [vmem:[#allocation2 + $0x70] sm:$0xff] %v2455_v14  ;;  %s406_s29 = sadd.s32 %s2415_s14, %s3489_s15  ;;  %v2538_v44 = vld [vmem:[%s2432_s7 + $0x70] sm:$0xff]  ;;  %v2601_v63 = vld [vmem:[%s2432_s7 + $0x78] sm:$0xff]  ;;  %v517_v7 = vadd.s32 48, %v2452_v13  ;;  %v908_v20 = vld [vmem:[%s3443_s3 + $0x68] sm:$0xff]  ;;  %s2191_s8 = sadd.s32 8, %s2058_s9 }
  0x1b   : > { %2210 = vmatpush.msra.mxu1 %v2097_v12  ;;  %2211 = vmatpush.msra.mxu2 %v2097_v12  ;;  %498 = vst [vmem:[#allocation2 + $0x78] sm:$0xff] %v482_v15  ;;  %s2062_s10 = sshll.u32 %s406_s29, 3  ;;  %v2135_v0 = vld [vmem:[%s3443_s3 + $0x2f8] sm:$0xff]  ;;  %v2134_v4 = vld [vmem:[%s3443_s3 + $0x2f0] sm:$0xff]  ;;  %v2117_v22 = vld [vmem:[%s3443_s3 + $0x268] sm:$0xff]  ;;  %p416_p10 = scmp.lt.s32.totalorder %s2191_s8, 15 }
  0x1c   : > { %2212 = vmatpush.msra.mxu3 %v2097_v12  ;;  %1036 = vmatpush.msra.mxu0 %v2097_v12  ;;  %486 = vst [vmem:[#allocation2 + $0x18] sm:$0xff] %v2469_v17  ;;  %s408_s17 = scalar_lea.vmem %s3441_s1, %s2062_s10  ;;  %v910_v1 = vld [vmem:[%s3443_s3 + $0x78] sm:$0xff]  ;;  %v909_v5 = vld [vmem:[%s3443_s3 + $0x70] sm:$0xff]  ;;  %v521_v12 = vadd.s32 80, %v2452_v13  ;;  %v907_v27 = vld [vmem:[%s3443_s3 + $0x60] sm:$0xff]  ;;  %p444_p12 = scmp.lt.s32.totalorder %s2310_s21, 1 }
  0x1d   : > { %2213 = vmatpush.msra.mxu1 %v2096_v16  ;;  %2214 = vmatpush.msra.mxu2 %v2096_v16  ;;  %487 = vst [vmem:[#allocation2 + $0x20] sm:$0xff] %v2473_v18  ;;  %v463_v36 = vld [vmem:[%s408_s17] sm:$0xff]  ;;  %v464_v37 = vld [vmem:[%s408_s17 + $0x8] sm:$0xff]  ;;  %v2119_v3 = vld [vmem:[%s3443_s3 + $0x278] sm:$0xff]  ;;  %s3491_s8 = smov (!%p416_p10, %s2191_s8), 15  ;;  %s2070_s19 = sshll.u32 %s3483_s22, 1 }
  0x1e   : > { %2215 = vmatpush.msra.mxu3 %v2096_v16  ;;  %1037 = vmatpush.msra.mxu0 %v2096_v16  ;;  %488 = vst [vmem:[#allocation2 + $0x28] sm:$0xff] %v2481_v21  ;;  %v2520_v39 = vmul.f32 %v465_v31, %v463_v36  ;;  %v2522_v40 = vmul.f32 %v465_v31, %v464_v37  ;;  %v2565_v51 = vld [vmem:[#allocation2 + $0x37] sm:$0xff]  ;;  %v525_v16 = vadd.s32 112, %v2452_v13  ;;  %v601_v30 = vand.u32 15, %v521_v12  ;;  %v2116_v31 = vld [vmem:[%s3443_s3 + $0x260] sm:$0xff]  ;;  %s2064_s9 = sshll.u32 %s3491_s8, 1 }
  0x1f   : > { %2216 = vmatpush.msra.mxu1 %v2095_v19  ;;  %2217 = vmatpush.msra.mxu2 %v2095_v19  ;;  %491 = vst [vmem:[#allocation2 + $0x40] sm:$0xff] %v2487_v24  ;;  %v949_v59 = vmul.f32 %v2563_v50, %v2565_v51  ;;  %v2118_v15 = vld [vmem:[%s3443_s3 + $0x270] sm:$0xff]  ;;  %v926_v23 = vld [vmem:[%s3443_s3 + $0xf8] sm:$0xff]  ;;  %p421_p11 = scmp.lt.s32.totalorder %s2064_s9, 31  ;;  %v923_v12 = vld [vmem:[%s3443_s3 + $0xe0] sm:$0xff]  ;;  %s3495_s21 = smov (!%p444_p12, %s2310_s21), 1 }
  0x20   : > { %2218 = vmatpush.msra.mxu3 %v2095_v19  ;;  %1038 = vmatpush.msra.mxu0 %v2095_v19  ;;  %495 = vst [vmem:[#allocation2 + $0x60] sm:$0xff] %v2494_v26  ;;  %v2580_v55 = vld [vmem:[#allocation2 + $0x57] sm:$0xff]  ;;  %v2133_v19 = vld [vmem:[%s3443_s3 + $0x2e8] sm:$0xff]  ;;  %v629_v33 = vand.u32 15, %v525_v16  ;;  %vm2673_vm5 = vcmp.ge.s32.totalorder %v601_v30, 1  ;;  %s447_s28 = sadd.s32 %s2070_s19, %s3495_s21 }
  0x21   : > { %2219 = vmatpush.msra.mxu1 %v2094_v25  ;;  %2220 = vmatpush.msra.mxu2 %v2094_v25  ;;  %499 = vst [vmem:[#allocation2 + $0x80] sm:$0xff] %v2500_v28  ;;  %v953_v60 = vmul.f32 %v2578_v54, %v2580_v55  ;;  %v2131_v37 = vld [vmem:[%s3443_s3 + $0x2d8] sm:$0xff]  ;;  %v925_v43 = vld [vmem:[%s3443_s3 + $0xf0] sm:$0xff]  ;;  %s3493_s9 = smov (!%p421_p11, %s2064_s9), 31  ;;  %s448_s10 = scalar_lea.vmem %s3445_s5, %s447_s28 }
  0x22   : > { %2221 = vmatpush.msra.mxu3 %v2094_v25  ;;  %1039 = vmatpush.msra.mxu0 %v2094_v25  ;;  %492 = vst [vmem:[#allocation2 + $0x48] sm:$0xff] %v2514_v35  ;;  %v2587_v57 = vld [vmem:[#allocation2 + $0x77] sm:$0xff]  ;;  %v2132_v25 = vld [vmem:[%s3443_s3 + $0x2e0] sm:$0xff]  ;;  %vm2687_vm6 = vcmp.ge.s32.totalorder %v629_v33, 1  ;;  %s424_s12 = sadd.s32 %s2415_s14, %s3493_s9  ;;  %s455_s11 = scalar_lea.vmem %s3446_s6, %s447_s28 }
  0x23   : > { %2222 = vmatpush.msra.mxu1 %v2093_v29  ;;  %2223 = vmatpush.msra.mxu2 %v2093_v29  ;;  %496 = vst [vmem:[#allocation2 + $0x68] sm:$0xff] %v2518_v38  ;;  %v957_v61 = vmul.f32 %v2585_v56, %v2587_v57  ;;  %v906_v41 = vld [vmem:[%s3443_s3 + $0x58] sm:$0xff]  ;;  %v921_v45 = vld [vmem:[%s3443_s3 + $0xd0] sm:$0xff]  ;;  %s460_s8 = scalar_select %p444_p12, 1, 0 }
  0x24   : > { %2224 = vmatpush.msra.mxu3 %v2093_v29  ;;  %1040 = vmatpush.msra.mxu0 %v2093_v29  ;;  %469 = vst [vmem:[#allocation2 + $0x10] sm:$0xff] %v2522_v40  ;;  %v573_v29 = vand.u32 15, %v517_v7  ;;  %v2113_v7 = vld [vmem:[%s3443_s3 + $0x248] sm:$0xff]  ;;  %v902_v33 = vld [vmem:[%s3443_s3 + $0x38] sm:$0xff]  ;;  %v2110_v46 = vld [vmem:[%s3443_s3 + $0x230] sm:$0xff]  ;;  %s2066_s18 = sshll.u32 %s424_s12, 3 }
  0x25   : > { %2225 = vmatpush.msra.mxu1 %v2092_v32  ;;  %2226 = vmatpush.msra.mxu2 %v2092_v32  ;;  %v2557_v49 = vld [vmem:[#allocation2 + $0x27] sm:$0xff]  ;;  %468 = vst [vmem:[#allocation2 + $0x8] sm:$0xff] %v2520_v39  ;;  %s461_s7 = scvt.s32.f32 %s460_s8  ;;  %s3129_s12 = scalar_lea.vmem %s3442_s2, %s2066_s18 }
  0x26   : > { %2227 = vmatpush.msra.mxu3 %v2092_v32  ;;  %1041 = vmatpush.msra.mxu0 %v2092_v32  ;;  %v2569_v52 = vmul.f32 %v2555_v48, %v2557_v49  ;;  %500 = vst [vmem:[#allocation2 + $0x88] sm:$0xff] %v2538_v44  ;;  %v2652_v34 = vld [vmem:[#allocation2 + $0x3f] sm:$0xff]  ;;  %vm2669_vm4 = vcmp.ge.s32.totalorder %v573_v29, 1 }
  0x27   : > { %2228 = vmatpush.msra.mxu1 %v2091_v42  ;;  %2229 = vmatpush.msra.mxu2 %v2091_v42  ;;  %501 = vst [vmem:[#allocation2 + $0x90] sm:$0xff] %v2601_v63  ;;  %v2648_v32 = vld [vmem:[#allocation2 + $0x5f] sm:$0xff] }
  0x28   : > { %2230 = vmatpush.msra.mxu3 %v2091_v42  ;;  %1042 = vmatpush.msra.mxu0 %v2091_v42  ;;  %v2654_v36 = vld [vmem:[#allocation2 + $0x7f] sm:$0xff] }
  0x29   : > { %2231 = vmatpush.msra.mxu1 %v2090_v47  ;;  %2232 = vmatpush.msra.mxu2 %v2090_v47  ;;  %v2115_v42 = vld [vmem:[%s3443_s3 + $0x258] sm:$0xff] }
  0x2a   : > { %2233 = vmatpush.msra.mxu3 %v2090_v47  ;;  %1043 = vmatpush.msra.mxu0 %v2090_v47  ;;  %v2130_v47 = vld [vmem:[%s3443_s3 + $0x2d0] sm:$0xff] }
  0x2b   : > { %2234 = vmatpush.msra.mxu1 %v2089_v53  ;;  %2235 = vmatpush.msra.mxu2 %v2089_v53  ;;  %v2598_v62 = vld [vmem:[#allocation2 + $0x17] sm:$0xff] }
  0x2c   : > { %2236 = vmatpush.msra.mxu3 %v2089_v53  ;;  %1044 = vmatpush.msra.mxu0 %v2089_v53  ;;  %v945_v6 = vmul.f32 %v2555_v48, %v2598_v62  ;;  %v905_v53 = vld [vmem:[%s3443_s3 + $0x50] sm:$0xff] }
  0x2d   : > { %2237 = vmatpush.msra.mxu1 %v2088_v58  ;;  %2238 = vmatpush.msra.mxu2 %v2088_v58  ;;  %v943_v16 = vld [vmem:[#allocation2 + $0x87] sm:$0xff] }
  0x2e   : > { %2239 = vmatpush.msra.mxu3 %v2088_v58  ;;  %1058 = vmatmul.f32.vlgmr.msra.gmra.mxu1 %v949_v59  ;;  %v513_v59 = vadd.s32 16, %v2452_v13 }
  0x2f   : > { %1070 = vmatmul.f32.vlgmr.msra.gmra.mxu2 %v953_v60  ;;  %1082 = vmatmul.f32.vlgmr.msra.gmra.mxu3 %v957_v61  ;;  %v2114_v60 = vld [vmem:[%s3443_s3 + $0x250] sm:$0xff]  ;;  %v2129_v61 = vld [vmem:[%s3443_s3 + $0x2c8] sm:$0xff] }
  0x30   : > { %1160 = vmatpush.msrb.mxu2 %v2135_v0  ;;  %1225 = vmatpush.msrb.mxu3 %v910_v1  ;;  %v924_v0 = vld [vmem:[%s3443_s3 + $0xe8] sm:$0xff] }
  0x31   : > { %1095 = vmatpush.msrb.mxu1 %v2119_v3  ;;  %1045 = vmatpush.msra.mxu0 %v2088_v58  ;;  %v904_v1 = vld [vmem:[%s3443_s3 + $0x48] sm:$0xff]  ;;  %v2708_v3 = vsel %vm2669_vm4, 1.0, %v2328_v2 }
  0x32   : > { %1161 = vmatpush.msrb.mxu2 %v2134_v4  ;;  %1226 = vmatpush.msrb.mxu3 %v909_v5  ;;  %v2710_v4 = vld [vmem:[#allocation2 + $0x47] sm:$0xff]  ;;  %v2715_v5 = vsel %vm2673_vm5, 1.0, %v2328_v2 }
  0x33   : > { %1096 = vmatpush.msrb.mxu1 %v2118_v15  ;;  %1046 = vmatmul.f32.vlgmr.msra.gmra.mxu0 %v945_v6  ;;  %v2717_v6 = vld [vmem:[#allocation2 + $0x67] sm:$0xff]  ;;  %v2728_v15 = vsel %vm2687_vm6, 1.0, %v2328_v2 }
  0x34   : > { %1162 = vmatpush.msrb.mxu2 %v2133_v19  ;;  %1227 = vmatpush.msrb.mxu3 %v908_v20  ;;  %v2128_v19 = vld [vmem:[%s3443_s3 + $0x2c0] sm:$0xff]  ;;  %v955_v29 = vmul.f32 %v2715_v5, %v2717_v6  ;;  %v959_v30 = vmul.f32 %v2728_v15, %v943_v16  ;;  %v900_v58 = vld [vmem:[%s3443_s3 + $0x28] sm:$0xff] }
  0x35   : > { %1097 = vmatpush.msrb.mxu1 %v2117_v22  ;;  %1290 = vmatpush.msrb.mxu0 %v926_v23  ;;  %v903_v20 = vld [vmem:[%s3443_s3 + $0x40] sm:$0xff]  ;;  %v545_v22 = vand.u32 15, %v513_v59  ;;  %v920_v59 = vld [vmem:[%s3443_s3 + $0xc8] sm:$0xff] }
  0x36   : > { %1163 = vmatpush.msrb.mxu2 %v2132_v25  ;;  %1228 = vmatpush.msrb.mxu3 %v907_v27  ;;  %v2112_v23 = vld [vmem:[%s3443_s3 + $0x240] sm:$0xff]  ;;  %v951_v27 = vmul.f32 %v2708_v3, %v2710_v4  ;;  %v2804_v16 = vld [vmem:[#allocation2 + $0x4f] sm:$0xff] }
  0x37   : > { %1098 = vmatpush.msrb.mxu1 %v2116_v31  ;;  %1073 = vmatmul.f32.gmra.mxu2 %v2648_v32  ;;  %v2741_v25 = vld [vmem:[#allocation2 + $0x1f] sm:$0xff]  ;;  %vm721_vm7 = vcmp.ge.s32.totalorder %v545_v22, 1 }
  0x38   : > { %1061 = vmatmul.f32.gmra.mxu1 %v2652_v34  ;;  %1085 = vmatmul.f32.gmra.mxu3 %v2654_v36  ;;  %v2127_v31 = vld [vmem:[%s3443_s3 + $0x2b8] sm:$0xff] }
  0x39   : > { %1164 = vmatpush.msrb.mxu2 %v2131_v37  ;;  %1229 = vmatpush.msrb.mxu3 %v906_v41  ;;  %v922_v37 = vld [vmem:[%s3443_s3 + $0xd8] sm:$0xff] }
  0x3a   : > { %1099 = vmatpush.msrb.mxu1 %v2115_v42  ;;  %1291 = vmatpush.msrb.mxu0 %v925_v43  ;;  %v2111_v41 = vld [vmem:[%s3443_s3 + $0x238] sm:$0xff]  ;;  %v2126_v42 = vld [vmem:[%s3443_s3 + $0x2b0] sm:$0xff] }
  0x3b   : > { %1165 = vmatpush.msrb.mxu2 %v2130_v47  ;;  %1230 = vmatpush.msrb.mxu3 %v905_v53  ;;  %v901_v43 = vld [vmem:[%s3443_s3 + $0x30] sm:$0xff]  ;;  %v2125_v47 = vld [vmem:[%s3443_s3 + $0x2a8] sm:$0xff]  ;;  %v2779_v53 = vsel %vm721_vm7, 1.0, %v2328_v2  ;;  %v2123_v22 = vld [vmem:[%s3443_s3 + $0x298] sm:$0xff] }
  0x3c   : > { %1100 = vmatpush.msrb.mxu1 %v2114_v60  ;;  %1292 = vmatpush.msrb.mxu0 %v924_v0  ;;  %v2109_v60 = vld [vmem:[%s3443_s3 + $0x228] sm:$0xff]  ;;  %v899_v0 = vld [vmem:[%s3443_s3 + $0x20] sm:$0xff] }
  0x3d   : > { %1166 = vmatpush.msrb.mxu2 %v2129_v61  ;;  %1231 = vmatpush.msrb.mxu3 %v904_v1  ;;  %v2124_v61 = vld [vmem:[%s3443_s3 + $0x2a0] sm:$0xff] }
  0x3e   : > { %1101 = vmatpush.msrb.mxu1 %v2113_v7  ;;  %1293 = vmatpush.msrb.mxu0 %v923_v12  ;;  %v919_v1 = vld [vmem:[%s3443_s3 + $0xc0] sm:$0xff]  ;;  %v947_v7 = vmul.f32 %v2779_v53, %v2557_v49 }
  0x3f   : > { %1167 = vmatpush.msrb.mxu2 %v2128_v19  ;;  %1232 = vmatpush.msrb.mxu3 %v903_v20  ;;  %v2108_v12 = vld [vmem:[%s3443_s3 + $0x220] sm:$0xff]  ;;  %v2806_v19 = vld [vmem:[#allocation2 + $0x6f] sm:$0xff] }
  0x40   : > { %1102 = vmatpush.msrb.mxu1 %v2112_v23  ;;  %1049 = vmatmul.f32.gmra.mxu0 %v2741_v25  ;;  %v944_v20 = vld [vmem:[#allocation2 + $0x8f] sm:$0xff]  ;;  %v898_v23 = vld [vmem:[%s3443_s3 + $0x18] sm:$0xff] }
  0x41   : > { %1064 = vmatmul.f32.gmra.mxu1 %v951_v27  ;;  %1076 = vmatmul.f32.gmra.mxu2 %v955_v29  ;;  %v918_v27 = vld [vmem:[%s3443_s3 + $0xb8] sm:$0xff] }
  0x42   : > { %1088 = vmatmul.f32.gmra.mxu3 %v959_v30  ;;  %1168 = vmatpush.msrb.mxu2 %v2127_v31  ;;  %v2107_v29 = vld [vmem:[%s3443_s3 + $0x218] sm:$0xff]  ;;  %v2122_v30 = vld [vmem:[%s3443_s3 + $0x290] sm:$0xff]  ;;  %v512_v31 = vadd.s32 8, %v2452_v13 }
  0x43   : > { %1233 = vmatpush.msrb.mxu3 %v902_v33  ;;  %1294 = vmatpush.msrb.mxu0 %v922_v37  ;;  %v897_v33 = vld [vmem:[%s3443_s3 + $0x10] sm:$0xff] }
  0x44   : > { %1103 = vmatpush.msrb.mxu1 %v2111_v41  ;;  %1169 = vmatpush.msrb.mxu2 %v2126_v42  ;;  %v917_v37 = vld [vmem:[%s3443_s3 + $0xb0] sm:$0xff]  ;;  %v2121_v42 = vld [vmem:[%s3443_s3 + $0x288] sm:$0xff] }
  0x45   : > { %1234 = vmatpush.msrb.mxu3 %v901_v43  ;;  %1295 = vmatpush.msrb.mxu0 %v921_v45  ;;  %v2106_v41 = vld [vmem:[%s3443_s3 + $0x210] sm:$0xff]  ;;  %v896_v43 = vld [vmem:[%s3443_s3 + $0x8] sm:$0xff] }
  0x46   : > { %1104 = vmatpush.msrb.mxu1 %v2110_v46  ;;  %1170 = vmatpush.msrb.mxu2 %v2125_v47  ;;  %v916_v45 = vld [vmem:[%s3443_s3 + $0xa8] sm:$0xff]  ;;  %v2120_v47 = vld [vmem:[%s3443_s3 + $0x280] sm:$0xff] }
  0x47   : > { %1235 = vmatpush.msrb.mxu3 %v900_v58  ;;  %1296 = vmatpush.msrb.mxu0 %v920_v59  ;;  %v2105_v46 = vld [vmem:[%s3443_s3 + $0x208] sm:$0xff]  ;;  %v538_v59 = vand.u32 15, %v512_v31  ;;  %v2150_v31 = vld [vmem:[%s3443_s3 + $0x370] sm:$0xff] }
  0x48   : > { %1105 = vmatpush.msrb.mxu1 %v2109_v60  ;;  %1171 = vmatpush.msrb.mxu2 %v2124_v61  ;;  %v815_v58 = vld [vmem:[#allocation2 + $0x7] sm:$0xff] }
  0x49   : > { %1236 = vmatpush.msrb.mxu3 %v899_v0  ;;  %1297 = vmatpush.msrb.mxu0 %v919_v1  ;;  %v895_v60 = vld [vmem:[%s3443_s3] sm:$0xff]  ;;  %v2859_v1 = vld [vmem:[#allocation2 + $0x2f] sm:$0xff]  ;;  %vm768_vm8 = vcmp.le.s32.totalorder %v538_v59, 14  ;;  %v514_v59 = vadd.s32 24, %v2452_v13 }
  0x4a   : > { %1106 = vmatpush.msrb.mxu1 %v2108_v12  ;;  %1052 = vmatmul.f32.gmra.mxu0 %v947_v7  ;;  %v915_v61 = vld [vmem:[%s3443_s3 + $0xa0] sm:$0xff]  ;;  %v831_v12 = vmul.f32 %v2555_v48, %v815_v58  ;;  %v913_v48 = vld [vmem:[%s3443_s3 + $0x90] sm:$0xff] }
  0x4b   : > { %1067 = vmatmul.f32.gmra.mxu1 %v2804_v16  ;;  %1079 = vmatmul.f32.gmra.mxu2 %v2806_v19  ;;  %v2104_v0 = vld [vmem:[%s3443_s3 + $0x200] sm:$0xff]  ;;  %v816_v58 = vld [vmem:[#allocation2 + $0xf] sm:$0xff] }
  0x4c   : > { %1091 = vmatmul.f32.gmra.mxu3 %v944_v20  ;;  %1172 = vmatpush.msrb.mxu2 %v2123_v22  ;;  %v2861_v7 = vld [vmem:[#allocation2 + $0x19] sm:$0xff] }
  0x4d   : > { %1237 = vmatpush.msrb.mxu3 %v898_v23  ;;  %1298 = vmatpush.msrb.mxu0 %v918_v27  ;;  %v914_v20 = vld [vmem:[%s3443_s3 + $0x98] sm:$0xff] }
  0x4e   : > { %1107 = vmatpush.msrb.mxu1 %v2107_v29  ;;  %1173 = vmatpush.msrb.mxu2 %v2122_v30  ;;  %v2151_v22 = vld [vmem:[%s3443_s3 + $0x378] sm:$0xff]  ;;  %v2883_v29 = vsel %vm768_vm8, 1.0, %v2328_v2  ;;  %v2885_v30 = vld [vmem:[#allocation2 + $0x21] sm:$0xff] }
  0x4f   : > { %1238 = vmatpush.msrb.mxu3 %v897_v33  ;;  %1299 = vmatpush.msrb.mxu0 %v917_v37  ;;  %v2167_v23 = vld [vmem:[%s3443_s3 + $0x3f8] sm:$0xff]  ;;  %v2166_v33 = vld [vmem:[%s3443_s3 + $0x3f0] sm:$0xff]  ;;  %v912_v37 = vld [vmem:[%s3443_s3 + $0x88] sm:$0xff] }
  0x50   : > { %1108 = vmatpush.msrb.mxu1 %v2106_v41  ;;  %1174 = vmatpush.msrb.mxu2 %v2121_v42  ;;  %v942_v27 = vld [vmem:[%s3443_s3 + $0x178] sm:$0xff]  ;;  %v941_v41 = vld [vmem:[%s3443_s3 + $0x170] sm:$0xff]  ;;  %v2149_v42 = vld [vmem:[%s3443_s3 + $0x368] sm:$0xff] }
  0x51   : > { %1239 = vmatpush.msrb.mxu3 %v896_v43  ;;  %1300 = vmatpush.msrb.mxu0 %v916_v45  ;;  %v2165_v43 = vld [vmem:[%s3443_s3 + $0x3e8] sm:$0xff]  ;;  %v911_v45 = vld [vmem:[%s3443_s3 + $0x80] sm:$0xff] }
  0x52   : > { %1109 = vmatpush.msrb.mxu1 %v2105_v46  ;;  %1175 = vmatpush.msrb.mxu2 %v2120_v47  ;;  %v966_v46 = vmul.f32 %v2883_v29, %v2885_v30  ;;  %v940_v47 = vld [vmem:[%s3443_s3 + $0x168] sm:$0xff] }
  0x53   : > { %1240 = vmatpush.msrb.mxu3 %v895_v60  ;;  %1301 = vmatpush.msrb.mxu0 %v915_v61  ;;  %v2183_v60 = vld [vmem:[%s3443_s3 + $0x478] sm:$0xff]  ;;  %v2148_v61 = vld [vmem:[%s3443_s3 + $0x360] sm:$0xff] }
  0x54   : > { %1110 = vmatpush.msrb.mxu1 %v2104_v0  ;;  %1055 = vmatmul.f32.gmra.mxu0 %v2859_v1  ;;  %v2164_v0 = vld [vmem:[%s3443_s3 + $0x3e0] sm:$0xff] }
  0x55   : > { %1111 = vmatmul.f32.vlgmr.msrb.gmra.mxu1 %v2469_v17  ;;  %1176 = vmatmul.f32.vlgmr.msrb.gmra.mxu2 %v2861_v7 }
  0x56   : > { %1241 = vmatmul.f32.vlgmr.msrb.gmra.mxu3 %v831_v12  ;;  %1302 = vmatpush.msrb.mxu0 %v914_v20  ;;  %v939_v12 = vld [vmem:[%s3443_s3 + $0x160] sm:$0xff]  ;;  %v2182_v20 = vld [vmem:[%s3443_s3 + $0x470] sm:$0xff] }
  0x57   : > { %1549 = vmatpush.msra.mxu2 %v2151_v22  ;;  %1614 = vmatpush.msra.mxu3 %v2167_v23  ;;  %v2147_v22 = vld [vmem:[%s3443_s3 + $0x358] sm:$0xff]  ;;  %v552_v23 = vand.u32 15, %v514_v59 }
  0x58   : > { %1303 = vmatpush.msrb.mxu0 %v913_v48  ;;  %1355 = vmatpush.msra.mxu1 %v942_v27  ;;  %v2163_v48 = vld [vmem:[%s3443_s3 + $0x3d8] sm:$0xff] }
  0x59   : > { %1550 = vmatpush.msra.mxu2 %v2150_v31  ;;  %1615 = vmatpush.msra.mxu3 %v2166_v33  ;;  %v938_v27 = vld [vmem:[%s3443_s3 + $0x158] sm:$0xff]  ;;  %v2146_v31 = vld [vmem:[%s3443_s3 + $0x350] sm:$0xff]  ;;  %vm770_vm9 = vcmp.le.s32.totalorder %v552_v23, 14  ;;  %v3003_v23 = vld [vmem:[#allocation2 + $0x41] sm:$0xff] }
  0x5a   : > { %1304 = vmatpush.msrb.mxu0 %v912_v37  ;;  %1356 = vmatpush.msra.mxu1 %v941_v41  ;;  %v2162_v33 = vld [vmem:[%s3443_s3 + $0x3d0] sm:$0xff]  ;;  %v833_v41 = vmul.f32 %v2779_v53, %v2598_v62  ;;  %v2179_v62 = vld [vmem:[%s3443_s3 + $0x458] sm:$0xff] }
  0x5b   : > { %1551 = vmatpush.msra.mxu2 %v2149_v42  ;;  %1616 = vmatpush.msra.mxu3 %v2165_v43  ;;  %v2949_v37 = vld [vmem:[#allocation2 + $0x29] sm:$0xff]  ;;  %v2180_v42 = vld [vmem:[%s3443_s3 + $0x460] sm:$0xff]  ;;  %v2958_v43 = vld [vmem:[#allocation2 + $0x31] sm:$0xff] }
  0x5c   : > { %1305 = vmatpush.msrb.mxu0 %v911_v45  ;;  %1357 = vmatpush.msra.mxu1 %v940_v47  ;;  %v2965_v45 = vsel %vm770_vm9, 1.0, %v2328_v2  ;;  %v2145_v47 = vld [vmem:[%s3443_s3 + $0x348] sm:$0xff] }
  0x5d   : > { %1114 = vmatmul.f32.gmra.mxu1 %v2473_v18  ;;  %1179 = vmatmul.f32.gmra.mxu2 %v966_v46  ;;  %v937_v46 = vld [vmem:[%s3443_s3 + $0x150] sm:$0xff]  ;;  %v968_v59 = vmul.f32 %v2965_v45, %v2958_v43 }
  0x5e   : > { %1244 = vmatmul.f32.gmra.mxu3 %v816_v58  ;;  %1306 = vmatmul.f32.vlgmr.msrb.gmra.mxu0 %v2520_v39  ;;  %v2181_v39 = vld [vmem:[%s3443_s3 + $0x468] sm:$0xff] }
  0x5f   : > { %1679 = vmatpush.msra.mxu0 %v2183_v60  ;;  %1552 = vmatpush.msra.mxu2 %v2148_v61  ;;  %v2161_v58 = vld [vmem:[%s3443_s3 + $0x3c8] sm:$0xff]  ;;  %v516_v60 = vadd.s32 40, %v2452_v13 }
  0x60   : > { %1617 = vmatpush.msra.mxu3 %v2164_v0  ;;  %1358 = vmatpush.msra.mxu1 %v939_v12  ;;  %v936_v61 = vld [vmem:[%s3443_s3 + $0x148] sm:$0xff]  ;;  %v2144_v0 = vld [vmem:[%s3443_s3 + $0x340] sm:$0xff] }
  0x61   : > { %1680 = vmatpush.msra.mxu0 %v2182_v20  ;;  %1553 = vmatpush.msra.mxu2 %v2147_v22  ;;  %v2160_v12 = vld [vmem:[%s3443_s3 + $0x3c0] sm:$0xff]  ;;  %v566_v20 = vand.u32 15, %v516_v60  ;;  %v835_v22 = vmul.f32 %v2563_v50, %v2557_v49  ;;  %v2143_v49 = vld [vmem:[%s3443_s3 + $0x338] sm:$0xff]  ;;  %v933_v60 = vld [vmem:[%s3443_s3 + $0x130] sm:$0xff] }
  0x62   : > { %1618 = vmatpush.msra.mxu3 %v2163_v48  ;;  %1359 = vmatpush.msra.mxu1 %v938_v27  ;;  %v935_v27 = vld [vmem:[%s3443_s3 + $0x140] sm:$0xff] }
  0x63   : > { %1681 = vmatpush.msra.mxu0 %v2181_v39  ;;  %1554 = vmatpush.msra.mxu2 %v2146_v31  ;;  %vm772_vm10 = vcmp.le.s32.totalorder %v566_v20, 14  ;;  %v2159_v39 = vld [vmem:[%s3443_s3 + $0x3b8] sm:$0xff]  ;;  %v2176_v31 = vld [vmem:[%s3443_s3 + $0x440] sm:$0xff]  ;;  %v932_v20 = vld [vmem:[%s3443_s3 + $0x128] sm:$0xff] }
  0x64   : > { %1619 = vmatpush.msra.mxu3 %v2162_v33  ;;  %1360 = vmatpush.msra.mxu1 %v937_v46  ;;  %v3006_v48 = vsel %vm772_vm10, 1.0, %v2328_v2  ;;  %v518_v33 = vadd.s32 56, %v2452_v13 }
  0x65   : > { %1117 = vmatmul.f32.gmra.mxu1 %v2481_v21  ;;  %1182 = vmatmul.f32.gmra.mxu2 %v2949_v37 }
  0x66   : > { %1247 = vmatmul.f32.gmra.mxu3 %v833_v41  ;;  %1309 = vmatmul.f32.gmra.mxu0 %v2522_v40  ;;  %v2178_v40 = vld [vmem:[%s3443_s3 + $0x450] sm:$0xff]  ;;  %v934_v41 = vld [vmem:[%s3443_s3 + $0x138] sm:$0xff]  ;;  %v580_v46 = vand.u32 15, %v518_v33 }
  0x67   : > { %1682 = vmatpush.msra.mxu0 %v2180_v42  ;;  %1555 = vmatpush.msra.mxu2 %v2145_v47  ;;  %v2142_v42 = vld [vmem:[%s3443_s3 + $0x330] sm:$0xff]  ;;  %v2175_v47 = vld [vmem:[%s3443_s3 + $0x438] sm:$0xff] }
  0x68   : > { %1620 = vmatpush.msra.mxu3 %v2161_v58  ;;  %1361 = vmatpush.msra.mxu1 %v936_v61  ;;  %v837_v58 = vmul.f32 %v2708_v3, %v2565_v51  ;;  %vm774_vm11 = vcmp.le.s32.totalorder %v580_v46, 14  ;;  %v2141_v51 = vld [vmem:[%s3443_s3 + $0x328] sm:$0xff]  ;;  %v2155_v33 = vld [vmem:[%s3443_s3 + $0x398] sm:$0xff]  ;;  %v2154_v46 = vld [vmem:[%s3443_s3 + $0x390] sm:$0xff] }
  0x69   : > { %1683 = vmatpush.msra.mxu0 %v2179_v62  ;;  %1556 = vmatpush.msra.mxu2 %v2144_v0  ;;  %v2158_v62 = vld [vmem:[%s3443_s3 + $0x3b0] sm:$0xff]  ;;  %v2157_v61 = vld [vmem:[%s3443_s3 + $0x3a8] sm:$0xff] }
  0x6a   : > { %1621 = vmatpush.msra.mxu3 %v2160_v12  ;;  %1362 = vmatpush.msra.mxu1 %v935_v27  ;;  %v2174_v0 = vld [vmem:[%s3443_s3 + $0x430] sm:$0xff]  ;;  %v520_v12 = vadd.s32 72, %v2452_v13 }
  0x6b   : > { %1684 = vmatpush.msra.mxu0 %v2178_v40  ;;  %1557 = vmatpush.msra.mxu2 %v2143_v49  ;;  %v3045_v40 = vld [vmem:[#allocation2 + $0x51] sm:$0xff]  ;;  %v839_v49 = vmul.f32 %v2578_v54, %v2710_v4 }
  0x6c   : > { %1622 = vmatpush.msra.mxu3 %v2159_v39  ;;  %1363 = vmatpush.msra.mxu1 %v934_v41  ;;  %v594_v27 = vand.u32 15, %v520_v12  ;;  %v3087_v39 = vld [vmem:[#allocation2 + $0x61] sm:$0xff]  ;;  %v522_v41 = vadd.s32 88, %v2452_v13 }
  0x6d   : > { %1120 = vmatmul.f32.gmra.mxu1 %v2435_v8  ;;  %1185 = vmatmul.f32.gmra.mxu2 %v968_v59  ;;  %v3048_v59 = vsel %vm774_vm11, 1.0, %v2328_v2  ;;  %v3149_v12 = vld [vmem:[#allocation2] sm:$0xff] }
  0x6e   : > { %1250 = vmatmul.f32.gmra.mxu3 %v2741_v25  ;;  %1312 = vmatmul.f32.gmra.mxu0 %v2469_v17  ;;  %v2177_v25 = vld [vmem:[%s3443_s3 + $0x448] sm:$0xff]  ;;  %v2997_v17 = vld [vmem:[#allocation2 + $0x39] sm:$0xff]  ;;  %vm776_vm12 = vcmp.le.s32.totalorder %v594_v27, 14  ;;  %v2170_v27 = vld [vmem:[%s3443_s3 + $0x410] sm:$0xff] }
  0x6f   : > { %1685 = vmatpush.msra.mxu0 %v2177_v25  ;;  %1558 = vmatpush.msra.mxu2 %v2142_v42  ;;  %v2140_v25 = vld [vmem:[%s3443_s3 + $0x320] sm:$0xff]  ;;  %v930_v42 = vld [vmem:[%s3443_s3 + $0x118] sm:$0xff] }
  0x70   : > { %1623 = vmatpush.msra.mxu3 %v2158_v62  ;;  %1364 = vmatpush.msra.mxu1 %v933_v60  ;;  %v2138_v62 = vld [vmem:[%s3443_s3 + $0x310] sm:$0xff]  ;;  %v3135_v60 = vstv %s461_s7 }
  0x71   : > { %1686 = vmatpush.msra.mxu0 %v2176_v31  ;;  %1559 = vmatpush.msra.mxu2 %v2141_v51  ;;  %v3091_v31 = vsel %vm776_vm12, 1.0, %v2328_v2  ;;  %v2172_v2 = vld [vmem:[%s3443_s3 + $0x420] sm:$0xff]  ;;  %v3137_v51 = vld [vmem:[#allocation2 + $0x69] sm:$0xff] }
  0x72   : > { %1624 = vmatpush.msra.mxu3 %v2157_v61  ;;  %1365 = vmatpush.msra.mxu1 %v932_v20  ;;  %v841_v61 = vmul.f32 %v2715_v5, %v2580_v55  ;;  %v929_v55 = vld [vmem:[%s3443_s3 + $0x110] sm:$0xff] }
  0x73   : > { %1687 = vmatpush.msra.mxu0 %v2175_v47  ;;  %1560 = vmatpush.msra.mxu2 %v2140_v25  ;;  %v608_v47 = vand.u32 15, %v522_v41  ;;  %v2137_v25 = vld [vmem:[%s3443_s3 + $0x308] sm:$0xff]  ;;  %v843_v41 = vmul.f32 %v2585_v56, %v2717_v6 }
  0x74   : > { %v3204_v6 = vld [vmem:[#allocation2 + $0x81] sm:$0xff] }
  0x75   : > { %1123 = vmatmul.f32.gmra.mxu1 %v2438_v9  ;;  %1188 = vmatmul.f32.gmra.mxu2 %v2997_v17  ;;  %vm778_vm13 = vcmp.le.s32.totalorder %v608_v47, 14  ;;  %v927_v47 = vld [vmem:[%s3443_s3 + $0x100] sm:$0xff] }
  0x76   : > { %1253 = vmatmul.f32.gmra.mxu3 %v835_v22  ;;  %1315 = vmatmul.f32.gmra.mxu0 %v2473_v18  ;;  %v970_v18 = vmul.f32 %v3006_v48, %v3003_v23  ;;  %v2156_v22 = vld [vmem:[%s3443_s3 + $0x3a0] sm:$0xff]  ;;  %v3152_v20 = vsel %vm778_vm13, 1.0, %v3149_v12 }
  0x77   : > { %1688 = vmatpush.msra.mxu0 %v2174_v0  ;;  %1625 = vmatpush.msra.mxu3 %v2156_v22  ;;  %v2153_v22 = vld [vmem:[%s3443_s3 + $0x388] sm:$0xff] }
  0x79   : > { %1626 = vmatpush.msra.mxu3 %v2155_v33  ;;  %v2136_v33 = vld [vmem:[%s3443_s3 + $0x300] sm:$0xff] }
  0x7b   : > { %1627 = vmatpush.msra.mxu3 %v2154_v46 }
  0x7d   : > { %1126 = vmatmul.f32.gmra.mxu1 %v2487_v24  ;;  %1191 = vmatmul.f32.gmra.mxu2 %v970_v18  ;;  %v931_v18 = vld [vmem:[%s3443_s3 + $0x120] sm:$0xff] }
  0x7e   : > { %1256 = vmatmul.f32.gmra.mxu3 %v2859_v1  ;;  %1318 = vmatmul.f32.gmra.mxu0 %v2481_v21  ;;  %v3039_v21 = vld [vmem:[#allocation2 + $0x49] sm:$0xff] }
  0x7f   : > { %1366 = vmatpush.msra.mxu1 %v931_v18  ;;  %1628 = vmatpush.msra.mxu3 %v2153_v22  ;;  %v2282_v18 = vld [vmem:[#allocation2 + $0x58] sm:$0xff] }
  0x81   : > { %1367 = vmatpush.msra.mxu1 %v930_v42 }
  0x83   : > { %1368 = vmatpush.msra.mxu1 %v929_v55  ;;  %v2168_v55 = vld [vmem:[%s3443_s3 + $0x400] sm:$0xff] }
  0x85   : > { %1129 = vmatmul.f32.gmra.mxu1 %v2514_v35  ;;  %1194 = vmatmul.f32.gmra.mxu2 %v3039_v21 }
  0x86   : > { %1259 = vmatmul.f32.gmra.mxu3 %v837_v58  ;;  %1321 = vmatmul.f32.gmra.mxu0 %v2435_v8  ;;  %v972_v8 = vmul.f32 %v3048_v59, %v3045_v40  ;;  %v502_v58 = vld [vmem:[%s3129_s12] sm:$0xff] }
  0x87   : > { %v3142_v0 = vmul.f32 %v3135_v60, %v502_v58 }
  0x89   : > { %3464 = vst [vmem:[#allocation3_spill] sm:$0xff] %v3142_v0 }
  0x8a   : > { %507 = vst [vmem:[#allocation2 + $0x98] sm:$0xff] %v3142_v0  ;;  %v1453_v0 = vld [vmem:[#allocation2 + $0x30] sm:$0xff] }
  0x8d   : > { %1132 = vmatmul.f32.gmra.mxu1 %v2441_v10  ;;  %1197 = vmatmul.f32.gmra.mxu2 %v972_v8  ;;  %v3147_v8 = vld [vmem:[#allocation2 + $0x71] sm:$0xff] }
  0x8e   : > { %1262 = vmatmul.f32.gmra.mxu3 %v2652_v34  ;;  %1324 = vmatmul.f32.gmra.mxu0 %v2438_v9  ;;  %v2173_v9 = vld [vmem:[%s3443_s3 + $0x428] sm:$0xff]  ;;  %v3081_v34 = vld [vmem:[#allocation2 + $0x59] sm:$0xff] }
  0x8f   : > { %1689 = vmatpush.msra.mxu0 %v2173_v9  ;;  %v524_v9 = vadd.s32 104, %v2452_v13 }
  0x91   : > { %1690 = vmatpush.msra.mxu0 %v2172_v2  ;;  %v2152_v2 = vld [vmem:[%s3443_s3 + $0x380] sm:$0xff] }
  0x92   : > { %1629 = vmatpush.msra.mxu3 %v2152_v2 }
  0x95   : > { %1135 = vmatmul.f32.gmra.mxu1 %v2446_v11  ;;  %1200 = vmatmul.f32.gmra.mxu2 %v3081_v34  ;;  %v2139_v11 = vld [vmem:[%s3443_s3 + $0x318] sm:$0xff] }
  0x96   : > { %1265 = vmatmul.f32.gmra.mxu3 %v839_v49  ;;  %1327 = vmatmul.f32.gmra.mxu0 %v2487_v24  ;;  %v974_v24 = vmul.f32 %v3091_v31, %v3087_v39 }
  0x97   : > { %1561 = vmatpush.msra.mxu2 %v2139_v11  ;;  %v928_v11 = vld [vmem:[%s3443_s3 + $0x108] sm:$0xff] }
  0x98   : > { %1369 = vmatpush.msra.mxu1 %v928_v11  ;;  %v3221_v11 = vld [vmem:[#allocation2 + $0x89] sm:$0xff] }
  0x99   : > { %1562 = vmatpush.msra.mxu2 %v2138_v62 }
  0x9a   : > { %1370 = vmatpush.msra.mxu1 %v927_v47 }
  0x9b   : > { %1563 = vmatpush.msra.mxu2 %v2137_v25 }
  0x9d   : > { %1138 = vmatmul.f32.gmra.mxu1 %v2494_v26  ;;  %1203 = vmatmul.f32.gmra.mxu2 %v974_v24  ;;  %v622_v24 = vand.u32 15, %v524_v9 }
  0x9e   : > { %1268 = vmatmul.f32.gmra.mxu3 %v2804_v16  ;;  %1330 = vmatmul.f32.gmra.mxu0 %v2514_v35  ;;  %v2171_v35 = vld [vmem:[%s3443_s3 + $0x418] sm:$0xff] }
  0x9f   : > { %1691 = vmatpush.msra.mxu0 %v2171_v35  ;;  %1564 = vmatpush.msra.mxu2 %v2136_v33  ;;  %vm780_vm14 = vcmp.le.s32.totalorder %v622_v24, 14  ;;  %v2283_v35 = vld [vmem:[#allocation2 + $0x78] sm:$0xff]  ;;  %v845_v33 = vmul.f32 %v2728_v15, %v2587_v57 }
  0xa0   : > { %v3234_v24 = vld [vmem:[#allocation2 + $0x91] sm:$0xff] }
  0xa1   : > { %1692 = vmatpush.msra.mxu0 %v2170_v27  ;;  %v526_v27 = vadd.s32 120, %v2452_v13 }
  0xa5   : > { %1141 = vmatmul.f32.gmra.mxu1 %v2518_v38  ;;  %1206 = vmatmul.f32.gmra.mxu2 %v3137_v51 }
  0xa6   : > { %1271 = vmatmul.f32.gmra.mxu3 %v841_v61  ;;  %1333 = vmatmul.f32.gmra.mxu0 %v2441_v10  ;;  %v976_v10 = vmul.f32 %v3152_v20, %v3147_v8  ;;  %v3201_v61 = vsel %vm780_vm14, 1.0, %v3149_v12 }
  0xa7   : > { %v978_v25 = vmul.f32 %v3201_v61, %v3204_v6 }
  0xab   : > { %v3170_v49 = vpop.f32.mrf.mxu1 }
  0xad   : > { %1144 = vmatmul.f32.gmra.mxu1 %v2455_v14  ;;  %1209 = vmatmul.f32.gmra.mxu2 %v976_v10  ;;  %v2169_v14 = vld [vmem:[%s3443_s3 + $0x408] sm:$0xff] }
  0xae   : > { %1274 = vmatmul.f32.gmra.mxu3 %v2648_v32  ;;  %1336 = vmatmul.f32.gmra.mxu0 %v2282_v18  ;;  %v3186_v32 = vld [vmem:[#allocation2 + $0x79] sm:$0xff]  ;;  %v636_v18 = vand.u32 15, %v526_v27 }
  0xaf   : > { %1693 = vmatpush.msra.mxu0 %v2169_v14  ;;  %v2285_v27 = vld [vmem:[#allocation2 + $0x80] sm:$0xff] }
  0xb0   : > { %v1047_v46 = vpop.f32.mrf.mxu0  ;;  %vm782_vm15 = vcmp.le.s32.totalorder %v636_v18, 14  ;;  %v2286_v18 = vld [vmem:[#allocation2 + $0x28] sm:$0xff] }
  0xb1   : > { %1694 = vmatpush.msra.mxu0 %v2168_v55  ;;  %v3232_v2 = vsel %vm782_vm15, 1.0, %v3149_v12 }
  0xb2   : > { %v3190_v42 = vpop.f32.mrf.mxu2  ;;  %v3192_v62 = vpop.f32.mrf.mxu3  ;;  %3466 = vst [vmem:[#allocation5_spill] sm:$0xff] %v3232_v2  ;;  %v980_v57 = vmul.f32 %v3232_v2, %v3234_v24 }
  0xb5   : > { %1147 = vmatmul.f32.gmra.mxu1 %v2283_v35  ;;  %1212 = vmatmul.f32.gmra.mxu2 %v3186_v32  ;;  %v3198_v58 = vpop.f32.mrf.mxu1 }
  0xb6   : > { %1277 = vmatmul.f32.gmra.mxu3 %v843_v41  ;;  %1339 = vmatmul.f32.gmra.mxu0 %v2494_v26 }
  0xba   : > { %v3211_v22 = vpop.f32.mrf.mxu2 }
  0xbb   : > { %v3214_v10 = vpop.f32.mrf.mxu3 }
  0xbd   : > { %1150 = vmatmul.f32.gmra.mxu1 %v2500_v28  ;;  %1215 = vmatmul.f32.gmra.mxu2 %v978_v25  ;;  %v1050_v26 = vpop.f32.mrf.mxu0  ;;  %v863_v25 = vld [vmem:[#allocation2 + $0x9] sm:$0xff] }
  0xbe   : > { %1280 = vmatmul.f32.gmra.mxu3 %v2806_v19  ;;  %1342 = vmatmul.f32.gmra.mxu0 %v2518_v38  ;;  %v3219_v9 = vpop.f32.mrf.mxu1  ;;  %v2284_v38 = vld [vmem:[#allocation2 + $0x70] sm:$0xff] }
  0xc4   : > { %v3225_v13 = vpop.f32.mrf.mxu2 }
  0xc5   : > { %1153 = vmatmul.f32.gmra.mxu1 %v2538_v44  ;;  %1218 = vmatmul.f32.gmra.mxu2 %v3221_v11  ;;  %v3229_v28 = vpop.f32.mrf.mxu3 }
  0xc6   : > { %3465 = vst [vmem:[#allocation4_spill] sm:$0xff] %v3229_v28  ;;  %1283 = vmatmul.f32.gmra.mxu3 %v845_v33  ;;  %1345 = vmatmul.f32.gmra.mxu0 %v2284_v38  ;;  %v864_v33 = vld [vmem:[#allocation2 + $0x11] sm:$0xff] }
  0xc7   : > { %v1053_v14 = vpop.f32.mrf.mxu0 }
  0xc8   : > { %v3236_v41 = vpop.f32.mrf.mxu1 }
  0xcd   : > { %1156 = vmatmul.f32.gmra.mxu1 %v2601_v63  ;;  %1221 = vmatmul.f32.gmra.mxu2 %v980_v57 }
  0xce   : > { %1286 = vmatmul.f32.gmra.mxu3 %v2654_v36  ;;  %1348 = vmatmul.f32.gmra.mxu0 %v2283_v35  ;;  %v3242_v44 = vpop.f32.mrf.mxu2  ;;  %v880_v35 = vmul.f32 %v2883_v29, %v864_v33 }
  0xcf   : > { %v3244_v12 = vpop.f32.mrf.mxu3 }
  0xd0   : > { %3467 = vst [vmem:[#allocation6_spill] sm:$0xff] %v3244_v12 }
  0xd1   : > { %v1056_v47 = vpop.f32.mrf.mxu0 }
  0xd2   : > { %v1112_v55 = vpop.f32.mrf.mxu1 }
  0xd3   : > { %v1113_v63 = vadd.f32 %v1112_v55, %v1047_v46 }
  0xd5   : > { %1371 = vmatmul.f32.vlgmr.msra.gmra.mxu1 %v863_v25  ;;  %1565 = vmatmul.f32.vlgmr.msra.gmra.mxu2 %v2569_v52  ;;  %v1422_v52 = vld [vmem:[#allocation2 + $0x37] sm:$0xff] }
  0xd6   : > { %1351 = vmatmul.f32.gmra.mxu0 %v2285_v27  ;;  %1630 = vmatmul.f32.vlgmr.msra.gmra.mxu3 %v2286_v18  ;;  %v1438_v18 = vmul.f32 %v2779_v53, %v1422_v52  ;;  %v882_v53 = vmul.f32 %v2965_v45, %v2885_v30  ;;  %v1423_v52 = vld [vmem:[#allocation2 + $0x3f] sm:$0xff] }
  0xd8   : > { %v1177_v38 = vpop.f32.mrf.mxu2 }
  0xd9   : > { %v1178_v57 = vadd.f32 %v1177_v38, %v1113_v63  ;;  %v1242_v36 = vpop.f32.mrf.mxu3  ;;  %v1485_v63 = vmul.f32 %v2883_v29, %v2958_v43 }
  0xda   : > { %v1115_v2 = vpop.f32.mrf.mxu1 }
  0xdb   : > { %v3248_v28 = vadd.f32 %v1242_v36, %v1178_v57  ;;  %v3250_v12 = vpop.f32.mrf.mxu0  ;;  %v1116_v25 = vadd.f32 %v1115_v2, %v1050_v26  ;;  %v1454_v36 = vld [vmem:[#allocation2 + $0x38] sm:$0xff] }
  0xdd   : > { %1374 = vmatmul.f32.gmra.mxu1 %v880_v35  ;;  %1568 = vmatmul.f32.gmra.mxu2 %v2859_v1 }
  0xde   : > { %1633 = vmatmul.f32.gmra.mxu3 %v1453_v0  ;;  %1695 = vmatmul.f32.vlgmr.msra.gmra.mxu0 %v2949_v37 }
  0xe0   : > { %v1180_v46 = vpop.f32.mrf.mxu2 }
  0xe1   : > { %v1181_v55 = vadd.f32 %v1180_v46, %v1116_v25  ;;  %v1245_v27 = vpop.f32.mrf.mxu3  ;;  %v1455_v46 = vld [vmem:[#allocation2 + $0x40] sm:$0xff] }
  0xe2   : > { %v1118_v33 = vpop.f32.mrf.mxu1 }
  0xe3   : > { %v3257_v38 = vadd.f32 %v1245_v27, %v1181_v55  ;;  %v3259_v57 = vpop.f32.mrf.mxu0  ;;  %v1119_v1 = vadd.f32 %v1118_v33, %v1053_v14  ;;  %v1487_v33 = vmul.f32 %v2965_v45, %v3003_v23 }
  0xe5   : > { %1377 = vmatmul.f32.gmra.mxu1 %v2861_v7  ;;  %1571 = vmatmul.f32.gmra.mxu2 %v1438_v18  ;;  %v1440_v18 = vmul.f32 %v2563_v50, %v2710_v4  ;;  %v884_v50 = vmul.f32 %v3006_v48, %v2958_v43 }
  0xe6   : > { %1636 = vmatmul.f32.gmra.mxu3 %v1454_v36  ;;  %1698 = vmatmul.f32.gmra.mxu0 %v1485_v63 }
  0xe8   : > { %v1183_v0 = vpop.f32.mrf.mxu2 }
  0xe9   : > { %v1184_v26 = vadd.f32 %v1183_v0, %v1119_v1  ;;  %v1248_v2 = vpop.f32.mrf.mxu3  ;;  %v2287_v1 = vld [vmem:[#allocation2 + $0x48] sm:$0xff] }
  0xea   : > { %v1121_v35 = vpop.f32.mrf.mxu1 }
  0xeb   : > { %v3264_v29 = vadd.f32 %v1248_v2, %v1184_v26  ;;  %v3266_v25 = vpop.f32.mrf.mxu0  ;;  %v1122_v7 = vadd.f32 %v1121_v35, %v1056_v47  ;;  %v1457_v35 = vld [vmem:[#allocation2 + $0x50] sm:$0xff] }
  0xed   : > { %1380 = vmatmul.f32.gmra.mxu1 %v882_v53  ;;  %1574 = vmatmul.f32.gmra.mxu2 %v1423_v52 }
  0xee   : > { %1639 = vmatmul.f32.gmra.mxu3 %v1455_v46  ;;  %1701 = vmatmul.f32.gmra.mxu0 %v2997_v17 }
  0xf0   : > { %v1186_v14 = vpop.f32.mrf.mxu2 }
  0xf1   : > { %v1187_v55 = vadd.f32 %v1186_v14, %v1122_v7  ;;  %v1251_v27 = vpop.f32.mrf.mxu3 }
  0xf2   : > { %v1124_v30 = vpop.f32.mrf.mxu1 }
  0xf3   : > { %v3273_v63 = vadd.f32 %v1251_v27, %v1187_v55  ;;  %v3275_v36 = vpop.f32.mrf.mxu0  ;;  %v1125_v47 = vadd.f32 %v1124_v30, %v3170_v49  ;;  %v1489_v55 = vmul.f32 %v3006_v48, %v3045_v40  ;;  %v1427_v48 = vld [vmem:[#allocation2 + $0x5f] sm:$0xff] }
  0xf5   : > { %1383 = vmatmul.f32.gmra.mxu1 %v2949_v37  ;;  %1577 = vmatmul.f32.gmra.mxu2 %v1440_v18  ;;  %v1426_v37 = vld [vmem:[#allocation2 + $0x57] sm:$0xff] }
  0xf6   : > { %1642 = vmatmul.f32.gmra.mxu3 %v2287_v1  ;;  %1704 = vmatmul.f32.gmra.mxu0 %v1487_v33  ;;  %v1442_v7 = vmul.f32 %v2708_v3, %v1426_v37  ;;  %v886_v3 = vmul.f32 %v3048_v59, %v3003_v23 }
  0xf8   : > { %v1189_v0 = vpop.f32.mrf.mxu2 }
  0xf9   : > { %v1190_v4 = vadd.f32 %v1189_v0, %v1125_v47  ;;  %v1254_v26 = vpop.f32.mrf.mxu3 }
  0xfa   : > { %v1127_v2 = vpop.f32.mrf.mxu1 }
  0xfb   : > { %v3281_v45 = vadd.f32 %v1254_v26, %v1190_v4  ;;  %v3283_v53 = vpop.f32.mrf.mxu0  ;;  %v1128_v49 = vadd.f32 %v1127_v2, %v3198_v58  ;;  %v1459_v4 = vld [vmem:[#allocation2 + $0x60] sm:$0xff] }
  0xfd   : > { %1386 = vmatmul.f32.gmra.mxu1 %v884_v50  ;;  %1580 = vmatmul.f32.gmra.mxu2 %v2804_v16  ;;  %v1458_v16 = vld [vmem:[#allocation2 + $0x58] sm:$0xff] }
  0xfe   : > { %1645 = vmatmul.f32.gmra.mxu3 %v1457_v35  ;;  %1707 = vmatmul.f32.gmra.mxu0 %v3039_v21 }
 0x100   : > { %v1192_v52 = vpop.f32.mrf.mxu2 }
 0x101   : > { %v1193_v46 = vadd.f32 %v1192_v52, %v1128_v49  ;;  %v1257_v43 = vpop.f32.mrf.mxu3  ;;  %v1491_v49 = vmul.f32 %v3048_v59, %v3087_v39 }
 0x102   : > { %v1130_v14 = vpop.f32.mrf.mxu1 }
 0x103   : > { %v3291_v27 = vadd.f32 %v1257_v43, %v1193_v46  ;;  %v3293_v18 = vpop.f32.mrf.mxu0  ;;  %v1131_v58 = vadd.f32 %v1130_v14, %v3219_v9  ;;  %v1460_v43 = vld [vmem:[#allocation2 + $0x68] sm:$0xff] }
 0x105   : > { %1389 = vmatmul.f32.gmra.mxu1 %v2997_v17  ;;  %1583 = vmatmul.f32.gmra.mxu2 %v1442_v7  ;;  %v1428_v17 = vld [vmem:[#allocation2 + $0x67] sm:$0xff] }
 0x106   : > { %1648 = vmatmul.f32.gmra.mxu3 %v1458_v16  ;;  %1710 = vmatmul.f32.gmra.mxu0 %v1489_v55  ;;  %v1444_v35 = vmul.f32 %v2578_v54, %v1428_v17  ;;  %v888_v54 = vmul.f32 %v3091_v31, %v3045_v40 }
 0x108   : > { %v1195_v30 = vpop.f32.mrf.mxu2 }
 0x109   : > { %v1196_v33 = vadd.f32 %v1195_v30, %v1131_v58  ;;  %v1260_v1 = vpop.f32.mrf.mxu3  ;;  %v1461_v30 = vld [vmem:[#allocation2 + $0x70] sm:$0xff] }
 0x10a   : > { %v1133_v47 = vpop.f32.mrf.mxu1 }
 0x10b   : > { %v3299_v0 = vadd.f32 %v1260_v1, %v1196_v33  ;;  %v3301_v50 = vpop.f32.mrf.mxu0  ;;  %v1134_v9 = vadd.f32 %v1133_v47, %v3236_v41 }
 0x10d   : > { %1392 = vmatmul.f32.gmra.mxu1 %v886_v3  ;;  %1586 = vmatmul.f32.gmra.mxu2 %v1427_v48 }
 0x10e   : > { %1651 = vmatmul.f32.gmra.mxu3 %v1459_v4  ;;  %1713 = vmatmul.f32.gmra.mxu0 %v3081_v34  ;;  %v1493_v4 = vmul.f32 %v3091_v31, %v3147_v8  ;;  %v890_v31 = vmul.f32 %v3152_v20, %v3087_v39 }
 0x110   : > { %v1198_v26 = vpop.f32.mrf.mxu2 }
 0x111   : > { %v1199_v2 = vadd.f32 %v1198_v26, %v1134_v9  ;;  %v1263_v23 = vpop.f32.mrf.mxu3  ;;  %v1462_v26 = vld [vmem:[#allocation2 + $0x78] sm:$0xff] }
 0x112   : > { %v1136_v37 = vpop.f32.mrf.mxu1 }
 0x113   : > { %v3308_v52 = vadd.f32 %v1263_v23, %v1199_v2  ;;  %v3310_v46 = vpop.f32.mrf.mxu0  ;;  %v1137_v41 = vadd.f32 %v1136_v37, %v3190_v42  ;;  %v503_v2 = vld [vmem:[%s3129_s12 + $0x8] sm:$0xff] }
 0x115   : > { %1395 = vmatmul.f32.gmra.mxu1 %v3039_v21  ;;  %1589 = vmatmul.f32.gmra.mxu2 %v1444_v35  ;;  %v1430_v21 = vld [vmem:[#allocation2 + $0x77] sm:$0xff] }
 0x116   : > { %1654 = vmatmul.f32.gmra.mxu3 %v1460_v43  ;;  %1716 = vmatmul.f32.gmra.mxu0 %v1491_v49  ;;  %v1446_v47 = vmul.f32 %v2715_v5, %v1430_v21 }
 0x118   : > { %v1201_v7 = vpop.f32.mrf.mxu2 }
 0x119   : > { %v1202_v14 = vadd.f32 %v1201_v7, %v1137_v41  ;;  %v1266_v55 = vpop.f32.mrf.mxu3  ;;  %v1463_v7 = vld [vmem:[#allocation2 + $0x80] sm:$0xff] }
 0x11a   : > { %v1139_v16 = vpop.f32.mrf.mxu1 }
 0x11b   : > { %v1267_v59 = vadd.f32 %v1266_v55, %v1202_v14  ;;  %v1331_v58 = vpop.f32.mrf.mxu0  ;;  %v1140_v42 = vadd.f32 %v1139_v16, %v3211_v22 }
 0x11d   : > { %v3316_v3 = vadd.f32 %v1331_v58, %v1267_v59  ;;  %1398 = vmatmul.f32.gmra.mxu1 %v888_v54  ;;  %1592 = vmatmul.f32.gmra.mxu2 %v2806_v19  ;;  %v3326_v19 = vmul.f32 %v3135_v60, %v503_v2  ;;  %v1431_v60 = vld [vmem:[#allocation2 + $0x7f] sm:$0xff]  ;;  %v1495_v58 = vmul.f32 %v3152_v20, %v3204_v6  ;;  %v1433_v20 = vld [vmem:[#allocation2 + $0x8f] sm:$0xff] }
 0x11e   : > { %1657 = vmatmul.f32.gmra.mxu3 %v1461_v30  ;;  %1719 = vmatmul.f32.gmra.mxu0 %v3137_v51 }
 0x11f   : > { %508 = vst [vmem:[#allocation2 + $0xa0] sm:$0xff] %v3326_v19 }
 0x120   : > { %v1204_v33 = vpop.f32.mrf.mxu2 }
 0x121   : > { %v1205_v40 = vadd.f32 %v1204_v33, %v1140_v42  ;;  %v1269_v1 = vpop.f32.mrf.mxu3  ;;  %v1464_v42 = vld [vmem:[#allocation2 + $0x88] sm:$0xff] }
 0x122   : > { %v1142_v48 = vpop.f32.mrf.mxu1 }
 0x123   : > { %v1270_v17 = vadd.f32 %v1269_v1, %v1205_v40  ;;  %v1334_v9 = vpop.f32.mrf.mxu0  ;;  %v1143_v5 = vadd.f32 %v1142_v48, %v3225_v13 }
 0x125   : > { %v3328_v23 = vadd.f32 %v1334_v9, %v1270_v17  ;;  %1401 = vmatmul.f32.gmra.mxu1 %v3081_v34  ;;  %1595 = vmatmul.f32.gmra.mxu2 %v1446_v47  ;;  %v1432_v34 = vld [vmem:[#allocation2 + $0x87] sm:$0xff]  ;;  %v1465_v9 = vld [vmem:[#allocation2 + $0x90] sm:$0xff] }
 0x126   : > { %1660 = vmatmul.f32.gmra.mxu3 %v1462_v26  ;;  %1722 = vmatmul.f32.gmra.mxu0 %v1493_v4  ;;  %v1448_v16 = vmul.f32 %v2585_v56, %v1432_v34  ;;  %v892_v56 = vmul.f32 %v3201_v61, %v3147_v8 }
 0x128   : > { %v1207_v22 = vpop.f32.mrf.mxu2 }
 0x129   : > { %v1208_v35 = vadd.f32 %v1207_v22, %v1143_v5  ;;  %v1272_v37 = vpop.f32.mrf.mxu3 }
 0x12a   : > { %v1145_v49 = vpop.f32.mrf.mxu1 }
 0x12b   : > { %v1273_v43 = vadd.f32 %v1272_v37, %v1208_v35  ;;  %v1337_v41 = vpop.f32.mrf.mxu0  ;;  %v1146_v13 = vadd.f32 %v1145_v49, %v3242_v44  ;;  %v1497_v35 = vmul.f32 %v3201_v61, %v3234_v24  ;;  %v1435_v61 = vld [vmem:[#allocation2 + $0x9f] sm:$0xff] }
 0x12d   : > { %v3335_v54 = vadd.f32 %v1337_v41, %v1273_v43  ;;  %1404 = vmatmul.f32.gmra.mxu1 %v890_v31  ;;  %1598 = vmatmul.f32.gmra.mxu2 %v1431_v60 }
 0x12e   : > { %1663 = vmatmul.f32.gmra.mxu3 %v1463_v7  ;;  %1725 = vmatmul.f32.gmra.mxu0 %v3186_v32  ;;  %v3470_v7 = vld [vmem:[#allocation5_spill] sm:$0xff] }
 0x130   : > { %v1210_v14 = vpop.f32.mrf.mxu2 }
 0x131   : > { %v1211_v55 = vadd.f32 %v1210_v14, %v1146_v13  ;;  %v1275_v39 = vpop.f32.mrf.mxu3 }
 0x132   : > { %v1148_v59 = vpop.f32.mrf.mxu1 }
 0x133   : > { %v1276_v30 = vadd.f32 %v1275_v39, %v1211_v55  ;;  %v1340_v21 = vpop.f32.mrf.mxu0  ;;  %v1149_v44 = vadd.f32 %v1148_v59, %v3192_v62  ;;  %v1482_v39 = vld [vmem:[#allocation2 + $0x99] sm:$0xff] }
 0x135   : > { %v3342_v33 = vadd.f32 %v1340_v21, %v1276_v30  ;;  %1407 = vmatmul.f32.gmra.mxu1 %v3137_v51  ;;  %1601 = vmatmul.f32.gmra.mxu2 %v1448_v16  ;;  %v1434_v51 = vld [vmem:[#allocation2 + $0x97] sm:$0xff] }
 0x136   : > { %1666 = vmatmul.f32.gmra.mxu3 %v1464_v42  ;;  %1728 = vmatmul.f32.gmra.mxu0 %v1495_v58  ;;  %v1450_v22 = vmul.f32 %v2728_v15, %v1434_v51  ;;  %v894_v15 = vmul.f32 %v3470_v7, %v3204_v6  ;;  %v1483_v58 = vld [vmem:[#allocation2 + $0xa1] sm:$0xff] }
 0x138   : > { %v1213_v40 = vpop.f32.mrf.mxu2 }
 0x139   : > { %v1214_v1 = vadd.f32 %v1213_v40, %v1149_v44  ;;  %v1278_v47 = vpop.f32.mrf.mxu3  ;;  %v1499_v44 = vmul.f32 %v3470_v7, %v1483_v58  ;;  %v1314_v7 = vadd.f32 %v3266_v25, %v3264_v29 }
 0x13a   : > { %v1151_v48 = vpop.f32.mrf.mxu1 }
 0x13b   : > { %v1279_v4 = vadd.f32 %v1278_v47, %v1214_v1  ;;  %v1343_v17 = vpop.f32.mrf.mxu0  ;;  %v1152_v62 = vadd.f32 %v1151_v48, %v3214_v10  ;;  %v3469_v10 = vld [vmem:[#allocation4_spill] sm:$0xff] }
 0x13d   : > { %v3348_v26 = vadd.f32 %v1343_v17, %v1279_v4  ;;  %1410 = vmatmul.f32.gmra.mxu1 %v892_v56  ;;  %1604 = vmatmul.f32.gmra.mxu2 %v1433_v20 }
 0x13e   : > { %1669 = vmatmul.f32.gmra.mxu3 %v1465_v9  ;;  %1731 = vmatmul.f32.gmra.mxu0 %v3221_v11  ;;  %v3468_v11 = vld [vmem:[#allocation3_spill] sm:$0xff] }
 0x140   : > { %v1216_v2 = vpop.f32.mrf.mxu2 }
 0x141   : > { %v1217_v5 = vadd.f32 %v1216_v2, %v1152_v62  ;;  %v1281_v8 = vpop.f32.mrf.mxu3 }
 0x142   : > { %v1154_v31 = vpop.f32.mrf.mxu1 }
 0x143   : > { %v1282_v37 = vadd.f32 %v1281_v8, %v1217_v5  ;;  %v1346_v49 = vpop.f32.mrf.mxu0  ;;  %v1155_v43 = vadd.f32 %v1154_v31, %v3469_v10  ;;  %v1311_v8 = vadd.f32 %v3259_v57, %v3257_v38 }
 0x145   : > { %v3355_v60 = vadd.f32 %v1346_v49, %v1282_v37  ;;  %1413 = vmatmul.f32.gmra.mxu1 %v3186_v32  ;;  %1607 = vmatmul.f32.gmra.mxu2 %v1450_v22  ;;  %v3471_v32 = vld [vmem:[#allocation6_spill] sm:$0xff] }
 0x146   : > { %1672 = vmatmul.f32.gmra.mxu3 %v3468_v11  ;;  %1734 = vmatmul.f32.gmra.mxu0 %v1497_v35 }
 0x148   : > { %v1219_v41 = vpop.f32.mrf.mxu2 }
 0x149   : > { %v1220_v34 = vadd.f32 %v1219_v41, %v1155_v43  ;;  %v1284_v13 = vpop.f32.mrf.mxu3 }
 0x14a   : > { %v1157_v14 = vpop.f32.mrf.mxu1 }
 0x14b   : > { %v1285_v24 = vadd.f32 %v1284_v13, %v1220_v34  ;;  %v1349_v55 = vpop.f32.mrf.mxu0  ;;  %v1158_v59 = vadd.f32 %v1157_v14, %v3471_v32 }
 0x14d   : > { %v3362_v16 = vadd.f32 %v1349_v55, %v1285_v24  ;;  %1416 = vmatmul.f32.gmra.mxu1 %v894_v15  ;;  %1610 = vmatmul.f32.gmra.mxu2 %v1435_v61 }
 0x14e   : > { %1675 = vmatmul.f32.gmra.mxu3 %v3326_v19  ;;  %1737 = vmatmul.f32.gmra.mxu0 %v1482_v39  ;;  %v1308_v19 = vadd.f32 %v3250_v12, %v3248_v28 }
 0x150   : > { %v1222_v30 = vpop.f32.mrf.mxu2 }
 0x151   : > { %v1223_v21 = vadd.f32 %v1222_v30, %v1158_v59  ;;  %v1287_v6 = vpop.f32.mrf.mxu3  ;;  %v1317_v59 = vadd.f32 %v3275_v36, %v3273_v63 }
 0x152   : > { %v1372_v42 = vpop.f32.mrf.mxu1 }
 0x153   : > { %v1288_v40 = vadd.f32 %v1287_v6, %v1223_v21  ;;  %v1352_v56 = vpop.f32.mrf.mxu0  ;;  %v1373_v9 = vadd.f32 %v1372_v42, %v1308_v19 }
 0x155   : > { %v3367_v1 = vadd.f32 %v1352_v56, %v1288_v40 }
 0x156   : > { %1740 = vmatmul.f32.gmra.mxu0 %v1499_v44 }
 0x158   : > { %v1566_v47 = vpop.f32.mrf.mxu2 }
 0x159   : > { %v1631_v48 = vpop.f32.mrf.mxu3 }
 0x15a   : > { %v1632_v20 = vadd.f32 %v1631_v48, %v1566_v47  ;;  %v1375_v4 = vpop.f32.mrf.mxu1  ;;  %v1320_v48 = vadd.f32 %v3283_v53, %v3281_v45 }
 0x15b   : > { %v1696_v17 = vpop.f32.mrf.mxu0  ;;  %v1376_v31 = vadd.f32 %v1375_v4, %v1311_v8  ;;  %v1323_v8 = vadd.f32 %v3293_v18, %v3291_v27 }
 0x15c   : > { %v1697_v51 = vadd.f32 %v1696_v17, %v1632_v20 }
 0x15e   : > { %v1744_v62 = vadd.f32 %v1697_v51, %v1373_v9 }
 0x160   : > { %1760 = vst [vmem:[%s3375_s20] sm:$0xff] %v1744_v62  ;;  %v1569_v2 = vpop.f32.mrf.mxu2  ;;  %v1798_v49 = vmul.f32 %v1744_v62, %v1744_v62 }
 0x161   : > { %v1634_v5 = vpop.f32.mrf.mxu3 }
 0x162   : > { %v1635_v28 = vadd.f32 %v1634_v5, %v1569_v2  ;;  %v1378_v12 = vpop.f32.mrf.mxu1 }
 0x163   : > { %v1699_v22 = vpop.f32.mrf.mxu0  ;;  %v1379_v57 = vadd.f32 %v1378_v12, %v1314_v7 }
 0x164   : > { %v1700_v35 = vadd.f32 %v1699_v22, %v1635_v28 }
 0x166   : > { %v1745_v37 = vadd.f32 %v1700_v35, %v1376_v31 }
 0x168   : > { %1761 = vst [vmem:[%s3375_s20 + $0x8] sm:$0xff] %v1745_v37  ;;  %v1776_v11 = vadd.f32 %v1745_v37, %v1744_v62  ;;  %v1799_v10 = vmul.f32 %v1745_v37, %v1745_v37  ;;  %v1572_v43 = vpop.f32.mrf.mxu2 }
 0x169   : > { %v1637_v41 = vpop.f32.mrf.mxu3 }
 0x16a   : > { %v1814_v15 = vadd.f32 %v1799_v10, %v1798_v49  ;;  %v1638_v34 = vadd.f32 %v1637_v41, %v1572_v43  ;;  %v1381_v13 = vpop.f32.mrf.mxu1  ;;  %v1326_v43 = vadd.f32 %v3301_v50, %v3299_v0 }
 0x16b   : > { %v1702_v38 = vpop.f32.mrf.mxu0  ;;  %v1382_v25 = vadd.f32 %v1381_v13, %v1317_v59 }
 0x16c   : > { %v1703_v14 = vadd.f32 %v1702_v38, %v1638_v34 }
 0x16e   : > { %v1746_v61 = vadd.f32 %v1703_v14, %v1379_v57 }
 0x170   : > { %1762 = vst [vmem:[%s3375_s20 + $0x10] sm:$0xff] %v1746_v61  ;;  %v1777_v24 = vadd.f32 %v1776_v11, %v1746_v61  ;;  %v1800_v55 = vmul.f32 %v1746_v61, %v1746_v61  ;;  %v1575_v39 = vpop.f32.mrf.mxu2 }
 0x171   : > { %v1640_v32 = vpop.f32.mrf.mxu3 }
 0x172   : > { %v1815_v58 = vadd.f32 %v1814_v15, %v1800_v55  ;;  %v1641_v30 = vadd.f32 %v1640_v32, %v1575_v39  ;;  %v1384_v21 = vpop.f32.mrf.mxu1 }
 0x173   : > { %v1705_v29 = vpop.f32.mrf.mxu0  ;;  %v1385_v36 = vadd.f32 %v1384_v21, %v1320_v48 }
 0x174   : > { %v1706_v6 = vadd.f32 %v1705_v29, %v1641_v30 }
 0x176   : > { %v1747_v42 = vadd.f32 %v1706_v6, %v1382_v25 }
 0x178   : > { %1763 = vst [vmem:[%s3375_s20 + $0x18] sm:$0xff] %v1747_v42  ;;  %v1778_v44 = vadd.f32 %v1777_v24, %v1747_v42  ;;  %v1801_v40 = vmul.f32 %v1747_v42, %v1747_v42  ;;  %v1578_v56 = vpop.f32.mrf.mxu2  ;;  %v1329_v24 = vadd.f32 %v3310_v46, %v3308_v52 }
 0x179   : > { %v1643_v47 = vpop.f32.mrf.mxu3 }
 0x17a   : > { %v1816_v19 = vadd.f32 %v1815_v58, %v1801_v40  ;;  %v1644_v20 = vadd.f32 %v1643_v47, %v1578_v56  ;;  %v1387_v4 = vpop.f32.mrf.mxu1 }
 0x17b   : > { %v1708_v63 = vpop.f32.mrf.mxu0  ;;  %v1388_v53 = vadd.f32 %v1387_v4, %v1323_v8 }
 0x17c   : > { %v1709_v17 = vadd.f32 %v1708_v63, %v1644_v20 }
 0x17e   : > { %v1748_v9 = vadd.f32 %v1709_v17, %v1385_v36 }
 0x180   : > { %1764 = vst [vmem:[%s3375_s20 + $0x20] sm:$0xff] %v1748_v9  ;;  %v1779_v51 = vadd.f32 %v1778_v44, %v1748_v9  ;;  %v1802_v62 = vmul.f32 %v1748_v9, %v1748_v9  ;;  %v1581_v2 = vpop.f32.mrf.mxu2 }
 0x181   : > { %v1646_v5 = vpop.f32.mrf.mxu3 }
 0x182   : > { %v1817_v28 = vadd.f32 %v1816_v19, %v1802_v62  ;;  %v1647_v12 = vadd.f32 %v1646_v5, %v1581_v2  ;;  %v1390_v22 = vpop.f32.mrf.mxu1 }
 0x183   : > { %v1711_v45 = vpop.f32.mrf.mxu0  ;;  %v1391_v18 = vadd.f32 %v1390_v22, %v1326_v43 }
 0x184   : > { %v1712_v31 = vadd.f32 %v1711_v45, %v1647_v12 }
 0x186   : > { %v1749_v35 = vadd.f32 %v1712_v31, %v1388_v53 }
 0x188   : > { %1765 = vst [vmem:[%s3375_s20 + $0x28] sm:$0xff] %v1749_v35  ;;  %v1780_v37 = vadd.f32 %v1779_v51, %v1749_v35  ;;  %v1803_v49 = vmul.f32 %v1749_v35, %v1749_v35  ;;  %v1584_v11 = vpop.f32.mrf.mxu2 }
 0x189   : > { %v1649_v10 = vpop.f32.mrf.mxu3 }
 0x18a   : > { %v1818_v41 = vadd.f32 %v1817_v28, %v1803_v49  ;;  %v1650_v7 = vadd.f32 %v1649_v10, %v1584_v11  ;;  %v1393_v15 = vpop.f32.mrf.mxu1 }
 0x18b   : > { %v1714_v27 = vpop.f32.mrf.mxu0  ;;  %v1394_v50 = vadd.f32 %v1393_v15, %v1329_v24 }
 0x18c   : > { %v1715_v34 = vadd.f32 %v1714_v27, %v1650_v7 }
 0x18e   : > { %v1750_v13 = vadd.f32 %v1715_v34, %v1391_v18 }
 0x190   : > { %1766 = vst [vmem:[%s3375_s20 + $0x30] sm:$0xff] %v1750_v13  ;;  %v1781_v38 = vadd.f32 %v1780_v37, %v1750_v13  ;;  %v1804_v57 = vmul.f32 %v1750_v13, %v1750_v13  ;;  %v1587_v14 = vpop.f32.mrf.mxu2 }
 0x191   : > { %v1652_v61 = vpop.f32.mrf.mxu3 }
 0x192   : > { %v1819_v55 = vadd.f32 %v1818_v41, %v1804_v57  ;;  %v1653_v39 = vadd.f32 %v1652_v61, %v1587_v14  ;;  %v1396_v32 = vpop.f32.mrf.mxu1 }
 0x193   : > { %v1717_v0 = vpop.f32.mrf.mxu0  ;;  %v1397_v52 = vadd.f32 %v1396_v32, %v3316_v3 }
 0x194   : > { %v1718_v59 = vadd.f32 %v1717_v0, %v1653_v39 }
 0x196   : > { %v1751_v58 = vadd.f32 %v1718_v59, %v1394_v50 }
 0x198   : > { %1767 = vst [vmem:[%s3375_s20 + $0x38] sm:$0xff] %v1751_v58  ;;  %v1782_v30 = vadd.f32 %v1781_v38, %v1751_v58  ;;  %v1805_v21 = vmul.f32 %v1751_v58, %v1751_v58  ;;  %v1590_v29 = vpop.f32.mrf.mxu2 }
 0x199   : > { %v1655_v25 = vpop.f32.mrf.mxu3 }
 0x19a   : > { %v1820_v6 = vadd.f32 %v1819_v55, %v1805_v21  ;;  %v1656_v42 = vadd.f32 %v1655_v25, %v1590_v29  ;;  %v1399_v44 = vpop.f32.mrf.mxu1 }
 0x19b   : > { %v1720_v40 = vpop.f32.mrf.mxu0  ;;  %v1400_v9 = vadd.f32 %v1399_v44, %v3328_v23 }
 0x19c   : > { %v1721_v46 = vadd.f32 %v1720_v40, %v1656_v42 }
 0x19e   : > { %v1752_v56 = vadd.f32 %v1721_v46, %v1397_v52 }
 0x1a0   : > { %1768 = vst [vmem:[%s3375_s20 + $0x40] sm:$0xff] %v1752_v56  ;;  %v1783_v47 = vadd.f32 %v1782_v30, %v1752_v56  ;;  %v1806_v48 = vmul.f32 %v1752_v56, %v1752_v56  ;;  %v1593_v19 = vpop.f32.mrf.mxu2 }
 0x1a1   : > { %v1658_v20 = vpop.f32.mrf.mxu3 }
 0x1a2   : > { %v1821_v4 = vadd.f32 %v1820_v6, %v1806_v48  ;;  %v1659_v63 = vadd.f32 %v1658_v20, %v1593_v19  ;;  %v1402_v36 = vpop.f32.mrf.mxu1 }
 0x1a3   : > { %v1723_v17 = vpop.f32.mrf.mxu0  ;;  %v1403_v53 = vadd.f32 %v1402_v36, %v3335_v54 }
 0x1a4   : > { %v1724_v51 = vadd.f32 %v1723_v17, %v1659_v63 }
 0x1a6   : > { %v1753_v62 = vadd.f32 %v1724_v51, %v1400_v9 }
 0x1a8   : > { %1769 = vst [vmem:[%s3375_s20 + $0x48] sm:$0xff] %v1753_v62  ;;  %v1784_v2 = vadd.f32 %v1783_v47, %v1753_v62  ;;  %v1807_v5 = vmul.f32 %v1753_v62, %v1753_v62  ;;  %v1596_v3 = vpop.f32.mrf.mxu2 }
 0x1a9   : > { %v1661_v8 = vpop.f32.mrf.mxu3 }
 0x1aa   : > { %v1822_v28 = vadd.f32 %v1821_v4, %v1807_v5  ;;  %v1662_v12 = vadd.f32 %v1661_v8, %v1596_v3  ;;  %v1405_v22 = vpop.f32.mrf.mxu1 }
 0x1ab   : > { %v1726_v45 = vpop.f32.mrf.mxu0  ;;  %v1406_v15 = vadd.f32 %v1405_v22, %v3342_v33 }
 0x1ac   : > { %v1727_v31 = vadd.f32 %v1726_v45, %v1662_v12 }
 0x1ae   : > { %v1754_v35 = vadd.f32 %v1727_v31, %v1403_v53 }
 0x1b0   : > { %1770 = vst [vmem:[%s3375_s20 + $0x50] sm:$0xff] %v1754_v35  ;;  %v1785_v37 = vadd.f32 %v1784_v2, %v1754_v35  ;;  %v1808_v49 = vmul.f32 %v1754_v35, %v1754_v35  ;;  %v1599_v23 = vpop.f32.mrf.mxu2 }
 0x1b1   : > { %v1664_v11 = vpop.f32.mrf.mxu3 }
 0x1b2   : > { %v1823_v10 = vadd.f32 %v1822_v28, %v1808_v49  ;;  %v1665_v43 = vadd.f32 %v1664_v11, %v1599_v23  ;;  %v1408_v41 = vpop.f32.mrf.mxu1 }
 0x1b3   : > { %v1729_v7 = vpop.f32.mrf.mxu0  ;;  %v1409_v24 = vadd.f32 %v1408_v41, %v3348_v26 }
 0x1b4   : > { %v1730_v27 = vadd.f32 %v1729_v7, %v1665_v43 }
 0x1b6   : > { %v1755_v18 = vadd.f32 %v1730_v27, %v1406_v15 }
 0x1b8   : > { %1771 = vst [vmem:[%s3375_s20 + $0x58] sm:$0xff] %v1755_v18  ;;  %v1786_v34 = vadd.f32 %v1785_v37, %v1755_v18  ;;  %v1809_v13 = vmul.f32 %v1755_v18, %v1755_v18  ;;  %v1602_v54 = vpop.f32.mrf.mxu2 }
 0x1b9   : > { %v1667_v38 = vpop.f32.mrf.mxu3 }
 0x1ba   : > { %v1824_v57 = vadd.f32 %v1823_v10, %v1809_v13  ;;  %v1668_v14 = vadd.f32 %v1667_v38, %v1602_v54  ;;  %v1411_v39 = vpop.f32.mrf.mxu1 }
 0x1bb   : > { %v1732_v61 = vpop.f32.mrf.mxu0  ;;  %v1412_v29 = vadd.f32 %v1411_v39, %v3355_v60 }
 0x1bc   : > { %v1733_v55 = vadd.f32 %v1732_v61, %v1668_v14 }
 0x1be   : > { %v1756_v32 = vadd.f32 %v1733_v55, %v1409_v24 }
 0x1c0   : > { %1772 = vst [vmem:[%s3375_s20 + $0x60] sm:$0xff] %v1756_v32  ;;  %v1787_v0 = vadd.f32 %v1786_v34, %v1756_v32  ;;  %v1810_v50 = vmul.f32 %v1756_v32, %v1756_v32  ;;  %v1605_v33 = vpop.f32.mrf.mxu2 }
 0x1c1   : > { %v1670_v59 = vpop.f32.mrf.mxu3 }
 0x1c2   : > { %v1825_v58 = vadd.f32 %v1824_v57, %v1810_v50  ;;  %v1671_v30 = vadd.f32 %v1670_v59, %v1605_v33  ;;  %v1414_v42 = vpop.f32.mrf.mxu1 }
 0x1c3   : > { %v1735_v21 = vpop.f32.mrf.mxu0  ;;  %v1415_v48 = vadd.f32 %v1414_v42, %v3362_v16 }
 0x1c4   : > { %v1736_v25 = vadd.f32 %v1735_v21, %v1671_v30 }
 0x1c6   : > { %v1757_v6 = vadd.f32 %v1736_v25, %v1412_v29 }
 0x1c8   : > { %1773 = vst [vmem:[%s3375_s20 + $0x68] sm:$0xff] %v1757_v6  ;;  %v1788_v26 = vadd.f32 %v1787_v0, %v1757_v6  ;;  %v1811_v44 = vmul.f32 %v1757_v6, %v1757_v6  ;;  %v1608_v40 = vpop.f32.mrf.mxu2 }
 0x1c9   : > { %v1673_v52 = vpop.f32.mrf.mxu3 }
 0x1ca   : > { %v1826_v46 = vadd.f32 %v1825_v58, %v1811_v44  ;;  %v1674_v56 = vadd.f32 %v1673_v52, %v1608_v40  ;;  %v1417_v36 = vpop.f32.mrf.mxu1 }
 0x1cb   : > { %v1738_v47 = vpop.f32.mrf.mxu0  ;;  %v1418_v2 = vadd.f32 %v1417_v36, %v3367_v1 }
 0x1cc   : > { %v1739_v19 = vadd.f32 %v1738_v47, %v1674_v56 }
 0x1ce   : > { %v1758_v20 = vadd.f32 %v1739_v19, %v1415_v48 }
 0x1d0   : > { %1774 = vst [vmem:[%s3375_s20 + $0x70] sm:$0xff] %v1758_v20  ;;  %v1789_v4 = vadd.f32 %v1788_v26, %v1758_v20  ;;  %v1812_v60 = vmul.f32 %v1758_v20, %v1758_v20  ;;  %v1611_v63 = vpop.f32.mrf.mxu2 }
 0x1d1   : > { %v1676_v17 = vpop.f32.mrf.mxu3 }
 0x1d2   : > { %v1827_v9 = vadd.f32 %v1826_v46, %v1812_v60  ;;  %v1677_v51 = vadd.f32 %v1676_v17, %v1611_v63 }
 0x1d3   : > { %v1741_v62 = vpop.f32.mrf.mxu0 }
 0x1d4   : > { %v1742_v5 = vadd.f32 %v1741_v62, %v1677_v51 }
 0x1d6   : > { %v1759_v3 = vadd.f32 %v1742_v5, %v1418_v2 }
 0x1d8   : > { %1775 = vst [vmem:[%s3375_s20 + $0x78] sm:$0xff] %v1759_v3  ;;  %v1790_v16 = vadd.f32 %v1789_v4, %v1759_v3  ;;  %v1813_v8 = vmul.f32 %v1759_v3, %v1759_v3 }
 0x1da   : > { %v1791_v28 = vrot.slane %v1790_v16, 4  ;;  %v1828_v12 = vadd.f32 %v1827_v9, %v1813_v8 }
 0x1dc   : > { %v1792_v22 = vadd.f32 %v1791_v28, %v1790_v16  ;;  %v1829_v45 = vrot.slane %v1828_v12, 4 }
 0x1de   : > { %v1793_v53 = vrot.slane %v1792_v22, 2  ;;  %v1830_v31 = vadd.f32 %v1829_v45, %v1828_v12 }
 0x1e0   : > { %v1794_v35 = vadd.f32 %v1793_v53, %v1792_v22  ;;  %v1831_v37 = vrot.slane %v1830_v31, 2 }
 0x1e2   : > { %v1795_v49 = vrot.slane %v1794_v35, 1  ;;  %v1832_v23 = vadd.f32 %v1831_v37, %v1830_v31 }
 0x1e4   : > { %v1796_v1 = vadd.f32 %v1795_v49, %v1794_v35  ;;  %v1833_v11 = vrot.slane %v1832_v23, 1 }
 0x1e6   : > { %1797 = vst [vmem:[%s448_s10] sm:$0x1] %v1796_v1  ;;  %v1834_v10 = vadd.f32 %v1833_v11, %v1832_v23 }
 0x1e8   : > { %1835 = vst [vmem:[%s455_s11] sm:$0x1] %v1834_v10 }
 0x1e9 PF: > { %s17_s25 = sadd.s32 1, %s2326_s25   ;;  %s3472_s21 = smov %s2318_s23 }
 0x1ea   : > { %p14_p13 = scmp.ge.s32.totalorder %s17_s25, 6   ;;  %s3473_s22 = smov %s2322_s24 }
 0x1eb   : > { %s3474_s23 = smov %s3477_s26  ;;  %s3475_s24 = smov %s3481_s27 }
 0x1ec   :  { %16 = sbr.rel (!%p14_p13) target bundleno = 3 (0x3), region = 98 }

// kernel: conv_block_forward.4
= control target key start
LH: loop header
LB: loop body
LE: loop exit
PB: predicated region body
PF: predicated region fallthrough
CT: control target
= control target key end

     0   :  { %s2473_s24 = smov 0   ;;  %s2475_s25 = smov 0   ;;  %s3641_s0 = inlined_call_operand.vmem [shape: f32[2,256,128], index: 0, kind: input, shape index: {}, may-alias: {0,1,2}]   ;;  %s3642_s1 = inlined_call_operand.vmem [shape: f32[2,256,128], index: 1, kind: input, shape index: {}, may-alias: {0,1,2}]   ;;  %s3643_s2 = inlined_call_operand.vmem [shape: f32[2,256,128], index: 2, kind: input, shape index: {}, may-alias: {0,1,2}]   ;;  %s3644_s3 = inlined_call_operand.vmem [shape: f32[2,128], index: 3, kind: input, shape index: {}]   ;;  %s3645_s4 = inlined_call_operand.vmem [shape: f32[3,384,128], index: 4, kind: input, shape index: {}]   ;;  %s3646_s5 = inlined_call_operand.vmem [shape: f32[2,256,128], index: 5, kind: output, shape index: {0}]   ;;  %s3647_s6 = inlined_call_operand.vmem [shape: f32[2,2,1,128], index: 6, kind: output, shape index: {1}]   ;;  %s3648_s7 = inlined_call_operand.vmem [shape: f32[2,2,1,128], index: 7, kind: output, shape index: {2}]  }
   0x1   :  { %s2477_s26 = smov 0   ;;  %s2479_s27 = smov 0  }
   0x2   :  { %s2481_s28 = smov 0  }
   0x3 LB: > { %s27_s29 = sadd.s32 1, %s2422_s26  ;;  %s30_s30 = sadd.s32 1, %s2426_s27  ;;  %s2430_s28 = sphi %s2481_s28, %s18_s28   ;;  %s2426_s27 = sphi %s2479_s27, %s3681_s27   ;;  %s2422_s26 = sphi %s2477_s26, %s3680_s26   ;;  %s2418_s25 = sphi %s2475_s25, %s3679_s25   ;;  %s2414_s24 = sphi %s2473_s24, %s3678_s24  }
   0x4   : > { %p28_p0 = scmp.ge.s32.totalorder %s27_s29, 2  ;;  %p2153_p1 = scmp.ge.s32.totalorder %s2430_s28, 1 }
   0x5   : > { %p333_p2 = scmp.lt.s32.totalorder %s2430_s28, 5 }
   0x6   : > { %s3683_s29 = smov (%p28_p0, %s27_s29), 0  ;;  %s3685_s30 = smov (!%p28_p0, %s30_s30), %s2426_s27 }
   0x7   : > { %p334_p3 = pnand %p2153_p1, %p333_p2  ;;  %p32_p4 = scmp.ge.s32.totalorder %s3685_s30, 2 }
   0x9   : > { %s3687_s30 = smov (%p32_p4, %s3685_s30), 0  ;;  %337 = sbr.rel (%p334_p3) target bundleno = 489 (0x1e9), region = 40 }
   0xe   : > { %v2202_v0 = vld [vmem:[%s3645_s4 + $0x1f8] sm:$0xff]  ;;  %v2201_v1 = vld [vmem:[%s3645_s4 + $0x1f0] sm:$0xff]  ;;  %s2154_s12 = sshll.u32 %s2414_s24, 4  ;;  %p414_p5 = scmp.lt.s32.totalorder %s2418_s25, 1  ;;  %v2432_v2 = vmov 0.0   ;;  %v2200_v3 = vld [vmem:[%s3645_s4 + $0x1e8] sm:$0xff]  ;;  %v609_v4 = vlaneseq }
   0xf   : > { %2291 = vmatpush.msra.mxu1 %v2202_v0  ;;  %2292 = vmatpush.msra.mxu2 %v2202_v0  ;;  %p416_p6 = scmp.lt.s32.totalorder %s2154_s12, 31  ;;  %489 = vst [vmem:[#allocation2] sm:$0xff] %v2432_v2  ;;  %v2199_v5 = vld [vmem:[%s3645_s4 + $0x1e0] sm:$0xff]  ;;  %s2157_s18 = sshll.u32 %s2414_s24, 3  ;;  %v2198_v7 = vld [vmem:[%s3645_s4 + $0x1d8] sm:$0xff]  ;;  %v2197_v8 = vld [vmem:[%s3645_s4 + $0x1d0] sm:$0xff] }
  0x10   : > { %2293 = vmatpush.msra.mxu3 %v2202_v0  ;;  %1129 = vmatpush.msra.mxu0 %v2202_v0  ;;  %s3689_s25 = smov (!%p414_p5, %s2418_s25), 1  ;;  %608 = vst [vmem:[#allocation2 + $0xa8] sm:$0xff] %v2432_v2  ;;  %v2530_v6 = vld [vmem:[%s3644_s3] ss:$0 sm:$0xff]  ;;  %v2549_v9 = vld [vmem:[%s3644_s3 + $0x1] ss:$0 sm:$0xff] }
  0x11   : > { %2294 = vmatpush.msra.mxu1 %v2201_v1  ;;  %2295 = vmatpush.msra.mxu2 %v2201_v1  ;;  %s3691_s12 = smov (!%p416_p6, %s2154_s12), 31  ;;  %s2523_s17 = sshll.u32 %s3689_s25, 5  ;;  %v2551_v10 = vshrl.u32 %v609_v4, 7  ;;  %v2196_v20 = vld [vmem:[%s3645_s4 + $0x1c8] sm:$0xff]  ;;  %v2195_v28 = vld [vmem:[%s3645_s4 + $0x1c0] sm:$0xff]  ;;  %v2194_v32 = vld [vmem:[%s3645_s4 + $0x1b8] sm:$0xff] }
  0x12   : > { %2296 = vmatpush.msra.mxu3 %v2201_v1  ;;  %1130 = vmatpush.msra.mxu0 %v2201_v1  ;;  %s419_s19 = sadd.s32 %s2523_s17, %s3691_s12  ;;  %s2158_s16 = sadd.s32 4294967295, %s2157_s18  ;;  %v2193_v37 = vld [vmem:[%s3645_s4 + $0x1b0] sm:$0xff]  ;;  %v2382_v50 = vld [vmem:[%s3644_s3] ss:$0 sm:$0xff]  ;;  %v2192_v56 = vld [vmem:[%s3645_s4 + $0x1a8] sm:$0xff] }
  0x13   : > { %2297 = vmatpush.msra.mxu1 %v2200_v3  ;;  %2298 = vmatpush.msra.mxu2 %v2200_v3  ;;  %s2535_s8 = sshll.u32 %s419_s19, 3  ;;  %p425_p7 = scmp.gt.s32.totalorder %s2158_s16, 0  ;;  %v2576_v26 = vadd.s32 32, %v2551_v10  ;;  %v2611_v39 = vadd.s32 64, %v2551_v10  ;;  %v2614_v40 = vadd.s32 96, %v2551_v10 }
  0x14   : > { %2299 = vmatpush.msra.mxu3 %v2200_v3  ;;  %1131 = vmatpush.msra.mxu0 %v2200_v3  ;;  %s2544_s13 = scalar_lea.vmem %s3641_s0, %s2535_s8  ;;  %p483_p8 = scmp.gt.s32.totalorder %s2414_s24, 0  ;;  %v2383_v62 = vld [vmem:[%s3644_s3 + $0x1] ss:$0 sm:$0xff] }
  0x15   : > { %2300 = vmatpush.msra.mxu1 %v2199_v5  ;;  %2301 = vmatpush.msra.mxu2 %v2199_v5  ;;  %v510_v11 = vld [vmem:[%s2544_s13 + $0x18] sm:$0xff]  ;;  %v511_v12 = vld [vmem:[%s2544_s13 + $0x20] sm:$0xff]  ;;  %s3693_s16 = smov (!%p425_p7, %s2158_s16), 0  ;;  %v508_v41 = vld [vmem:[%s2544_s13 + $0x8] sm:$0xff]  ;;  %v658_v43 = vand.u32 15, %v2576_v26  ;;  %v686_v57 = vand.u32 15, %v2611_v39 }
  0x16   : > { %2302 = vmatpush.msra.mxu3 %v2199_v5  ;;  %1132 = vmatpush.msra.mxu0 %v2199_v5  ;;  %v514_v13 = vld [vmem:[%s2544_s13 + $0x38] sm:$0xff]  ;;  %v528_v14 = vmul.f32 %v2530_v6, %v510_v11  ;;  %v529_v15 = vmul.f32 %v2530_v6, %v511_v12  ;;  %v515_v16 = vld [vmem:[%s2544_s13 + $0x40] sm:$0xff]  ;;  %s2159_s23 = sshll.u32 %s3693_s16, 1  ;;  %v526_v45 = vmul.f32 %v2530_v6, %v508_v41  ;;  %v509_v47 = vld [vmem:[%s2544_s13 + $0x10] sm:$0xff]  ;;  %v714_v61 = vand.u32 15, %v2614_v40  ;;  %p471_p12 = scmp.lt.s32.totalorder %s2414_s24, 1 }
  0x17   : > { %2303 = vmatpush.msra.mxu1 %v2198_v7  ;;  %2304 = vmatpush.msra.mxu2 %v2198_v7  ;;  %v532_v17 = vmul.f32 %v2530_v6, %v514_v13  ;;  %v518_v18 = vld [vmem:[%s2544_s13 + $0x58] sm:$0xff]  ;;  %v519_v19 = vld [vmem:[%s2544_s13 + $0x60] sm:$0xff]  ;;  %v533_v21 = vmul.f32 %v2530_v6, %v515_v16  ;;  %p2601_p9 = scmp.lt.s32.totalorder %s2159_s23, 31  ;;  %v512_v49 = vld [vmem:[%s2544_s13 + $0x28] sm:$0xff]  ;;  %v527_v51 = vmul.f32 %v2530_v6, %v509_v47  ;;  %vm2680_vm0 = vcmp.ge.s32.totalorder %v658_v43, 1 }
  0x18   : > { %2305 = vmatpush.msra.mxu3 %v2198_v7  ;;  %1133 = vmatpush.msra.mxu0 %v2198_v7  ;;  %v536_v22 = vmul.f32 %v2530_v6, %v518_v18  ;;  %v537_v23 = vmul.f32 %v2530_v6, %v519_v19  ;;  %v546_v24 = vadd.f32 %v2549_v9, %v528_v14  ;;  %v507_v36 = vld [vmem:[%s2544_s13] sm:$0xff]  ;;  %s2627_s15 = scalar_select %p483_p8, 1, 0  ;;  %v516_v54 = vld [vmem:[%s2544_s13 + $0x48] sm:$0xff]  ;;  %vm2684_vm1 = vcmp.ge.s32.totalorder %v686_v57, 1  ;;  %v513_v26 = vld [vmem:[%s2544_s13 + $0x30] sm:$0xff] }
  0x19   : > { %2306 = vmatpush.msra.mxu1 %v2197_v8  ;;  %2307 = vmatpush.msra.mxu2 %v2197_v8  ;;  %v547_v25 = vadd.f32 %v2549_v9, %v529_v15  ;;  %v2579_v27 = vadd.f32 %v2549_v9, %v532_v17  ;;  %v2585_v29 = vadd.f32 %v2549_v9, %v533_v21  ;;  %s3695_s23 = smov (!%p2601_p9, %s2159_s23), 31  ;;  %v520_v55 = vld [vmem:[%s2544_s13 + $0x68] sm:$0xff]  ;;  %v2191_v3 = vld [vmem:[%s3645_s4 + $0x1a0] sm:$0xff]  ;;  %v2190_v15 = vld [vmem:[%s3645_s4 + $0x198] sm:$0xff]  ;;  %vm2692_vm2 = vcmp.ge.s32.totalorder %v714_v61, 1  ;;  %s3701_s24 = smov (!%p471_p12, %s2414_s24), 1 }
  0x1a   : > { %2308 = vmatpush.msra.mxu3 %v2197_v8  ;;  %1134 = vmatpush.msra.mxu0 %v2197_v8  ;;  %v554_v30 = vadd.f32 %v2549_v9, %v536_v22  ;;  %v2589_v31 = vadd.f32 %v2549_v9, %v537_v23  ;;  %v2596_v33 = vmax.f32 %v546_v24, 0.0  ;;  %v525_v42 = vmul.f32 %v2530_v6, %v507_v36  ;;  %s433_s16 = sadd.s32 %s2523_s17, %s3695_s23  ;;  %s485_s20 = scvt.s32.f32 %s2627_s15  ;;  %v2189_v24 = vld [vmem:[%s3645_s4 + $0x190] sm:$0xff]  ;;  %v2188_v40 = vld [vmem:[%s3645_s4 + $0x188] sm:$0xff]  ;;  %v1025_v17 = vld [vmem:[%s3645_s4 + $0xf8] sm:$0xff] }
  0x1b   : > { %2309 = vmatpush.msra.mxu1 %v2196_v20  ;;  %2310 = vmatpush.msra.mxu2 %v2196_v20  ;;  %v2598_v34 = vmax.f32 %v547_v25, 0.0  ;;  %v566_v35 = vmax.f32 %v2579_v27, 0.0  ;;  %v567_v38 = vmax.f32 %v2585_v29, 0.0  ;;  %v544_v52 = vadd.f32 %v2549_v9, %v526_v45  ;;  %s2161_s23 = sshll.u32 %s433_s16, 3  ;;  %v521_v39 = vld [vmem:[%s2544_s13 + $0x70] sm:$0xff]  ;;  %v2255_v27 = vld [vmem:[%s3645_s4 + $0x3a0] sm:$0xff]  ;;  %s3576_s15 = scalar_lea.vmem %s3646_s5, %s2535_s8 }
  0x1c   : > { %2311 = vmatpush.msra.mxu3 %v2196_v20  ;;  %1135 = vmatpush.msra.mxu0 %v2196_v20  ;;  %578 = vst [vmem:[#allocation2 + $0x30] sm:$0xff] %v2596_v33  ;;  %v570_v44 = vmax.f32 %v554_v30, 0.0  ;;  %v571_v46 = vmax.f32 %v2589_v31, 0.0  ;;  %v543_v48 = vadd.f32 %v2549_v9, %v525_v42  ;;  %v530_v53 = vmul.f32 %v2530_v6, %v512_v49  ;;  %s435_s11 = scalar_lea.vmem %s3642_s1, %s2161_s23  ;;  %v2217_v16 = vld [vmem:[%s3645_s4 + $0x270] sm:$0xff]  ;;  %v2238_v29 = vld [vmem:[%s3645_s4 + $0x318] sm:$0xff]  ;;  %s2169_s8 = sshll.u32 %s3689_s25, 1 }
  0x1d   : > { %2312 = vmatpush.msra.mxu1 %v2195_v28  ;;  %2313 = vmatpush.msra.mxu2 %v2195_v28  ;;  %579 = vst [vmem:[#allocation2 + $0x38] sm:$0xff] %v2598_v34  ;;  %v534_v59 = vmul.f32 %v2530_v6, %v516_v54  ;;  %v538_v60 = vmul.f32 %v2530_v6, %v520_v55  ;;  %v2661_v0 = vmax.f32 %v544_v52, 0.0  ;;  %v490_v4 = vld [vmem:[%s435_s11] sm:$0xff]  ;;  %v491_v5 = vld [vmem:[%s435_s11 + $0x8] sm:$0xff]  ;;  %v630_v23 = vand.u32 15, %v2551_v10  ;;  %s2290_s11 = sadd.s32 8, %s2157_s18  ;;  %s474_s22 = sadd.s32 %s2169_s8, %s3701_s24 }
  0x1e   : > { %2314 = vmatpush.msra.mxu3 %v2195_v28  ;;  %1136 = vmatpush.msra.mxu0 %v2195_v28  ;;  %582 = vst [vmem:[#allocation2 + $0x50] sm:$0xff] %v566_v35  ;;  %v2649_v58 = vmax.f32 %v543_v48, 0.0  ;;  %v545_v63 = vadd.f32 %v2549_v9, %v527_v51  ;;  %v548_v1 = vadd.f32 %v2549_v9, %v530_v53  ;;  %v502_v25 = vstv %s485_s20  ;;  %v517_v28 = vld [vmem:[%s2544_s13 + $0x50] sm:$0xff]  ;;  %p443_p10 = scmp.lt.s32.totalorder %s2290_s11, 15 }
  0x1f   : > { %2315 = vmatpush.msra.mxu1 %v2194_v32  ;;  %2316 = vmatpush.msra.mxu2 %v2194_v32  ;;  %583 = vst [vmem:[#allocation2 + $0x58] sm:$0xff] %v567_v38  ;;  %v552_v7 = vadd.f32 %v2549_v9, %v534_v59  ;;  %v2670_v8 = vadd.f32 %v2549_v9, %v538_v60  ;;  %v2707_v30 = vsel %vm2680_vm0, 1.0, %v2432_v2  ;;  %v2720_v41 = vsel %vm2684_vm1, 1.0, %v2432_v2  ;;  %s487_s14 = scalar_select %p471_p12, 1, 0 }
  0x20   : > { %2317 = vmatpush.msra.mxu3 %v2194_v32  ;;  %1137 = vmatpush.msra.mxu0 %v2194_v32  ;;  %586 = vst [vmem:[#allocation2 + $0x70] sm:$0xff] %v570_v44  ;;  %v494_v11 = vmul.f32 %v2382_v50, %v490_v4  ;;  %v495_v12 = vmul.f32 %v2382_v50, %v491_v5  ;;  %v2672_v13 = vmax.f32 %v545_v63, 0.0  ;;  %v2675_v14 = vmax.f32 %v548_v1, 0.0  ;;  %v2187_v50 = vld [vmem:[%s3645_s4 + $0x180] sm:$0xff]  ;;  %v1009_v63 = vld [vmem:[%s3645_s4 + $0x78] sm:$0xff]  ;;  %v2233_v5 = vld [vmem:[%s3645_s4 + $0x2f0] sm:$0xff] }
  0x21   : > { %2318 = vmatpush.msra.mxu1 %v2193_v37  ;;  %2319 = vmatpush.msra.mxu2 %v2193_v37  ;;  %587 = vst [vmem:[#allocation2 + $0x78] sm:$0xff] %v571_v46  ;;  %v2689_v18 = vmax.f32 %v552_v7, 0.0  ;;  %v572_v19 = vmax.f32 %v2670_v8, 0.0  ;;  %v2727_v43 = vsel %vm2692_vm2, 1.0, %v2432_v2  ;;  %v535_v44 = vmul.f32 %v2530_v6, %v517_v28  ;;  %v1008_v7 = vld [vmem:[%s3645_s4 + $0x70] sm:$0xff]  ;;  %s3697_s11 = smov (!%p443_p10, %s2290_s11), 15 }
  0x22   : > { %2320 = vmatpush.msra.mxu3 %v2193_v37  ;;  %1138 = vmatpush.msra.mxu0 %v2193_v37  ;;  %575 = vst [vmem:[#allocation2 + $0x18] sm:$0xff] %v2649_v58  ;;  %v498_v21 = vadd.f32 %v2383_v62, %v494_v11  ;;  %v499_v22 = vadd.f32 %v2383_v62, %v495_v12  ;;  %vm2738_vm3 = vcmp.ge.s32.totalorder %v630_v23, 1  ;;  %v2234_v62 = vld [vmem:[%s3645_s4 + $0x2f8] sm:$0xff]  ;;  %v616_v11 = vadd.s32 48, %v2551_v10  ;;  %v1007_v23 = vld [vmem:[%s3645_s4 + $0x68] sm:$0xff]  ;;  %v1006_v28 = vld [vmem:[%s3645_s4 + $0x60] sm:$0xff] }
  0x23   : > { %2321 = vmatpush.msra.mxu1 %v2192_v56  ;;  %2322 = vmatpush.msra.mxu2 %v2192_v56  ;;  %576 = vst [vmem:[#allocation2 + $0x20] sm:$0xff] %v2661_v0  ;;  %v531_v37 = vmul.f32 %v2530_v6, %v513_v26  ;;  %v553_v52 = vadd.f32 %v2549_v9, %v535_v44  ;;  %v2760_v57 = vsel %vm2738_vm3, 1.0, %v2432_v2  ;;  %v620_v12 = vadd.s32 80, %v2551_v10  ;;  %v2231_v26 = vld [vmem:[%s3645_s4 + $0x2e0] sm:$0xff]  ;;  %s2163_s19 = sshll.u32 %s3697_s11, 1 }
  0x24   : > { %2323 = vmatpush.msra.mxu3 %v2192_v56  ;;  %1139 = vmatpush.msra.mxu0 %v2192_v56  ;;  %577 = vst [vmem:[#allocation2 + $0x28] sm:$0xff] %v2672_v13  ;;  %v2709_v31 = vld [vmem:[#allocation2 + $0x37] sm:$0xff]  ;;  %v500_v32 = vmax.f32 %v498_v21, 0.0  ;;  %v501_v36 = vmax.f32 %v499_v22, 0.0  ;;  %v539_v53 = vmul.f32 %v2530_v6, %v521_v39  ;;  %v624_v20 = vadd.s32 112, %v2551_v10  ;;  %v2232_v22 = vld [vmem:[%s3645_s4 + $0x2e8] sm:$0xff] }
  0x25   : > { %2324 = vmatpush.msra.mxu1 %v2191_v3  ;;  %2325 = vmatpush.msra.mxu2 %v2191_v3  ;;  %580 = vst [vmem:[#allocation2 + $0x40] sm:$0xff] %v2675_v14  ;;  %v549_v49 = vadd.f32 %v2549_v9, %v531_v37  ;;  %v1048_v51 = vmul.f32 %v2707_v30, %v2709_v31  ;;  %v2765_v60 = vmax.f32 %v553_v52, 0.0  ;;  %v700_v37 = vand.u32 15, %v620_v12  ;;  %p448_p11 = scmp.lt.s32.totalorder %s2163_s19, 31  ;;  %v2214_v52 = vld [vmem:[%s3645_s4 + $0x258] sm:$0xff]  ;;  %v1003_v12 = vld [vmem:[%s3645_s4 + $0x48] sm:$0xff] }
  0x26   : > { %2326 = vmatpush.msra.mxu3 %v2191_v3  ;;  %1140 = vmatpush.msra.mxu0 %v2191_v3  ;;  %584 = vst [vmem:[#allocation2 + $0x60] sm:$0xff] %v2689_v18  ;;  %v2722_v42 = vld [vmem:[#allocation2 + $0x57] sm:$0xff]  ;;  %v2734_v46 = vmul.f32 %v502_v25, %v500_v32  ;;  %v2736_v47 = vmul.f32 %v502_v25, %v501_v36  ;;  %v672_v36 = vand.u32 15, %v616_v11  ;;  %v612_v11 = vadd.s32 16, %v2551_v10 }
  0x27   : > { %2327 = vmatpush.msra.mxu1 %v2190_v15  ;;  %2328 = vmatpush.msra.mxu2 %v2190_v15  ;;  %588 = vst [vmem:[#allocation2 + $0x80] sm:$0xff] %v572_v19  ;;  %v1052_v54 = vmul.f32 %v2720_v41, %v2722_v42  ;;  %v2755_v56 = vmax.f32 %v549_v49, 0.0  ;;  %v2768_v61 = vadd.f32 %v2549_v9, %v539_v53  ;;  %v2218_v3 = vld [vmem:[%s3645_s4 + $0x278] sm:$0xff]  ;;  %v2229_v53 = vld [vmem:[%s3645_s4 + $0x2d0] sm:$0xff]  ;;  %vm2864_vm5 = vcmp.ge.s32.totalorder %v700_v37, 1  ;;  %s3699_s19 = smov (!%p448_p11, %s2163_s19), 31 }
  0x28   : > { %2329 = vmatpush.msra.mxu3 %v2190_v15  ;;  %1141 = vmatpush.msra.mxu0 %v2190_v15  ;;  %v2732_v45 = vld [vmem:[#allocation2 + $0x77] sm:$0xff]  ;;  %506 = vst [vmem:[#allocation2 + $0x10] sm:$0xff] %v2736_v47  ;;  %vm2860_vm4 = vcmp.ge.s32.totalorder %v672_v36, 1  ;;  %s451_s23 = sadd.s32 %s2523_s17, %s3699_s19  ;;  %v644_v36 = vand.u32 15, %v612_v11  ;;  %v2211_v37 = vld [vmem:[%s3645_s4 + $0x240] sm:$0xff]  ;;  %s475_s19 = scalar_lea.vmem %s3647_s6, %s474_s22 }
  0x29   : > { %2330 = vmatpush.msra.mxu1 %v2189_v24  ;;  %2331 = vmatpush.msra.mxu2 %v2189_v24  ;;  %v1056_v55 = vmul.f32 %v2727_v43, %v2732_v45  ;;  %505 = vst [vmem:[#allocation2 + $0x8] sm:$0xff] %v2734_v46  ;;  %v573_v4 = vmax.f32 %v2768_v61, 0.0  ;;  %v522_v15 = vld [vmem:[%s2544_s13 + $0x78] sm:$0xff]  ;;  %s2165_s13 = sshll.u32 %s451_s23, 3 }
  0x2a   : > { %2332 = vmatpush.msra.mxu3 %v2189_v24  ;;  %1142 = vmatpush.msra.mxu0 %v2189_v24  ;;  %581 = vst [vmem:[#allocation2 + $0x48] sm:$0xff] %v2755_v56  ;;  %v540_v21 = vmul.f32 %v2530_v6, %v522_v15  ;;  %v2216_v24 = vld [vmem:[%s3645_s4 + $0x268] sm:$0xff]  ;;  %vm820_vm7 = vcmp.ge.s32.totalorder %v644_v36, 1  ;;  %v2207_v36 = vld [vmem:[%s3645_s4 + $0x220] sm:$0xff]  ;;  %s3301_s12 = scalar_lea.vmem %s3643_s2, %s2165_s13  ;;  %s488_s13 = scvt.s32.f32 %s487_s14 }
  0x2b   : > { %2333 = vmatpush.msra.mxu1 %v2188_v40  ;;  %2334 = vmatpush.msra.mxu2 %v2188_v40  ;;  %v2762_v59 = vld [vmem:[#allocation2 + $0x27] sm:$0xff]  ;;  %585 = vst [vmem:[#allocation2 + $0x68] sm:$0xff] %v2765_v60  ;;  %v2964_v11 = vsel %vm820_vm7, 1.0, %v2432_v2  ;;  %s482_s14 = scalar_lea.vmem %s3648_s7, %s474_s22 }
  0x2c   : > { %2335 = vmatpush.msra.mxu3 %v2188_v40  ;;  %1143 = vmatpush.msra.mxu0 %v2188_v40  ;;  %v2778_v1 = vmul.f32 %v2760_v57, %v2762_v59  ;;  %589 = vst [vmem:[#allocation2 + $0x88] sm:$0xff] %v573_v4  ;;  %v2819_v6 = vadd.f32 %v2549_v9, %v540_v21  ;;  %v2215_v9 = vld [vmem:[%s3645_s4 + $0x260] sm:$0xff]  ;;  %v728_v40 = vand.u32 15, %v624_v20  ;;  %v1023_v15 = vld [vmem:[%s3645_s4 + $0xe8] sm:$0xff]  ;;  %v2904_v20 = vsel %vm2864_vm5, 1.0, %v2432_v2 }
  0x2d   : > { %2336 = vmatpush.msra.mxu1 %v2187_v50  ;;  %2337 = vmatpush.msra.mxu2 %v2187_v50  ;;  %v2834_v39 = vld [vmem:[#allocation2 + $0x5f] sm:$0xff] }
  0x2e   : > { %2338 = vmatpush.msra.mxu3 %v2187_v50  ;;  %1157 = vmatmul.f32.vlgmr.msra.gmra.mxu1 %v1048_v51  ;;  %v574_v44 = vmax.f32 %v2819_v6, 0.0  ;;  %v2838_v48 = vld [vmem:[#allocation2 + $0x3f] sm:$0xff]  ;;  %vm2881_vm6 = vcmp.ge.s32.totalorder %v728_v40, 1 }
  0x2f   : > { %1169 = vmatmul.f32.vlgmr.msra.gmra.mxu2 %v1052_v54  ;;  %1181 = vmatmul.f32.vlgmr.msra.gmra.mxu3 %v1056_v55  ;;  %v2816_v25 = vld [vmem:[#allocation2 + $0x17] sm:$0xff]  ;;  %v2840_v49 = vld [vmem:[#allocation2 + $0x7f] sm:$0xff] }
  0x30   : > { %1259 = vmatpush.msrb.mxu2 %v2234_v62  ;;  %1324 = vmatpush.msrb.mxu3 %v1009_v63  ;;  %v1044_v32 = vmul.f32 %v2760_v57, %v2816_v25  ;;  %v1005_v51 = vld [vmem:[%s3645_s4 + $0x58] sm:$0xff]  ;;  %590 = vst [vmem:[#allocation2 + $0x90] sm:$0xff] %v574_v44  ;;  %v1024_v54 = vld [vmem:[%s3645_s4 + $0xf0] sm:$0xff] }
  0x31   : > { %1194 = vmatpush.msrb.mxu1 %v2218_v3  ;;  %1144 = vmatpush.msra.mxu0 %v2187_v50  ;;  %v2230_v50 = vld [vmem:[%s3645_s4 + $0x2d8] sm:$0xff]  ;;  %v1004_v63 = vld [vmem:[%s3645_s4 + $0x50] sm:$0xff] }
  0x32   : > { %1260 = vmatpush.msrb.mxu2 %v2233_v5  ;;  %1325 = vmatpush.msrb.mxu3 %v1008_v7  ;;  %v2213_v3 = vld [vmem:[%s3645_s4 + $0x250] sm:$0xff]  ;;  %v2228_v5 = vld [vmem:[%s3645_s4 + $0x2c8] sm:$0xff]  ;;  %v2210_v55 = vld [vmem:[%s3645_s4 + $0x238] sm:$0xff] }
  0x33   : > { %1195 = vmatpush.msrb.mxu1 %v2217_v16  ;;  %1389 = vmatpush.msrb.mxu0 %v1025_v17  ;;  %v2897_v16 = vsel %vm2860_vm4, 1.0, %v2432_v2  ;;  %v2899_v17 = vld [vmem:[#allocation2 + $0x47] sm:$0xff]  ;;  %v2225_v62 = vld [vmem:[%s3645_s4 + $0x2b0] sm:$0xff] }
  0x34   : > { %1261 = vmatpush.msrb.mxu2 %v2232_v22  ;;  %1326 = vmatpush.msrb.mxu3 %v1007_v23  ;;  %v2906_v21 = vld [vmem:[#allocation2 + $0x67] sm:$0xff]  ;;  %v1050_v40 = vmul.f32 %v2897_v16, %v2899_v17  ;;  %v963_v6 = vld [vmem:[#allocation2 + $0x11] sm:$0xff] }
  0x35   : > { %1196 = vmatpush.msrb.mxu1 %v2216_v24  ;;  %1145 = vmatmul.f32.vlgmr.msra.gmra.mxu0 %v1044_v32  ;;  %v2212_v22 = vld [vmem:[%s3645_s4 + $0x248] sm:$0xff]  ;;  %v1022_v23 = vld [vmem:[%s3645_s4 + $0xe0] sm:$0xff]  ;;  %v2917_v24 = vsel %vm2881_vm6, 1.0, %v2432_v2 }
  0x36   : > { %1262 = vmatpush.msrb.mxu2 %v2231_v26  ;;  %1327 = vmatpush.msrb.mxu3 %v1006_v28  ;;  %v1042_v26 = vld [vmem:[#allocation2 + $0x87] sm:$0xff] }
  0x37   : > { %1197 = vmatpush.msrb.mxu1 %v2215_v9  ;;  %1172 = vmatmul.f32.gmra.mxu2 %v2834_v39  ;;  %v2227_v28 = vld [vmem:[%s3645_s4 + $0x2c0] sm:$0xff]  ;;  %v2224_v7 = vld [vmem:[%s3645_s4 + $0x2a8] sm:$0xff] }
  0x38   : > { %1160 = vmatmul.f32.gmra.mxu1 %v2838_v48  ;;  %1184 = vmatmul.f32.gmra.mxu3 %v2840_v49  ;;  %v1002_v32 = vld [vmem:[%s3645_s4 + $0x40] sm:$0xff] }
  0x39   : > { %1263 = vmatpush.msrb.mxu2 %v2230_v50  ;;  %1328 = vmatpush.msrb.mxu3 %v1005_v51  ;;  %v2928_v9 = vld [vmem:[#allocation2 + $0x1f] sm:$0xff]  ;;  %v1054_v50 = vmul.f32 %v2904_v20, %v2906_v21  ;;  %v1058_v51 = vmul.f32 %v2917_v24, %v1042_v26 }
  0x3a   : > { %1198 = vmatpush.msrb.mxu1 %v2214_v52  ;;  %1390 = vmatpush.msrb.mxu0 %v1024_v54  ;;  %v2226_v52 = vld [vmem:[%s3645_s4 + $0x2b8] sm:$0xff]  ;;  %v998_v26 = vld [vmem:[%s3645_s4 + $0x20] sm:$0xff] }
  0x3b   : > { %1264 = vmatpush.msrb.mxu2 %v2229_v53  ;;  %1329 = vmatpush.msrb.mxu3 %v1004_v63  ;;  %v1001_v53 = vld [vmem:[%s3645_s4 + $0x38] sm:$0xff]  ;;  %v1000_v63 = vld [vmem:[%s3645_s4 + $0x30] sm:$0xff] }
  0x3c   : > { %1199 = vmatpush.msrb.mxu1 %v2213_v3  ;;  %1391 = vmatpush.msrb.mxu0 %v1023_v15  ;;  %v1021_v54 = vld [vmem:[%s3645_s4 + $0xd8] sm:$0xff]  ;;  %v1020_v3 = vld [vmem:[%s3645_s4 + $0xd0] sm:$0xff]  ;;  %v1019_v15 = vld [vmem:[%s3645_s4 + $0xc8] sm:$0xff] }
  0x3d   : > { %1265 = vmatpush.msrb.mxu2 %v2228_v5  ;;  %1330 = vmatpush.msrb.mxu3 %v1003_v12  ;;  %v2209_v5 = vld [vmem:[%s3645_s4 + $0x230] sm:$0xff]  ;;  %v999_v12 = vld [vmem:[%s3645_s4 + $0x28] sm:$0xff] }
  0x3e   : > { %1200 = vmatpush.msrb.mxu1 %v2212_v22  ;;  %1392 = vmatpush.msrb.mxu0 %v1022_v23  ;;  %v2208_v22 = vld [vmem:[%s3645_s4 + $0x228] sm:$0xff]  ;;  %v2223_v23 = vld [vmem:[%s3645_s4 + $0x2a0] sm:$0xff] }
  0x3f   : > { %1266 = vmatpush.msrb.mxu2 %v2227_v28  ;;  %1331 = vmatpush.msrb.mxu3 %v1002_v32  ;;  %v1018_v28 = vld [vmem:[%s3645_s4 + $0xc0] sm:$0xff]  ;;  %v1046_v32 = vmul.f32 %v2964_v11, %v2762_v59 }
  0x40   : > { %1201 = vmatpush.msrb.mxu1 %v2211_v37  ;;  %1148 = vmatmul.f32.gmra.mxu0 %v2928_v9  ;;  %v2989_v37 = vld [vmem:[#allocation2 + $0x4f] sm:$0xff] }
  0x41   : > { %1163 = vmatmul.f32.gmra.mxu1 %v1050_v40  ;;  %1175 = vmatmul.f32.gmra.mxu2 %v1054_v50  ;;  %v2991_v40 = vld [vmem:[#allocation2 + $0x6f] sm:$0xff] }
  0x42   : > { %1187 = vmatmul.f32.gmra.mxu3 %v1058_v51  ;;  %1267 = vmatpush.msrb.mxu2 %v2226_v52  ;;  %v1043_v50 = vld [vmem:[#allocation2 + $0x8f] sm:$0xff]  ;;  %v2222_v51 = vld [vmem:[%s3645_s4 + $0x298] sm:$0xff] }
  0x43   : > { %1332 = vmatpush.msrb.mxu3 %v1001_v53  ;;  %1393 = vmatpush.msrb.mxu0 %v1021_v54  ;;  %v997_v52 = vld [vmem:[%s3645_s4 + $0x18] sm:$0xff] }
  0x44   : > { %1202 = vmatpush.msrb.mxu1 %v2210_v55  ;;  %1268 = vmatpush.msrb.mxu2 %v2225_v62  ;;  %v1017_v53 = vld [vmem:[%s3645_s4 + $0xb8] sm:$0xff]  ;;  %v2221_v55 = vld [vmem:[%s3645_s4 + $0x290] sm:$0xff]  ;;  %v611_v62 = vadd.s32 8, %v2551_v10 }
  0x45   : > { %1333 = vmatpush.msrb.mxu3 %v1000_v63  ;;  %1394 = vmatpush.msrb.mxu0 %v1020_v3  ;;  %v2206_v54 = vld [vmem:[%s3645_s4 + $0x218] sm:$0xff]  ;;  %v996_v63 = vld [vmem:[%s3645_s4 + $0x10] sm:$0xff] }
  0x46   : > { %1203 = vmatpush.msrb.mxu1 %v2209_v5  ;;  %1269 = vmatpush.msrb.mxu2 %v2224_v7  ;;  %v1016_v3 = vld [vmem:[%s3645_s4 + $0xb0] sm:$0xff]  ;;  %v2220_v7 = vld [vmem:[%s3645_s4 + $0x288] sm:$0xff] }
  0x47   : > { %1334 = vmatpush.msrb.mxu3 %v999_v12  ;;  %1395 = vmatpush.msrb.mxu0 %v1019_v15  ;;  %v2205_v5 = vld [vmem:[%s3645_s4 + $0x210] sm:$0xff]  ;;  %v995_v12 = vld [vmem:[%s3645_s4 + $0x8] sm:$0xff] }
  0x48   : > { %1204 = vmatpush.msrb.mxu1 %v2208_v22  ;;  %1270 = vmatpush.msrb.mxu2 %v2223_v23  ;;  %v1015_v15 = vld [vmem:[%s3645_s4 + $0xa8] sm:$0xff]  ;;  %v2219_v23 = vld [vmem:[%s3645_s4 + $0x280] sm:$0xff] }
  0x49   : > { %1335 = vmatpush.msrb.mxu3 %v998_v26  ;;  %1396 = vmatpush.msrb.mxu0 %v1018_v28  ;;  %v2204_v22 = vld [vmem:[%s3645_s4 + $0x208] sm:$0xff]  ;;  %v637_v28 = vand.u32 15, %v611_v62  ;;  %v2266_v62 = vld [vmem:[%s3645_s4 + $0x3f8] sm:$0xff] }
  0x4a   : > { %1205 = vmatpush.msrb.mxu1 %v2207_v36  ;;  %1151 = vmatmul.f32.gmra.mxu0 %v1046_v32  ;;  %v914_v26 = vld [vmem:[#allocation2 + $0x7] sm:$0xff] }
  0x4b   : > { %1166 = vmatmul.f32.gmra.mxu1 %v2989_v37  ;;  %1178 = vmatmul.f32.gmra.mxu2 %v2991_v40  ;;  %v994_v32 = vld [vmem:[%s3645_s4] sm:$0xff]  ;;  %vm867_vm8 = vcmp.le.s32.totalorder %v637_v28, 14 }
  0x4c   : > { %1190 = vmatmul.f32.gmra.mxu3 %v1043_v50  ;;  %1271 = vmatpush.msrb.mxu2 %v2222_v51  ;;  %v1014_v36 = vld [vmem:[%s3645_s4 + $0xa0] sm:$0xff]  ;;  %v3044_v51 = vld [vmem:[#allocation2 + $0x2f] sm:$0xff] }
  0x4d   : > { %1336 = vmatpush.msrb.mxu3 %v997_v52  ;;  %1397 = vmatpush.msrb.mxu0 %v1017_v53  ;;  %v2203_v50 = vld [vmem:[%s3645_s4 + $0x200] sm:$0xff]  ;;  %v930_v53 = vmul.f32 %v2760_v57, %v914_v26  ;;  %v1012_v57 = vld [vmem:[%s3645_s4 + $0x90] sm:$0xff]  ;;  %v2264_v26 = vld [vmem:[%s3645_s4 + $0x3e8] sm:$0xff] }
  0x4e   : > { %1206 = vmatpush.msrb.mxu1 %v2206_v54  ;;  %1272 = vmatpush.msrb.mxu2 %v2221_v55  ;;  %v3046_v52 = vld [vmem:[#allocation2 + $0x19] sm:$0xff] }
  0x4f   : > { %1337 = vmatpush.msrb.mxu3 %v996_v63  ;;  %1398 = vmatpush.msrb.mxu0 %v1016_v3  ;;  %v1013_v54 = vld [vmem:[%s3645_s4 + $0x98] sm:$0xff]  ;;  %v3068_v3 = vsel %vm867_vm8, 1.0, %v2432_v2  ;;  %v1010_v28 = vld [vmem:[%s3645_s4 + $0x80] sm:$0xff] }
  0x50   : > { %1207 = vmatpush.msrb.mxu1 %v2205_v5  ;;  %1273 = vmatpush.msrb.mxu2 %v2220_v7  ;;  %v2250_v55 = vld [vmem:[%s3645_s4 + $0x378] sm:$0xff]  ;;  %v3070_v5 = vld [vmem:[#allocation2 + $0x21] sm:$0xff]  ;;  %v2249_v7 = vld [vmem:[%s3645_s4 + $0x370] sm:$0xff] }
  0x51   : > { %1338 = vmatpush.msrb.mxu3 %v995_v12  ;;  %1399 = vmatpush.msrb.mxu0 %v1015_v15  ;;  %v1041_v63 = vld [vmem:[%s3645_s4 + $0x178] sm:$0xff]  ;;  %v2265_v12 = vld [vmem:[%s3645_s4 + $0x3f0] sm:$0xff]  ;;  %v1011_v15 = vld [vmem:[%s3645_s4 + $0x88] sm:$0xff] }
  0x52   : > { %1208 = vmatpush.msrb.mxu1 %v2204_v22  ;;  %1274 = vmatpush.msrb.mxu2 %v2219_v23  ;;  %v1040_v22 = vld [vmem:[%s3645_s4 + $0x170] sm:$0xff]  ;;  %v2248_v23 = vld [vmem:[%s3645_s4 + $0x368] sm:$0xff] }
  0x53   : > { %1339 = vmatpush.msrb.mxu3 %v994_v32  ;;  %1400 = vmatpush.msrb.mxu0 %v1014_v36  ;;  %v1065_v32 = vmul.f32 %v3068_v3, %v3070_v5  ;;  %v1039_v36 = vld [vmem:[%s3645_s4 + $0x168] sm:$0xff] }
  0x54   : > { %1209 = vmatpush.msrb.mxu1 %v2203_v50  ;;  %1154 = vmatmul.f32.gmra.mxu0 %v3044_v51  ;;  %v915_v50 = vld [vmem:[#allocation2 + $0xf] sm:$0xff] }
  0x55   : > { %1210 = vmatmul.f32.vlgmr.msrb.gmra.mxu1 %v2649_v58  ;;  %1275 = vmatmul.f32.vlgmr.msrb.gmra.mxu2 %v3046_v52 }
  0x56   : > { %1340 = vmatmul.f32.vlgmr.msrb.gmra.mxu3 %v930_v53  ;;  %1401 = vmatpush.msrb.mxu0 %v1013_v54  ;;  %v613_v53 = vadd.s32 24, %v2551_v10  ;;  %v2282_v54 = vld [vmem:[%s3645_s4 + $0x478] sm:$0xff] }
  0x57   : > { %1648 = vmatpush.msra.mxu2 %v2250_v55  ;;  %1713 = vmatpush.msra.mxu3 %v2266_v62  ;;  %v2247_v55 = vld [vmem:[%s3645_s4 + $0x360] sm:$0xff] }
  0x58   : > { %1402 = vmatpush.msrb.mxu0 %v1012_v57  ;;  %1454 = vmatpush.msra.mxu1 %v1041_v63  ;;  %v2263_v62 = vld [vmem:[%s3645_s4 + $0x3e0] sm:$0xff]  ;;  %v2281_v63 = vld [vmem:[%s3645_s4 + $0x470] sm:$0xff] }
  0x59   : > { %1649 = vmatpush.msra.mxu2 %v2249_v7  ;;  %1714 = vmatpush.msra.mxu3 %v2265_v12  ;;  %v1038_v57 = vld [vmem:[%s3645_s4 + $0x160] sm:$0xff]  ;;  %v2246_v7 = vld [vmem:[%s3645_s4 + $0x358] sm:$0xff]  ;;  %v651_v12 = vand.u32 15, %v613_v53 }
  0x5a   : > { %1403 = vmatpush.msrb.mxu0 %v1011_v15  ;;  %1455 = vmatpush.msra.mxu1 %v1040_v22  ;;  %v2262_v15 = vld [vmem:[%s3645_s4 + $0x3d8] sm:$0xff] }
  0x5b   : > { %1650 = vmatpush.msra.mxu2 %v2248_v23  ;;  %1715 = vmatpush.msra.mxu3 %v2264_v26  ;;  %v1037_v22 = vld [vmem:[%s3645_s4 + $0x158] sm:$0xff]  ;;  %v2245_v23 = vld [vmem:[%s3645_s4 + $0x350] sm:$0xff]  ;;  %vm869_vm9 = vcmp.le.s32.totalorder %v651_v12, 14  ;;  %v2243_v12 = vld [vmem:[%s3645_s4 + $0x340] sm:$0xff] }
  0x5c   : > { %1404 = vmatpush.msrb.mxu0 %v1010_v28  ;;  %1456 = vmatpush.msra.mxu1 %v1039_v36  ;;  %v2261_v26 = vld [vmem:[%s3645_s4 + $0x3d0] sm:$0xff]  ;;  %v2279_v36 = vld [vmem:[%s3645_s4 + $0x460] sm:$0xff]  ;;  %v3150_v53 = vsel %vm869_vm9, 1.0, %v2432_v2 }
  0x5d   : > { %1213 = vmatmul.f32.gmra.mxu1 %v2661_v0  ;;  %1278 = vmatmul.f32.gmra.mxu2 %v1065_v32  ;;  %v3134_v28 = vld [vmem:[#allocation2 + $0x29] sm:$0xff]  ;;  %v932_v32 = vmul.f32 %v2964_v11, %v2816_v25  ;;  %v2278_v25 = vld [vmem:[%s3645_s4 + $0x458] sm:$0xff] }
  0x5e   : > { %1343 = vmatmul.f32.gmra.mxu3 %v915_v50  ;;  %1405 = vmatmul.f32.vlgmr.msrb.gmra.mxu0 %v2734_v46  ;;  %v2280_v46 = vld [vmem:[%s3645_s4 + $0x468] sm:$0xff]  ;;  %v3143_v50 = vld [vmem:[#allocation2 + $0x31] sm:$0xff] }
  0x5f   : > { %1778 = vmatpush.msra.mxu0 %v2282_v54  ;;  %1651 = vmatpush.msra.mxu2 %v2247_v55  ;;  %v1036_v54 = vld [vmem:[%s3645_s4 + $0x150] sm:$0xff]  ;;  %v2244_v55 = vld [vmem:[%s3645_s4 + $0x348] sm:$0xff] }
  0x60   : > { %1716 = vmatpush.msra.mxu3 %v2263_v62  ;;  %1457 = vmatpush.msra.mxu1 %v1038_v57  ;;  %v2260_v62 = vld [vmem:[%s3645_s4 + $0x3c8] sm:$0xff]  ;;  %v1067_v57 = vmul.f32 %v3150_v53, %v3143_v50 }
  0x61   : > { %1779 = vmatpush.msra.mxu0 %v2281_v63  ;;  %1652 = vmatpush.msra.mxu2 %v2246_v7  ;;  %v615_v63 = vadd.s32 40, %v2551_v10  ;;  %v1035_v7 = vld [vmem:[%s3645_s4 + $0x148] sm:$0xff] }
  0x62   : > { %1717 = vmatpush.msra.mxu3 %v2262_v15  ;;  %1458 = vmatpush.msra.mxu1 %v1037_v22  ;;  %v2259_v15 = vld [vmem:[%s3645_s4 + $0x3c0] sm:$0xff] }
  0x63   : > { %1780 = vmatpush.msra.mxu0 %v2280_v46  ;;  %1653 = vmatpush.msra.mxu2 %v2245_v23  ;;  %v665_v22 = vand.u32 15, %v615_v63  ;;  %v934_v46 = vmul.f32 %v2707_v30, %v2762_v59  ;;  %v3188_v23 = vld [vmem:[#allocation2 + $0x41] sm:$0xff]  ;;  %v2242_v59 = vld [vmem:[%s3645_s4 + $0x338] sm:$0xff]  ;;  %v936_v63 = vmul.f32 %v2897_v16, %v2709_v31 }
  0x64   : > { %1718 = vmatpush.msra.mxu3 %v2261_v26  ;;  %1459 = vmatpush.msra.mxu1 %v1036_v54  ;;  %v1033_v54 = vld [vmem:[%s3645_s4 + $0x138] sm:$0xff]  ;;  %v2240_v31 = vld [vmem:[%s3645_s4 + $0x328] sm:$0xff] }
  0x65   : > { %1216 = vmatmul.f32.gmra.mxu1 %v2672_v13  ;;  %1281 = vmatmul.f32.gmra.mxu2 %v3134_v28  ;;  %vm871_vm10 = vcmp.le.s32.totalorder %v665_v22, 14  ;;  %v1032_v22 = vld [vmem:[%s3645_s4 + $0x130] sm:$0xff] }
  0x66   : > { %1346 = vmatmul.f32.gmra.mxu3 %v932_v32  ;;  %1408 = vmatmul.f32.gmra.mxu0 %v2736_v47  ;;  %v2277_v47 = vld [vmem:[%s3645_s4 + $0x450] sm:$0xff]  ;;  %v3191_v26 = vsel %vm871_vm10, 1.0, %v2432_v2  ;;  %v1034_v32 = vld [vmem:[%s3645_s4 + $0x140] sm:$0xff] }
  0x67   : > { %1781 = vmatpush.msra.mxu0 %v2279_v36  ;;  %1654 = vmatpush.msra.mxu2 %v2244_v55  ;;  %v2258_v36 = vld [vmem:[%s3645_s4 + $0x3b8] sm:$0xff]  ;;  %v2275_v2 = vld [vmem:[%s3645_s4 + $0x440] sm:$0xff]  ;;  %v2241_v55 = vld [vmem:[%s3645_s4 + $0x330] sm:$0xff] }
  0x68   : > { %1719 = vmatpush.msra.mxu3 %v2260_v62  ;;  %1460 = vmatpush.msra.mxu1 %v1035_v7  ;;  %v2257_v62 = vld [vmem:[%s3645_s4 + $0x3b0] sm:$0xff] }
  0x69   : > { %1782 = vmatpush.msra.mxu0 %v2278_v25  ;;  %1655 = vmatpush.msra.mxu2 %v2243_v12  ;;  %v617_v25 = vadd.s32 56, %v2551_v10  ;;  %v3230_v7 = vld [vmem:[#allocation2 + $0x51] sm:$0xff]  ;;  %v3232_v12 = vld [vmem:[#allocation2] sm:$0xff] }
  0x6a   : > { %1720 = vmatpush.msra.mxu3 %v2259_v15  ;;  %1461 = vmatpush.msra.mxu1 %v1034_v32  ;;  %v619_v32 = vadd.s32 72, %v2551_v10 }
  0x6b   : > { %1783 = vmatpush.msra.mxu0 %v2277_v47  ;;  %1656 = vmatpush.msra.mxu2 %v2242_v59  ;;  %v679_v47 = vand.u32 15, %v617_v25  ;;  %v1031_v59 = vld [vmem:[%s3645_s4 + $0x128] sm:$0xff] }
  0x6c   : > { %1721 = vmatpush.msra.mxu3 %v2258_v36  ;;  %1462 = vmatpush.msra.mxu1 %v1033_v54  ;;  %v2239_v36 = vld [vmem:[%s3645_s4 + $0x320] sm:$0xff] }
  0x6d   : > { %1219 = vmatmul.f32.gmra.mxu1 %v2596_v33  ;;  %1284 = vmatmul.f32.gmra.mxu2 %v1067_v57  ;;  %v2274_v57 = vld [vmem:[%s3645_s4 + $0x438] sm:$0xff]  ;;  %vm873_vm11 = vcmp.le.s32.totalorder %v679_v47, 14  ;;  %v1030_v54 = vld [vmem:[%s3645_s4 + $0x120] sm:$0xff]  ;;  %v621_v47 = vadd.s32 88, %v2551_v10 }
  0x6e   : > { %1349 = vmatmul.f32.gmra.mxu3 %v2928_v9  ;;  %1411 = vmatmul.f32.gmra.mxu0 %v2649_v58  ;;  %v2276_v9 = vld [vmem:[%s3645_s4 + $0x448] sm:$0xff]  ;;  %v3182_v58 = vld [vmem:[#allocation2 + $0x39] sm:$0xff]  ;;  %v3235_v15 = vsel %vm873_vm11, 1.0, %v3232_v12 }
  0x6f   : > { %1784 = vmatpush.msra.mxu0 %v2276_v9  ;;  %1657 = vmatpush.msra.mxu2 %v2241_v55  ;;  %v2256_v9 = vld [vmem:[%s3645_s4 + $0x3a8] sm:$0xff]  ;;  %v2271_v55 = vld [vmem:[%s3645_s4 + $0x420] sm:$0xff] }
  0x70   : > { %1722 = vmatpush.msra.mxu3 %v2257_v62  ;;  %1463 = vmatpush.msra.mxu1 %v1032_v22  ;;  %v3310_v62 = vld [vmem:[%s3644_s3] ss:$0 sm:$0xff]  ;;  %v3318_v22 = vld [vmem:[%s3644_s3 + $0x1] ss:$0 sm:$0xff] }
  0x71   : > { %1785 = vmatpush.msra.mxu0 %v2275_v2  ;;  %1658 = vmatpush.msra.mxu2 %v2240_v31  ;;  %v938_v2 = vmul.f32 %v2720_v41, %v2899_v17  ;;  %v1029_v31 = vld [vmem:[%s3645_s4 + $0x118] sm:$0xff] }
  0x72   : > { %1723 = vmatpush.msra.mxu3 %v2256_v9  ;;  %1464 = vmatpush.msra.mxu1 %v1031_v59  ;;  %v2237_v9 = vld [vmem:[%s3645_s4 + $0x310] sm:$0xff] }
  0x73   : > { %1786 = vmatpush.msra.mxu0 %v2274_v57  ;;  %1659 = vmatpush.msra.mxu2 %v2239_v36  ;;  %v591_v57 = vld [vmem:[%s3301_s12] sm:$0xff]  ;;  %v3336_v36 = vstv %s488_s13 }
  0x74   : > { %1724 = vmatpush.msra.mxu3 %v2255_v27  ;;  %1465 = vmatpush.msra.mxu1 %v1030_v54  ;;  %v3338_v27 = vld [vmem:[#allocation2 + $0x69] sm:$0xff] }
  0x75   : > { %1222 = vmatmul.f32.gmra.mxu1 %v2598_v34  ;;  %1287 = vmatmul.f32.gmra.mxu2 %v3182_v58 }
  0x76   : > { %1352 = vmatmul.f32.gmra.mxu3 %v934_v46  ;;  %1414 = vmatmul.f32.gmra.mxu0 %v2661_v0  ;;  %v1069_v0 = vmul.f32 %v3191_v26, %v3188_v23  ;;  %v2273_v46 = vld [vmem:[%s3645_s4 + $0x430] sm:$0xff] }
  0x77   : > { %1787 = vmatpush.msra.mxu0 %v2273_v46  ;;  %1660 = vmatpush.msra.mxu2 %v2238_v29  ;;  %v2253_v46 = vld [vmem:[%s3645_s4 + $0x390] sm:$0xff] }
  0x78   : > { %1466 = vmatpush.msra.mxu1 %v1029_v31  ;;  %v2387_v29 = vld [vmem:[#allocation2 + $0x50] sm:$0xff] }
  0x79   : > { %1661 = vmatpush.msra.mxu2 %v2237_v9  ;;  %v2388_v31 = vld [vmem:[#allocation2 + $0x70] sm:$0xff]  ;;  %v2389_v9 = vld [vmem:[#allocation2 + $0x58] sm:$0xff] }
  0x7d   : > { %1225 = vmatmul.f32.gmra.mxu1 %v2675_v14  ;;  %1290 = vmatmul.f32.gmra.mxu2 %v1069_v0  ;;  %v3276_v0 = vld [vmem:[#allocation2 + $0x61] sm:$0xff] }
  0x7e   : > { %1355 = vmatmul.f32.gmra.mxu3 %v3044_v51  ;;  %1417 = vmatmul.f32.gmra.mxu0 %v2672_v13  ;;  %v3224_v13 = vld [vmem:[#allocation2 + $0x49] sm:$0xff] }
  0x85   : > { %1228 = vmatmul.f32.gmra.mxu1 %v2755_v56  ;;  %1293 = vmatmul.f32.gmra.mxu2 %v3224_v13 }
  0x86   : > { %1358 = vmatmul.f32.gmra.mxu3 %v936_v63  ;;  %1420 = vmatmul.f32.gmra.mxu0 %v2596_v33  ;;  %v1071_v33 = vmul.f32 %v3235_v15, %v3230_v7  ;;  %v595_v63 = vmul.f32 %v3310_v62, %v591_v57  ;;  %v623_v57 = vadd.s32 104, %v2551_v10 }
  0x8d   : > { %1231 = vmatmul.f32.gmra.mxu1 %v566_v35  ;;  %1296 = vmatmul.f32.gmra.mxu2 %v1071_v33  ;;  %v693_v35 = vand.u32 15, %v619_v32  ;;  %v599_v33 = vadd.f32 %v3318_v22, %v595_v63  ;;  %v707_v32 = vand.u32 15, %v621_v47 }
  0x8e   : > { %1361 = vmatmul.f32.gmra.mxu3 %v2838_v48  ;;  %1423 = vmatmul.f32.gmra.mxu0 %v2598_v34  ;;  %v2272_v34 = vld [vmem:[%s3645_s4 + $0x428] sm:$0xff]  ;;  %v3269_v48 = vld [vmem:[#allocation2 + $0x59] sm:$0xff] }
  0x8f   : > { %1788 = vmatpush.msra.mxu0 %v2272_v34  ;;  %vm875_vm12 = vcmp.le.s32.totalorder %v693_v35, 14  ;;  %v601_v59 = vmax.f32 %v599_v33, 0.0  ;;  %v940_v35 = vmul.f32 %v2904_v20, %v2722_v42  ;;  %vm877_vm13 = vcmp.le.s32.totalorder %v707_v32, 14  ;;  %v1028_v42 = vld [vmem:[%s3645_s4 + $0x110] sm:$0xff]  ;;  %v2235_v33 = vld [vmem:[%s3645_s4 + $0x300] sm:$0xff] }
  0x90   : > { %v3283_v25 = vsel %vm875_vm12, 1.0, %v3232_v12  ;;  %v3351_v54 = vsel %vm877_vm13, 1.0, %v3232_v12  ;;  %1467 = vmatpush.msra.mxu1 %v1028_v42  ;;  %v2251_v32 = vld [vmem:[%s3645_s4 + $0x380] sm:$0xff] }
  0x91   : > { %1789 = vmatpush.msra.mxu0 %v2271_v55  ;;  %v3343_v34 = vmul.f32 %v3336_v36, %v601_v59  ;;  %v2252_v55 = vld [vmem:[%s3645_s4 + $0x388] sm:$0xff]  ;;  %v3383_v59 = vld [vmem:[#allocation2 + $0x79] sm:$0xff] }
  0x93   : > { %3668 = vst [vmem:[#allocation3_spill] sm:$0xff] %v3343_v34 }
  0x94   : > { %606 = vst [vmem:[#allocation2 + $0x98] sm:$0xff] %v3343_v34 }
  0x95   : > { %1234 = vmatmul.f32.gmra.mxu1 %v567_v38  ;;  %1299 = vmatmul.f32.gmra.mxu2 %v3269_v48  ;;  %v2254_v38 = vld [vmem:[%s3645_s4 + $0x398] sm:$0xff] }
  0x96   : > { %1364 = vmatmul.f32.gmra.mxu3 %v938_v2  ;;  %1426 = vmatmul.f32.gmra.mxu0 %v2675_v14  ;;  %v1073_v14 = vmul.f32 %v3283_v25, %v3276_v0  ;;  %v3348_v2 = vld [vmem:[#allocation2 + $0x71] sm:$0xff] }
  0x97   : > { %1725 = vmatpush.msra.mxu3 %v2254_v38  ;;  %v2236_v38 = vld [vmem:[%s3645_s4 + $0x308] sm:$0xff]  ;;  %v1075_v47 = vmul.f32 %v3351_v54, %v3348_v2 }
  0x98   : > { %1662 = vmatpush.msra.mxu2 %v2236_v38 }
  0x99   : > { %1726 = vmatpush.msra.mxu3 %v2253_v46  ;;  %v1027_v46 = vld [vmem:[%s3645_s4 + $0x108] sm:$0xff] }
  0x9a   : > { %1468 = vmatpush.msra.mxu1 %v1027_v46  ;;  %1663 = vmatpush.msra.mxu2 %v2235_v33 }
  0x9b   : > { %1727 = vmatpush.msra.mxu3 %v2252_v55  ;;  %v1026_v55 = vld [vmem:[%s3645_s4 + $0x100] sm:$0xff] }
  0x9c   : > { %1469 = vmatpush.msra.mxu1 %v1026_v55  ;;  %v3419_v55 = vld [vmem:[#allocation2 + $0x89] sm:$0xff] }
  0x9d   : > { %1237 = vmatmul.f32.gmra.mxu1 %v2689_v18  ;;  %1302 = vmatmul.f32.gmra.mxu2 %v1073_v14  ;;  %v2269_v14 = vld [vmem:[%s3645_s4 + $0x410] sm:$0xff] }
  0x9e   : > { %1367 = vmatmul.f32.gmra.mxu3 %v2989_v37  ;;  %1429 = vmatmul.f32.gmra.mxu0 %v2755_v56  ;;  %v2270_v56 = vld [vmem:[%s3645_s4 + $0x418] sm:$0xff] }
  0x9f   : > { %1790 = vmatpush.msra.mxu0 %v2270_v56  ;;  %v721_v56 = vand.u32 15, %v623_v57  ;;  %1728 = vmatpush.msra.mxu3 %v2251_v32  ;;  %v625_v32 = vadd.s32 120, %v2551_v10 }
  0xa1   : > { %1791 = vmatpush.msra.mxu0 %v2269_v14  ;;  %vm879_vm14 = vcmp.le.s32.totalorder %v721_v56, 14  ;;  %v2390_v14 = vld [vmem:[#allocation2 + $0x78] sm:$0xff] }
  0xa2   : > { %v3398_v57 = vsel %vm879_vm14, 1.0, %v3232_v12 }
  0xa5   : > { %1240 = vmatmul.f32.gmra.mxu1 %v2765_v60  ;;  %1305 = vmatmul.f32.gmra.mxu2 %v3338_v27 }
  0xa6   : > { %1370 = vmatmul.f32.gmra.mxu3 %v940_v35  ;;  %1432 = vmatmul.f32.gmra.mxu0 %v2387_v29  ;;  %v942_v35 = vmul.f32 %v2727_v43, %v2906_v21  ;;  %v3401_v21 = vld [vmem:[#allocation2 + $0x81] sm:$0xff] }
  0xa7   : > { %v1077_v46 = vmul.f32 %v3398_v57, %v3401_v21 }
  0xab   : > { %v3368_v63 = vpop.f32.mrf.mxu1 }
  0xad   : > { %1243 = vmatmul.f32.gmra.mxu1 %v2388_v31  ;;  %1308 = vmatmul.f32.gmra.mxu2 %v1075_v47 }
  0xae   : > { %1373 = vmatmul.f32.gmra.mxu3 %v2834_v39  ;;  %1435 = vmatmul.f32.gmra.mxu0 %v2389_v9  ;;  %v2268_v39 = vld [vmem:[%s3645_s4 + $0x408] sm:$0xff]  ;;  %v2267_v9 = vld [vmem:[%s3645_s4 + $0x400] sm:$0xff] }
  0xaf   : > { %1792 = vmatpush.msra.mxu0 %v2268_v39 }
  0xb1   : > { %1793 = vmatpush.msra.mxu0 %v2267_v9  ;;  %v944_v9 = vmul.f32 %v2917_v24, %v2732_v45 }
  0xb2   : > { %v3387_v29 = vpop.f32.mrf.mxu2  ;;  %v3389_v42 = vpop.f32.mrf.mxu3 }
  0xb3   : > { %v1146_v38 = vpop.f32.mrf.mxu0 }
  0xb5   : > { %1246 = vmatmul.f32.gmra.mxu1 %v2390_v14  ;;  %1311 = vmatmul.f32.gmra.mxu2 %v3383_v59  ;;  %v3395_v47 = vpop.f32.mrf.mxu1 }
  0xb6   : > { %1376 = vmatmul.f32.gmra.mxu3 %v942_v35  ;;  %1438 = vmatmul.f32.gmra.mxu0 %v2689_v18  ;;  %v735_v35 = vand.u32 15, %v625_v32  ;;  %v962_v32 = vld [vmem:[#allocation2 + $0x9] sm:$0xff] }
  0xb8   : > { %vm881_vm15 = vcmp.le.s32.totalorder %v735_v35, 14  ;;  %v1551_v35 = vld [vmem:[#allocation2 + $0x28] sm:$0xff] }
  0xba   : > { %v3408_v33 = vpop.f32.mrf.mxu2 }
  0xbb   : > { %v3411_v56 = vpop.f32.mrf.mxu3 }
  0xbd   : > { %1249 = vmatmul.f32.gmra.mxu1 %v572_v19  ;;  %1314 = vmatmul.f32.gmra.mxu2 %v1077_v46  ;;  %v1149_v18 = vpop.f32.mrf.mxu0  ;;  %v3431_v19 = vsel %vm881_vm15, 1.0, %v3232_v12 }
  0xbe   : > { %1379 = vmatmul.f32.gmra.mxu3 %v2991_v40  ;;  %1441 = vmatmul.f32.gmra.mxu0 %v2765_v60  ;;  %v3417_v39 = vpop.f32.mrf.mxu1  ;;  %3670 = vst [vmem:[#allocation5_spill] sm:$0xff] %v3431_v19  ;;  %v3433_v60 = vld [vmem:[#allocation2 + $0x91] sm:$0xff] }
  0xbf   : > { %3671 = vst [vmem:[#allocation6_spill] sm:$0xff] %v3433_v60  ;;  %v1079_v45 = vmul.f32 %v3431_v19, %v3433_v60  ;;  %v1552_v60 = vld [vmem:[#allocation2 + $0x30] sm:$0xff] }
  0xc4   : > { %v3423_v10 = vpop.f32.mrf.mxu2 }
  0xc5   : > { %1252 = vmatmul.f32.gmra.mxu1 %v573_v4  ;;  %1317 = vmatmul.f32.gmra.mxu2 %v3419_v55  ;;  %v3428_v8 = vpop.f32.mrf.mxu3 }
  0xc6   : > { %3669 = vst [vmem:[#allocation4_spill] sm:$0xff] %v3428_v8  ;;  %1382 = vmatmul.f32.gmra.mxu3 %v944_v9  ;;  %1444 = vmatmul.f32.gmra.mxu0 %v2388_v31  ;;  %v2391_v9 = vld [vmem:[#allocation2 + $0x80] sm:$0xff] }
  0xc7   : > { %v1152_v40 = vpop.f32.mrf.mxu0 }
  0xc8   : > { %v3435_v46 = vpop.f32.mrf.mxu1 }
  0xcd   : > { %1255 = vmatmul.f32.gmra.mxu1 %v574_v44  ;;  %1320 = vmatmul.f32.gmra.mxu2 %v1079_v45 }
  0xce   : > { %1385 = vmatmul.f32.gmra.mxu3 %v2840_v49  ;;  %1447 = vmatmul.f32.gmra.mxu0 %v2390_v14  ;;  %v3442_v61 = vpop.f32.mrf.mxu2  ;;  %v979_v14 = vmul.f32 %v3068_v3, %v963_v6 }
  0xcf   : > { %v3444_v4 = vpop.f32.mrf.mxu3 }
  0xd0   : > { %3672 = vst [vmem:[#allocation7_spill] sm:$0xff] %v3444_v4 }
  0xd1   : > { %v1155_v12 = vpop.f32.mrf.mxu0 }
  0xd2   : > { %v1211_v31 = vpop.f32.mrf.mxu1 }
  0xd3   : > { %v1212_v44 = vadd.f32 %v1211_v31, %v1146_v38 }
  0xd5   : > { %1470 = vmatmul.f32.vlgmr.msra.gmra.mxu1 %v962_v32  ;;  %1664 = vmatmul.f32.vlgmr.msra.gmra.mxu2 %v2778_v1  ;;  %v1521_v1 = vld [vmem:[#allocation2 + $0x37] sm:$0xff] }
  0xd6   : > { %1450 = vmatmul.f32.gmra.mxu0 %v2391_v9  ;;  %1729 = vmatmul.f32.vlgmr.msra.gmra.mxu3 %v1551_v35  ;;  %v1537_v9 = vmul.f32 %v2964_v11, %v1521_v1  ;;  %v981_v11 = vmul.f32 %v3150_v53, %v3070_v5  ;;  %v1522_v1 = vld [vmem:[#allocation2 + $0x3f] sm:$0xff] }
  0xd8   : > { %v1276_v45 = vpop.f32.mrf.mxu2 }
  0xd9   : > { %v1277_v19 = vadd.f32 %v1276_v45, %v1212_v44  ;;  %v1341_v49 = vpop.f32.mrf.mxu3 }
  0xda   : > { %v1214_v8 = vpop.f32.mrf.mxu1 }
  0xdb   : > { %v3448_v34 = vadd.f32 %v1341_v49, %v1277_v19  ;;  %v3450_v4 = vpop.f32.mrf.mxu0  ;;  %v1215_v32 = vadd.f32 %v1214_v8, %v1149_v18  ;;  %v1584_v19 = vmul.f32 %v3068_v3, %v3143_v50  ;;  %v1553_v49 = vld [vmem:[#allocation2 + $0x38] sm:$0xff] }
  0xdd   : > { %1473 = vmatmul.f32.gmra.mxu1 %v979_v14  ;;  %1667 = vmatmul.f32.gmra.mxu2 %v3044_v51 }
  0xde   : > { %1732 = vmatmul.f32.gmra.mxu3 %v1552_v60  ;;  %1794 = vmatmul.f32.vlgmr.msra.gmra.mxu0 %v3134_v28 }
  0xe0   : > { %v1279_v38 = vpop.f32.mrf.mxu2 }
  0xe1   : > { %v1280_v31 = vadd.f32 %v1279_v38, %v1215_v32  ;;  %v1344_v35 = vpop.f32.mrf.mxu3  ;;  %v1554_v38 = vld [vmem:[#allocation2 + $0x40] sm:$0xff] }
  0xe2   : > { %v1217_v6 = vpop.f32.mrf.mxu1 }
  0xe3   : > { %v3457_v44 = vadd.f32 %v1344_v35, %v1280_v31  ;;  %v3459_v45 = vpop.f32.mrf.mxu0  ;;  %v1218_v51 = vadd.f32 %v1217_v6, %v1152_v40  ;;  %v1586_v6 = vmul.f32 %v3150_v53, %v3188_v23 }
  0xe5   : > { %1476 = vmatmul.f32.gmra.mxu1 %v3046_v52  ;;  %1670 = vmatmul.f32.gmra.mxu2 %v1537_v9  ;;  %v1539_v9 = vmul.f32 %v2707_v30, %v2899_v17  ;;  %v983_v30 = vmul.f32 %v3191_v26, %v3143_v50 }
  0xe6   : > { %1735 = vmatmul.f32.gmra.mxu3 %v1553_v49  ;;  %1797 = vmatmul.f32.gmra.mxu0 %v1584_v19 }
  0xe8   : > { %v1282_v18 = vpop.f32.mrf.mxu2 }
  0xe9   : > { %v1283_v8 = vadd.f32 %v1282_v18, %v1218_v51  ;;  %v1347_v60 = vpop.f32.mrf.mxu3  ;;  %v1555_v51 = vld [vmem:[#allocation2 + $0x48] sm:$0xff] }
  0xea   : > { %v1220_v14 = vpop.f32.mrf.mxu1 }
  0xeb   : > { %v3464_v3 = vadd.f32 %v1347_v60, %v1283_v8  ;;  %v3466_v32 = vpop.f32.mrf.mxu0  ;;  %v1221_v52 = vadd.f32 %v1220_v14, %v1155_v12  ;;  %v1556_v14 = vld [vmem:[#allocation2 + $0x50] sm:$0xff] }
  0xed   : > { %1479 = vmatmul.f32.gmra.mxu1 %v981_v11  ;;  %1673 = vmatmul.f32.gmra.mxu2 %v1522_v1 }
  0xee   : > { %1738 = vmatmul.f32.gmra.mxu3 %v1554_v38  ;;  %1800 = vmatmul.f32.gmra.mxu0 %v3182_v58 }
  0xf0   : > { %v1285_v40 = vpop.f32.mrf.mxu2 }
  0xf1   : > { %v1286_v31 = vadd.f32 %v1285_v40, %v1221_v52  ;;  %v1350_v35 = vpop.f32.mrf.mxu3 }
  0xf2   : > { %v1223_v5 = vpop.f32.mrf.mxu1 }
  0xf3   : > { %v3473_v19 = vadd.f32 %v1350_v35, %v1286_v31  ;;  %v3475_v49 = vpop.f32.mrf.mxu0  ;;  %v1224_v12 = vadd.f32 %v1223_v5, %v3368_v63  ;;  %v1588_v31 = vmul.f32 %v3191_v26, %v3230_v7  ;;  %v1526_v26 = vld [vmem:[#allocation2 + $0x5f] sm:$0xff] }
  0xf5   : > { %1482 = vmatmul.f32.gmra.mxu1 %v3134_v28  ;;  %1676 = vmatmul.f32.gmra.mxu2 %v1539_v9  ;;  %v1525_v28 = vld [vmem:[#allocation2 + $0x57] sm:$0xff] }
  0xf6   : > { %1741 = vmatmul.f32.gmra.mxu3 %v1555_v51  ;;  %1803 = vmatmul.f32.gmra.mxu0 %v1586_v6  ;;  %v1541_v52 = vmul.f32 %v2897_v16, %v1525_v28  ;;  %v985_v16 = vmul.f32 %v3235_v15, %v3188_v23 }
  0xf8   : > { %v1288_v18 = vpop.f32.mrf.mxu2 }
  0xf9   : > { %v1289_v17 = vadd.f32 %v1288_v18, %v1224_v12  ;;  %v1353_v8 = vpop.f32.mrf.mxu3 }
  0xfa   : > { %v1226_v60 = vpop.f32.mrf.mxu1 }
  0xfb   : > { %v3481_v53 = vadd.f32 %v1353_v8, %v1289_v17  ;;  %v3483_v11 = vpop.f32.mrf.mxu0  ;;  %v1227_v63 = vadd.f32 %v1226_v60, %v3395_v47  ;;  %v1558_v17 = vld [vmem:[#allocation2 + $0x60] sm:$0xff] }
  0xfd   : > { %1485 = vmatmul.f32.gmra.mxu1 %v983_v30  ;;  %1679 = vmatmul.f32.gmra.mxu2 %v2989_v37  ;;  %v1557_v37 = vld [vmem:[#allocation2 + $0x58] sm:$0xff] }
  0xfe   : > { %1744 = vmatmul.f32.gmra.mxu3 %v1556_v14  ;;  %1806 = vmatmul.f32.gmra.mxu0 %v3224_v13 }
 0x100   : > { %v1291_v1 = vpop.f32.mrf.mxu2 }
 0x101   : > { %v1292_v38 = vadd.f32 %v1291_v1, %v1227_v63  ;;  %v1356_v50 = vpop.f32.mrf.mxu3  ;;  %v1590_v63 = vmul.f32 %v3235_v15, %v3276_v0 }
 0x102   : > { %v1229_v40 = vpop.f32.mrf.mxu1 }
 0x103   : > { %v3491_v35 = vadd.f32 %v1356_v50, %v1292_v38  ;;  %v3493_v9 = vpop.f32.mrf.mxu0  ;;  %v1230_v47 = vadd.f32 %v1229_v40, %v3417_v39  ;;  %v1559_v50 = vld [vmem:[#allocation2 + $0x68] sm:$0xff] }
 0x105   : > { %1488 = vmatmul.f32.gmra.mxu1 %v3182_v58  ;;  %1682 = vmatmul.f32.gmra.mxu2 %v1541_v52  ;;  %v1527_v58 = vld [vmem:[#allocation2 + $0x67] sm:$0xff] }
 0x106   : > { %1747 = vmatmul.f32.gmra.mxu3 %v1557_v37  ;;  %1809 = vmatmul.f32.gmra.mxu0 %v1588_v31  ;;  %v1543_v14 = vmul.f32 %v2720_v41, %v1527_v58  ;;  %v987_v41 = vmul.f32 %v3283_v25, %v3230_v7  ;;  %v1528_v37 = vld [vmem:[#allocation2 + $0x6f] sm:$0xff] }
 0x108   : > { %v1294_v5 = vpop.f32.mrf.mxu2 }
 0x109   : > { %v1295_v6 = vadd.f32 %v1294_v5, %v1230_v47  ;;  %v1359_v51 = vpop.f32.mrf.mxu3 }
 0x10a   : > { %v1232_v12 = vpop.f32.mrf.mxu1 }
 0x10b   : > { %v3499_v18 = vadd.f32 %v1359_v51, %v1295_v6  ;;  %v3501_v30 = vpop.f32.mrf.mxu0  ;;  %v1233_v39 = vadd.f32 %v1232_v12, %v3435_v46 }
 0x10d   : > { %1491 = vmatmul.f32.gmra.mxu1 %v985_v16  ;;  %1685 = vmatmul.f32.gmra.mxu2 %v1526_v26  ;;  %v1560_v16 = vld [vmem:[#allocation2 + $0x70] sm:$0xff] }
 0x10e   : > { %1750 = vmatmul.f32.gmra.mxu3 %v1558_v17  ;;  %1812 = vmatmul.f32.gmra.mxu0 %v3269_v48 }
 0x110   : > { %v1297_v8 = vpop.f32.mrf.mxu2 }
 0x111   : > { %v1298_v60 = vadd.f32 %v1297_v8, %v1233_v39  ;;  %v1362_v23 = vpop.f32.mrf.mxu3 }
 0x112   : > { %v1235_v28 = vpop.f32.mrf.mxu1 }
 0x113   : > { %v3508_v1 = vadd.f32 %v1362_v23, %v1298_v60  ;;  %v3510_v38 = vpop.f32.mrf.mxu0  ;;  %v1236_v46 = vadd.f32 %v1235_v28, %v3387_v29  ;;  %v1529_v29 = vld [vmem:[#allocation2 + $0x77] sm:$0xff]  ;;  %v1592_v60 = vmul.f32 %v3283_v25, %v3348_v2  ;;  %v989_v25 = vmul.f32 %v3351_v54, %v3276_v0 }
 0x114   : > { %v1545_v39 = vmul.f32 %v2904_v20, %v1529_v29 }
 0x115   : > { %1494 = vmatmul.f32.gmra.mxu1 %v3224_v13  ;;  %1688 = vmatmul.f32.gmra.mxu2 %v1543_v14  ;;  %v592_v13 = vld [vmem:[%s3301_s12 + $0x8] sm:$0xff] }
 0x116   : > { %1753 = vmatmul.f32.gmra.mxu3 %v1559_v50  ;;  %1815 = vmatmul.f32.gmra.mxu0 %v1590_v63  ;;  %v596_v51 = vmul.f32 %v3310_v62, %v592_v13  ;;  %v1561_v63 = vld [vmem:[#allocation2 + $0x78] sm:$0xff]  ;;  %v1594_v13 = vmul.f32 %v3351_v54, %v3401_v21  ;;  %v1532_v54 = vld [vmem:[#allocation2 + $0x8f] sm:$0xff] }
 0x118   : > { %v1300_v52 = vpop.f32.mrf.mxu2  ;;  %v600_v26 = vadd.f32 %v3318_v22, %v596_v51 }
 0x119   : > { %v1301_v40 = vadd.f32 %v1300_v52, %v1236_v46  ;;  %v1365_v31 = vpop.f32.mrf.mxu3 }
 0x11a   : > { %v1238_v15 = vpop.f32.mrf.mxu1  ;;  %v602_v23 = vmax.f32 %v600_v26, 0.0 }
 0x11b   : > { %v1366_v47 = vadd.f32 %v1365_v31, %v1301_v40  ;;  %v1430_v5 = vpop.f32.mrf.mxu0  ;;  %v1239_v7 = vadd.f32 %v1238_v15, %v3408_v33  ;;  %v1562_v31 = vld [vmem:[#allocation2 + $0x80] sm:$0xff] }
 0x11c   : > { %v3527_v50 = vmul.f32 %v3336_v36, %v602_v23  ;;  %v1530_v36 = vld [vmem:[#allocation2 + $0x7f] sm:$0xff]  ;;  %v1564_v23 = vld [vmem:[#allocation2 + $0x90] sm:$0xff] }
 0x11d   : > { %v3516_v6 = vadd.f32 %v1430_v5, %v1366_v47  ;;  %1497 = vmatmul.f32.gmra.mxu1 %v987_v41  ;;  %1691 = vmatmul.f32.gmra.mxu2 %v1528_v37 }
 0x11e   : > { %1756 = vmatmul.f32.gmra.mxu3 %v1560_v16  ;;  %1818 = vmatmul.f32.gmra.mxu0 %v3338_v27  ;;  %607 = vst [vmem:[#allocation2 + $0xa0] sm:$0xff] %v3527_v50 }
 0x120   : > { %v1303_v12 = vpop.f32.mrf.mxu2 }
 0x121   : > { %v1304_v17 = vadd.f32 %v1303_v12, %v1239_v7  ;;  %v1368_v58 = vpop.f32.mrf.mxu3  ;;  %v1563_v7 = vld [vmem:[#allocation2 + $0x88] sm:$0xff] }
 0x122   : > { %v1241_v8 = vpop.f32.mrf.mxu1 }
 0x123   : > { %v1369_v14 = vadd.f32 %v1368_v58, %v1304_v17  ;;  %v1433_v28 = vpop.f32.mrf.mxu0  ;;  %v1242_v20 = vadd.f32 %v1241_v8, %v3423_v10 }
 0x125   : > { %v3529_v62 = vadd.f32 %v1433_v28, %v1369_v14  ;;  %1500 = vmatmul.f32.gmra.mxu1 %v3269_v48  ;;  %1694 = vmatmul.f32.gmra.mxu2 %v1545_v39  ;;  %v1531_v48 = vld [vmem:[#allocation2 + $0x87] sm:$0xff] }
 0x126   : > { %1759 = vmatmul.f32.gmra.mxu3 %v1561_v63  ;;  %1821 = vmatmul.f32.gmra.mxu0 %v1592_v60  ;;  %v1547_v5 = vmul.f32 %v2727_v43, %v1531_v48  ;;  %v991_v43 = vmul.f32 %v3398_v57, %v3348_v2 }
 0x128   : > { %v1306_v22 = vpop.f32.mrf.mxu2 }
 0x129   : > { %v1307_v33 = vadd.f32 %v1306_v22, %v1242_v20  ;;  %v1371_v46 = vpop.f32.mrf.mxu3 }
 0x12a   : > { %v1244_v52 = vpop.f32.mrf.mxu1 }
 0x12b   : > { %v1372_v41 = vadd.f32 %v1371_v46, %v1307_v33  ;;  %v1436_v40 = vpop.f32.mrf.mxu0  ;;  %v1245_v10 = vadd.f32 %v1244_v52, %v3442_v61 }
 0x12d   : > { %v3536_v15 = vadd.f32 %v1436_v40, %v1372_v41  ;;  %1503 = vmatmul.f32.gmra.mxu1 %v989_v25  ;;  %1697 = vmatmul.f32.gmra.mxu2 %v1530_v36  ;;  %v3673_v25 = vld [vmem:[#allocation6_spill] sm:$0xff] }
 0x12e   : > { %1762 = vmatmul.f32.gmra.mxu3 %v1562_v31  ;;  %1824 = vmatmul.f32.gmra.mxu0 %v3383_v59  ;;  %v1596_v33 = vmul.f32 %v3398_v57, %v3673_v25  ;;  %v3676_v31 = vld [vmem:[#allocation5_spill] sm:$0xff] }
 0x12f   : > { %v1534_v57 = vld [vmem:[#allocation2 + $0x9f] sm:$0xff] }
 0x130   : > { %v1309_v37 = vpop.f32.mrf.mxu2 }
 0x131   : > { %v1310_v47 = vadd.f32 %v1309_v37, %v1245_v10  ;;  %v1374_v0 = vpop.f32.mrf.mxu3 }
 0x132   : > { %v1247_v16 = vpop.f32.mrf.mxu1 }
 0x133   : > { %v1375_v29 = vadd.f32 %v1374_v0, %v1310_v47  ;;  %v1439_v51 = vpop.f32.mrf.mxu0  ;;  %v1248_v61 = vadd.f32 %v1247_v16, %v3389_v42 }
 0x135   : > { %v3543_v12 = vadd.f32 %v1439_v51, %v1375_v29  ;;  %1506 = vmatmul.f32.gmra.mxu1 %v3338_v27  ;;  %1700 = vmatmul.f32.gmra.mxu2 %v1547_v5  ;;  %v1533_v27 = vld [vmem:[#allocation2 + $0x97] sm:$0xff]  ;;  %v1582_v29 = vld [vmem:[#allocation2 + $0xa1] sm:$0xff] }
 0x136   : > { %1765 = vmatmul.f32.gmra.mxu3 %v1563_v7  ;;  %1827 = vmatmul.f32.gmra.mxu0 %v1594_v13  ;;  %v1549_v20 = vmul.f32 %v2917_v24, %v1533_v27  ;;  %v993_v24 = vmul.f32 %v3676_v31, %v3401_v21  ;;  %v1581_v5 = vld [vmem:[#allocation2 + $0x99] sm:$0xff] }
 0x138   : > { %v1312_v26 = vpop.f32.mrf.mxu2 }
 0x139   : > { %v1313_v17 = vadd.f32 %v1312_v26, %v1248_v61  ;;  %v1377_v58 = vpop.f32.mrf.mxu3  ;;  %v1598_v26 = vmul.f32 %v3676_v31, %v1582_v29  ;;  %v1413_v31 = vadd.f32 %v3466_v32, %v3464_v3 }
 0x13a   : > { %v1250_v39 = vpop.f32.mrf.mxu1 }
 0x13b   : > { %v1378_v8 = vadd.f32 %v1377_v58, %v1313_v17  ;;  %v1442_v60 = vpop.f32.mrf.mxu0  ;;  %v1251_v42 = vadd.f32 %v1250_v39, %v3411_v56  ;;  %v3675_v56 = vld [vmem:[#allocation4_spill] sm:$0xff] }
 0x13d   : > { %v3549_v14 = vadd.f32 %v1442_v60, %v1378_v8  ;;  %1509 = vmatmul.f32.gmra.mxu1 %v991_v43  ;;  %1703 = vmatmul.f32.gmra.mxu2 %v1532_v54 }
 0x13e   : > { %1768 = vmatmul.f32.gmra.mxu3 %v1564_v23  ;;  %1830 = vmatmul.f32.gmra.mxu0 %v3419_v55  ;;  %v3674_v55 = vld [vmem:[#allocation3_spill] sm:$0xff] }
 0x140   : > { %v1315_v28 = vpop.f32.mrf.mxu2 }
 0x141   : > { %v1316_v63 = vadd.f32 %v1315_v28, %v1251_v42  ;;  %v1380_v2 = vpop.f32.mrf.mxu3 }
 0x142   : > { %v1253_v22 = vpop.f32.mrf.mxu1 }
 0x143   : > { %v1381_v46 = vadd.f32 %v1380_v2, %v1316_v63  ;;  %v1445_v52 = vpop.f32.mrf.mxu0  ;;  %v1254_v41 = vadd.f32 %v1253_v22, %v3675_v56 }
 0x145   : > { %v3556_v36 = vadd.f32 %v1445_v52, %v1381_v46  ;;  %1512 = vmatmul.f32.gmra.mxu1 %v3383_v59  ;;  %1706 = vmatmul.f32.gmra.mxu2 %v1549_v20  ;;  %v3677_v59 = vld [vmem:[#allocation7_spill] sm:$0xff]  ;;  %v1410_v20 = vadd.f32 %v3459_v45, %v3457_v44 }
 0x146   : > { %1771 = vmatmul.f32.gmra.mxu3 %v3674_v55  ;;  %1833 = vmatmul.f32.gmra.mxu0 %v1596_v33 }
 0x148   : > { %v1318_v40 = vpop.f32.mrf.mxu2 }
 0x149   : > { %v1319_v48 = vadd.f32 %v1318_v40, %v1254_v41  ;;  %v1383_v10 = vpop.f32.mrf.mxu3 }
 0x14a   : > { %v1256_v37 = vpop.f32.mrf.mxu1 }
 0x14b   : > { %v1384_v47 = vadd.f32 %v1383_v10, %v1319_v48  ;;  %v1448_v0 = vpop.f32.mrf.mxu0  ;;  %v1257_v13 = vadd.f32 %v1256_v37, %v3677_v59 }
 0x14d   : > { %v3563_v16 = vadd.f32 %v1448_v0, %v1384_v47  ;;  %1515 = vmatmul.f32.gmra.mxu1 %v993_v24  ;;  %1709 = vmatmul.f32.gmra.mxu2 %v1534_v57 }
 0x14e   : > { %1774 = vmatmul.f32.gmra.mxu3 %v3527_v50  ;;  %1836 = vmatmul.f32.gmra.mxu0 %v1581_v5  ;;  %v1407_v50 = vadd.f32 %v3450_v4, %v3448_v34 }
 0x150   : > { %v1321_v51 = vpop.f32.mrf.mxu2 }
 0x151   : > { %v1322_v7 = vadd.f32 %v1321_v51, %v1257_v13  ;;  %v1386_v21 = vpop.f32.mrf.mxu3  ;;  %v1416_v13 = vadd.f32 %v3475_v49, %v3473_v19 }
 0x152   : > { %v1471_v61 = vpop.f32.mrf.mxu1 }
 0x153   : > { %v1387_v43 = vadd.f32 %v1386_v21, %v1322_v7  ;;  %v1451_v17 = vpop.f32.mrf.mxu0  ;;  %v1472_v27 = vadd.f32 %v1471_v61, %v1407_v50 }
 0x155   : > { %v3568_v58 = vadd.f32 %v1451_v17, %v1387_v43 }
 0x156   : > { %1839 = vmatmul.f32.gmra.mxu0 %v1598_v26 }
 0x158   : > { %v1665_v39 = vpop.f32.mrf.mxu2 }
 0x159   : > { %v1730_v54 = vpop.f32.mrf.mxu3 }
 0x15a   : > { %v1731_v8 = vadd.f32 %v1730_v54, %v1665_v39  ;;  %v1474_v60 = vpop.f32.mrf.mxu1  ;;  %v1419_v54 = vadd.f32 %v3483_v11, %v3481_v53 }
 0x15b   : > { %v1795_v23 = vpop.f32.mrf.mxu0  ;;  %v1475_v25 = vadd.f32 %v1474_v60, %v1410_v20  ;;  %v1422_v20 = vadd.f32 %v3493_v9, %v3491_v35 }
 0x15c   : > { %v1796_v42 = vadd.f32 %v1795_v23, %v1731_v8 }
 0x15e   : > { %v1843_v28 = vadd.f32 %v1796_v42, %v1472_v27 }
 0x160   : > { %1859 = vst [vmem:[%s3576_s15] sm:$0xff] %v1843_v28  ;;  %v1668_v63 = vpop.f32.mrf.mxu2  ;;  %v1897_v52 = vmul.f32 %v1843_v28, %v1843_v28 }
 0x161   : > { %v1733_v2 = vpop.f32.mrf.mxu3 }
 0x162   : > { %v1734_v34 = vadd.f32 %v1733_v2, %v1668_v63  ;;  %v1477_v4 = vpop.f32.mrf.mxu1 }
 0x163   : > { %v1798_v22 = vpop.f32.mrf.mxu0  ;;  %v1478_v45 = vadd.f32 %v1477_v4, %v1413_v31 }
 0x164   : > { %v1799_v33 = vadd.f32 %v1798_v22, %v1734_v34 }
 0x166   : > { %v1844_v46 = vadd.f32 %v1799_v33, %v1475_v25 }
 0x168   : > { %1860 = vst [vmem:[%s3576_s15 + $0x8] sm:$0xff] %v1844_v46  ;;  %v1875_v55 = vadd.f32 %v1844_v46, %v1843_v28  ;;  %v1898_v56 = vmul.f32 %v1844_v46, %v1844_v46  ;;  %v1671_v41 = vpop.f32.mrf.mxu2 }
 0x169   : > { %v1736_v40 = vpop.f32.mrf.mxu3 }
 0x16a   : > { %v1913_v24 = vadd.f32 %v1898_v56, %v1897_v52  ;;  %v1737_v48 = vadd.f32 %v1736_v40, %v1671_v41  ;;  %v1480_v10 = vpop.f32.mrf.mxu1  ;;  %v1425_v41 = vadd.f32 %v3501_v30, %v3499_v18 }
 0x16b   : > { %v1801_v44 = vpop.f32.mrf.mxu0  ;;  %v1481_v32 = vadd.f32 %v1480_v10, %v1416_v13 }
 0x16c   : > { %v1802_v37 = vadd.f32 %v1801_v44, %v1737_v48 }
 0x16e   : > { %v1845_v57 = vadd.f32 %v1802_v37, %v1478_v45 }
 0x170   : > { %1861 = vst [vmem:[%s3576_s15 + $0x10] sm:$0xff] %v1845_v57  ;;  %v1876_v47 = vadd.f32 %v1875_v55, %v1845_v57  ;;  %v1899_v0 = vmul.f32 %v1845_v57, %v1845_v57  ;;  %v1674_v5 = vpop.f32.mrf.mxu2 }
 0x171   : > { %v1739_v59 = vpop.f32.mrf.mxu3 }
 0x172   : > { %v1914_v29 = vadd.f32 %v1913_v24, %v1899_v0  ;;  %v1740_v51 = vadd.f32 %v1739_v59, %v1674_v5  ;;  %v1483_v7 = vpop.f32.mrf.mxu1 }
 0x173   : > { %v1804_v3 = vpop.f32.mrf.mxu0  ;;  %v1484_v49 = vadd.f32 %v1483_v7, %v1419_v54 }
 0x174   : > { %v1805_v21 = vadd.f32 %v1804_v3, %v1740_v51 }
 0x176   : > { %v1846_v61 = vadd.f32 %v1805_v21, %v1481_v32 }
 0x178   : > { %1862 = vst [vmem:[%s3576_s15 + $0x18] sm:$0xff] %v1846_v61  ;;  %v1877_v26 = vadd.f32 %v1876_v47, %v1846_v61  ;;  %v1900_v43 = vmul.f32 %v1846_v61, %v1846_v61  ;;  %v1677_v17 = vpop.f32.mrf.mxu2  ;;  %v1428_v47 = vadd.f32 %v3510_v38, %v3508_v1 }
 0x179   : > { %v1742_v39 = vpop.f32.mrf.mxu3 }
 0x17a   : > { %v1915_v50 = vadd.f32 %v1914_v29, %v1900_v43  ;;  %v1743_v8 = vadd.f32 %v1742_v39, %v1677_v17  ;;  %v1486_v60 = vpop.f32.mrf.mxu1 }
 0x17b   : > { %v1807_v19 = vpop.f32.mrf.mxu0  ;;  %v1487_v11 = vadd.f32 %v1486_v60, %v1422_v20 }
 0x17c   : > { %v1808_v23 = vadd.f32 %v1807_v19, %v1743_v8 }
 0x17e   : > { %v1847_v27 = vadd.f32 %v1808_v23, %v1484_v49 }
 0x180   : > { %1863 = vst [vmem:[%s3576_s15 + $0x20] sm:$0xff] %v1847_v27  ;;  %v1878_v42 = vadd.f32 %v1877_v26, %v1847_v27  ;;  %v1901_v28 = vmul.f32 %v1847_v27, %v1847_v27  ;;  %v1680_v63 = vpop.f32.mrf.mxu2 }
 0x181   : > { %v1745_v2 = vpop.f32.mrf.mxu3 }
 0x182   : > { %v1916_v34 = vadd.f32 %v1915_v50, %v1901_v28  ;;  %v1746_v4 = vadd.f32 %v1745_v2, %v1680_v63  ;;  %v1489_v22 = vpop.f32.mrf.mxu1 }
 0x183   : > { %v1810_v53 = vpop.f32.mrf.mxu0  ;;  %v1490_v9 = vadd.f32 %v1489_v22, %v1425_v41 }
 0x184   : > { %v1811_v25 = vadd.f32 %v1810_v53, %v1746_v4 }
 0x186   : > { %v1848_v33 = vadd.f32 %v1811_v25, %v1487_v11 }
 0x188   : > { %1864 = vst [vmem:[%s3576_s15 + $0x28] sm:$0xff] %v1848_v33  ;;  %v1879_v46 = vadd.f32 %v1878_v42, %v1848_v33  ;;  %v1902_v52 = vmul.f32 %v1848_v33, %v1848_v33  ;;  %v1683_v55 = vpop.f32.mrf.mxu2 }
 0x189   : > { %v1748_v56 = vpop.f32.mrf.mxu3 }
 0x18a   : > { %v1917_v40 = vadd.f32 %v1916_v34, %v1902_v52  ;;  %v1749_v31 = vadd.f32 %v1748_v56, %v1683_v55  ;;  %v1492_v24 = vpop.f32.mrf.mxu1 }
 0x18b   : > { %v1813_v35 = vpop.f32.mrf.mxu0  ;;  %v1493_v30 = vadd.f32 %v1492_v24, %v1428_v47 }
 0x18c   : > { %v1814_v48 = vadd.f32 %v1813_v35, %v1749_v31 }
 0x18e   : > { %v1849_v10 = vadd.f32 %v1814_v48, %v1490_v9 }
 0x190   : > { %1865 = vst [vmem:[%s3576_s15 + $0x30] sm:$0xff] %v1849_v10  ;;  %v1880_v44 = vadd.f32 %v1879_v46, %v1849_v10  ;;  %v1903_v45 = vmul.f32 %v1849_v10, %v1849_v10  ;;  %v1686_v37 = vpop.f32.mrf.mxu2 }
 0x191   : > { %v1751_v57 = vpop.f32.mrf.mxu3 }
 0x192   : > { %v1918_v0 = vadd.f32 %v1917_v40, %v1903_v45  ;;  %v1752_v5 = vadd.f32 %v1751_v57, %v1686_v37  ;;  %v1495_v59 = vpop.f32.mrf.mxu1 }
 0x193   : > { %v1816_v18 = vpop.f32.mrf.mxu0  ;;  %v1496_v1 = vadd.f32 %v1495_v59, %v3516_v6 }
 0x194   : > { %v1817_v13 = vadd.f32 %v1816_v18, %v1752_v5 }
 0x196   : > { %v1850_v29 = vadd.f32 %v1817_v13, %v1493_v30 }
 0x198   : > { %1866 = vst [vmem:[%s3576_s15 + $0x38] sm:$0xff] %v1850_v29  ;;  %v1881_v51 = vadd.f32 %v1880_v44, %v1850_v29  ;;  %v1904_v7 = vmul.f32 %v1850_v29, %v1850_v29  ;;  %v1689_v3 = vpop.f32.mrf.mxu2 }
 0x199   : > { %v1754_v32 = vpop.f32.mrf.mxu3 }
 0x19a   : > { %v1919_v21 = vadd.f32 %v1918_v0, %v1904_v7  ;;  %v1755_v61 = vadd.f32 %v1754_v32, %v1689_v3  ;;  %v1498_v26 = vpop.f32.mrf.mxu1 }
 0x19b   : > { %v1819_v43 = vpop.f32.mrf.mxu0  ;;  %v1499_v27 = vadd.f32 %v1498_v26, %v3529_v62 }
 0x19c   : > { %v1820_v38 = vadd.f32 %v1819_v43, %v1755_v61 }
 0x19e   : > { %v1851_v17 = vadd.f32 %v1820_v38, %v1496_v1 }
 0x1a0   : > { %1867 = vst [vmem:[%s3576_s15 + $0x40] sm:$0xff] %v1851_v17  ;;  %v1882_v39 = vadd.f32 %v1881_v51, %v1851_v17  ;;  %v1905_v54 = vmul.f32 %v1851_v17, %v1851_v17  ;;  %v1692_v50 = vpop.f32.mrf.mxu2 }
 0x1a1   : > { %v1757_v8 = vpop.f32.mrf.mxu3 }
 0x1a2   : > { %v1920_v60 = vadd.f32 %v1919_v21, %v1905_v54  ;;  %v1758_v19 = vadd.f32 %v1757_v8, %v1692_v50  ;;  %v1501_v49 = vpop.f32.mrf.mxu1 }
 0x1a3   : > { %v1822_v23 = vpop.f32.mrf.mxu0  ;;  %v1502_v11 = vadd.f32 %v1501_v49, %v3536_v15 }
 0x1a4   : > { %v1823_v42 = vadd.f32 %v1822_v23, %v1758_v19 }
 0x1a6   : > { %v1852_v28 = vadd.f32 %v1823_v42, %v1499_v27 }
 0x1a8   : > { %1868 = vst [vmem:[%s3576_s15 + $0x48] sm:$0xff] %v1852_v28  ;;  %v1883_v63 = vadd.f32 %v1882_v39, %v1852_v28  ;;  %v1906_v2 = vmul.f32 %v1852_v28, %v1852_v28  ;;  %v1695_v6 = vpop.f32.mrf.mxu2 }
 0x1a9   : > { %v1760_v20 = vpop.f32.mrf.mxu3 }
 0x1aa   : > { %v1921_v34 = vadd.f32 %v1920_v60, %v1906_v2  ;;  %v1761_v4 = vadd.f32 %v1760_v20, %v1695_v6  ;;  %v1504_v22 = vpop.f32.mrf.mxu1 }
 0x1ab   : > { %v1825_v53 = vpop.f32.mrf.mxu0  ;;  %v1505_v24 = vadd.f32 %v1504_v22, %v3543_v12 }
 0x1ac   : > { %v1826_v25 = vadd.f32 %v1825_v53, %v1761_v4 }
 0x1ae   : > { %v1853_v33 = vadd.f32 %v1826_v25, %v1502_v11 }
 0x1b0   : > { %1869 = vst [vmem:[%s3576_s15 + $0x50] sm:$0xff] %v1853_v33  ;;  %v1884_v46 = vadd.f32 %v1883_v63, %v1853_v33  ;;  %v1907_v52 = vmul.f32 %v1853_v33, %v1853_v33  ;;  %v1698_v62 = vpop.f32.mrf.mxu2 }
 0x1b1   : > { %v1763_v55 = vpop.f32.mrf.mxu3 }
 0x1b2   : > { %v1922_v56 = vadd.f32 %v1921_v34, %v1907_v52  ;;  %v1764_v41 = vadd.f32 %v1763_v55, %v1698_v62  ;;  %v1507_v40 = vpop.f32.mrf.mxu1 }
 0x1b3   : > { %v1828_v31 = vpop.f32.mrf.mxu0  ;;  %v1508_v47 = vadd.f32 %v1507_v40, %v3549_v14 }
 0x1b4   : > { %v1829_v35 = vadd.f32 %v1828_v31, %v1764_v41 }
 0x1b6   : > { %v1854_v9 = vadd.f32 %v1829_v35, %v1505_v24 }
 0x1b8   : > { %1870 = vst [vmem:[%s3576_s15 + $0x58] sm:$0xff] %v1854_v9  ;;  %v1885_v48 = vadd.f32 %v1884_v46, %v1854_v9  ;;  %v1908_v10 = vmul.f32 %v1854_v9, %v1854_v9  ;;  %v1701_v15 = vpop.f32.mrf.mxu2 }
 0x1b9   : > { %v1766_v44 = vpop.f32.mrf.mxu3 }
 0x1ba   : > { %v1923_v45 = vadd.f32 %v1922_v56, %v1908_v10  ;;  %v1767_v37 = vadd.f32 %v1766_v44, %v1701_v15  ;;  %v1510_v5 = vpop.f32.mrf.mxu1 }
 0x1bb   : > { %v1831_v57 = vpop.f32.mrf.mxu0  ;;  %v1511_v3 = vadd.f32 %v1510_v5, %v3556_v36 }
 0x1bc   : > { %v1832_v0 = vadd.f32 %v1831_v57, %v1767_v37 }
 0x1be   : > { %v1855_v59 = vadd.f32 %v1832_v0, %v1508_v47 }
 0x1c0   : > { %1871 = vst [vmem:[%s3576_s15 + $0x60] sm:$0xff] %v1855_v59  ;;  %v1886_v18 = vadd.f32 %v1885_v48, %v1855_v59  ;;  %v1909_v30 = vmul.f32 %v1855_v59, %v1855_v59  ;;  %v1704_v12 = vpop.f32.mrf.mxu2 }
 0x1c1   : > { %v1769_v13 = vpop.f32.mrf.mxu3 }
 0x1c2   : > { %v1924_v29 = vadd.f32 %v1923_v45, %v1909_v30  ;;  %v1770_v51 = vadd.f32 %v1769_v13, %v1704_v12  ;;  %v1513_v61 = vpop.f32.mrf.mxu1 }
 0x1c3   : > { %v1834_v7 = vpop.f32.mrf.mxu0  ;;  %v1514_v54 = vadd.f32 %v1513_v61, %v3563_v16 }
 0x1c4   : > { %v1835_v32 = vadd.f32 %v1834_v7, %v1770_v51 }
 0x1c6   : > { %v1856_v21 = vadd.f32 %v1835_v32, %v1511_v3 }
 0x1c8   : > { %1872 = vst [vmem:[%s3576_s15 + $0x68] sm:$0xff] %v1856_v21  ;;  %v1887_v14 = vadd.f32 %v1886_v18, %v1856_v21  ;;  %v1910_v26 = vmul.f32 %v1856_v21, %v1856_v21  ;;  %v1707_v43 = vpop.f32.mrf.mxu2 }
 0x1c9   : > { %v1772_v1 = vpop.f32.mrf.mxu3 }
 0x1ca   : > { %v1925_v38 = vadd.f32 %v1924_v29, %v1910_v26  ;;  %v1773_v17 = vadd.f32 %v1772_v1, %v1707_v43  ;;  %v1516_v49 = vpop.f32.mrf.mxu1 }
 0x1cb   : > { %v1837_v39 = vpop.f32.mrf.mxu0  ;;  %v1517_v63 = vadd.f32 %v1516_v49, %v3568_v58 }
 0x1cc   : > { %v1838_v50 = vadd.f32 %v1837_v39, %v1773_v17 }
 0x1ce   : > { %v1857_v8 = vadd.f32 %v1838_v50, %v1514_v54 }
 0x1d0   : > { %1873 = vst [vmem:[%s3576_s15 + $0x70] sm:$0xff] %v1857_v8  ;;  %v1888_v60 = vadd.f32 %v1887_v14, %v1857_v8  ;;  %v1911_v36 = vmul.f32 %v1857_v8, %v1857_v8  ;;  %v1710_v19 = vpop.f32.mrf.mxu2 }
 0x1d1   : > { %v1775_v23 = vpop.f32.mrf.mxu3 }
 0x1d2   : > { %v1926_v27 = vadd.f32 %v1925_v38, %v1911_v36  ;;  %v1776_v42 = vadd.f32 %v1775_v23, %v1710_v19 }
 0x1d3   : > { %v1840_v28 = vpop.f32.mrf.mxu0 }
 0x1d4   : > { %v1841_v2 = vadd.f32 %v1840_v28, %v1776_v42 }
 0x1d6   : > { %v1858_v6 = vadd.f32 %v1841_v2, %v1517_v63 }
 0x1d8   : > { %1874 = vst [vmem:[%s3576_s15 + $0x78] sm:$0xff] %v1858_v6  ;;  %v1889_v16 = vadd.f32 %v1888_v60, %v1858_v6  ;;  %v1912_v20 = vmul.f32 %v1858_v6, %v1858_v6 }
 0x1da   : > { %v1890_v34 = vrot.slane %v1889_v16, 4  ;;  %v1927_v4 = vadd.f32 %v1926_v27, %v1912_v20 }
 0x1dc   : > { %v1891_v22 = vadd.f32 %v1890_v34, %v1889_v16  ;;  %v1928_v53 = vrot.slane %v1927_v4, 4 }
 0x1de   : > { %v1892_v11 = vrot.slane %v1891_v22, 2  ;;  %v1929_v25 = vadd.f32 %v1928_v53, %v1927_v4 }
 0x1e0   : > { %v1893_v33 = vadd.f32 %v1892_v11, %v1891_v22  ;;  %v1930_v46 = vrot.slane %v1929_v25, 2 }
 0x1e2   : > { %v1894_v52 = vrot.slane %v1893_v33, 1  ;;  %v1931_v62 = vadd.f32 %v1930_v46, %v1929_v25 }
 0x1e4   : > { %v1895_v58 = vadd.f32 %v1894_v52, %v1893_v33  ;;  %v1932_v55 = vrot.slane %v1931_v62, 1 }
 0x1e6   : > { %1896 = vst [vmem:[%s475_s19] sm:$0x1] %v1895_v58  ;;  %v1933_v56 = vadd.f32 %v1932_v55, %v1931_v62 }
 0x1e8   : > { %1934 = vst [vmem:[%s482_s14] sm:$0x1] %v1933_v56 }
 0x1e9 PF: > { %s18_s28 = sadd.s32 1, %s2430_s28   ;;  %s3678_s24 = smov %s2422_s26 }
 0x1ea   : > { %p15_p13 = scmp.ge.s32.totalorder %s18_s28, 6   ;;  %s3679_s25 = smov %s2426_s27 }
 0x1eb   : > { %s3680_s26 = smov %s3683_s29  ;;  %s3681_s27 = smov %s3687_s30 }
 0x1ec   :  { %17 = sbr.rel (!%p15_p13) target bundleno = 3 (0x3), region = 102 }

</bundles_post_ra>
